<compile_context>
chip_gen: v5e
topology: v5e:2x2
jax: 0.10.0
libtpu: 0.0.40
codegen_flags: <defaults>
</compile_context>

<pallas_src>
import jax
import jax.numpy as jnp
from jax.experimental import pallas as pl
from jax.experimental.pallas import tpu as pltpu

# ---------------- static configuration (module hyper-parameters) ------------
IN_CHS = 16          # in_chs
OUT_CHS = 32         # out_chs
STRIDE = 2
DEPTH = 2
MLP_RATIO = 4
BRANCH_RATIO = 0.125
SQUARE_K = 3
BAND_K = 11
BN_EPS = 1e-5
PAD = BAND_K // 2            # = 5, conv padding of the band branches
HID = MLP_RATIO * OUT_CHS    # = 128
LFT = 8                      # left/right zero-pad columns (keeps image sublane-aligned)

# Union of taps inside the 11x11 window used by InceptionDWConv2d
# (identity / 3x3 square / 1x11 row / 11x1 column), ordered kx-major so the
# kernel can group them by kx (one sublane-offset window per distinct kx).
_TAP_SET = ({(ky, kx) for ky in (4, 5, 6) for kx in (4, 5, 6)}
            | {(5, kx) for kx in range(BAND_K)}
            | {(ky, 5) for ky in range(BAND_K)})
_TAPS = tuple(sorted(_TAP_SET, key=lambda t: (t[1], t[0])))          # kx-major
N_TAPS = len(_TAPS)                                                  # 25
_KX_GROUPS = tuple((kx, tuple(ky for (ky, kx2) in _TAPS if kx2 == kx))
                   for kx in range(BAND_K))                          # 11 groups


# ---------------- fused whole-stage Pallas kernel -----------------------------
def _make_stage_kernel(h, w, c):
    """Fused stage kernel for one image of the (already downsampled) size
    (h, w, c).  Activation rows are ordered (y, x)."""
    hp = h + 2 * PAD              # padded rows (leading dim -> free ky slices)
    wp = LFT + w + LFT            # padded cols (sublane dim -> kx windows)

    def kernel(xs_ref, wds_ref, bds_ref, dww_ref, dwb_ref,
               w1_ref, b1_ref, w2_ref, b2_ref, o_ref, xp_ref):
        # (re)zero only the border strips of the padded scratch; the interior
        # is fully overwritten by every block (4 bulk stores, no full memset).
        xp_ref[0:PAD, :, :] = jnp.zeros((PAD, wp, c), jnp.float32)
        xp_ref[PAD + h:hp, :, :] = jnp.zeros((hp - PAD - h, wp, c), jnp.float32)
        xp_ref[PAD:PAD + h, 0:LFT, :] = jnp.zeros((h, LFT, c), jnp.float32)
        xp_ref[PAD:PAD + h, LFT + w:wp, :] = jnp.zeros((h, wp - LFT - w, c),
                                                       jnp.float32)

        # --- downsample: eval-BN folded into the 2x2/s2 conv == one bf16
        #     space-to-depth MXU matmul with f32 accumulation -----------------
        act = jnp.dot(xs_ref[0], wds_ref[...],
                      preferred_element_type=jnp.float32) + bds_ref[...]
        # act: (h*w, c) f32, rows ordered (y, x)

        for d in range(DEPTH):                        # static unroll over blocks
            # bulk scatter of the activation into the zero-padded scratch
            xp_ref[PAD:PAD + h, LFT:LFT + w, :] = act.reshape(h, w, c)

            # --- InceptionDWConv2d token mixer (BN folded into tap weights) --
            # taps grouped by kx: one sublane-offset window per kx group, ky
            # offsets are free leading-dim slices; weights hoisted per block.
            wd = dww_ref[d]                           # (N_TAPS, c)
            acc = jnp.zeros((h, w, c), jnp.float32)
            t = 0
            for kx, kys in _KX_GROUPS:                # 11 groups, 25 taps total
                lo, hi = kys[0], kys[-1]
                x0 = LFT + kx - PAD
                blk = xp_ref[lo:hi + h, x0:x0 + w, :]     # (hi-lo+h, w, c)
                for ky in kys:
                    acc = acc + blk[ky - lo:ky - lo + h] * wd[t:t + 1, :]
                    t += 1
            y2 = acc.reshape(h * w, c) + dwb_ref[d]       # mixer bias + BN shift

            # --- ConvMlp: two 1x1 convs == bf16 MXU matmuls (f32 accum),
            #     tanh-approx GELU on the EUP, layer-scale folded into fc2 ----
            h1 = jnp.dot(y2.astype(jnp.bfloat16), w1_ref[d],
                         preferred_element_type=jnp.float32) + b1_ref[d]
            h1 = 0.5 * h1 * (1.0 + jnp.tanh(
                0.7978845608028654 * (h1 + 0.044715 * h1 * h1 * h1)))
            h2 = jnp.dot(h1.astype(jnp.bfloat16), w2_ref[d],
                         preferred_element_type=jnp.float32) + b2_ref[d]

            act = act + h2                                # residual

        o_ref[0] = act

    return kernel, hp, wp


# ---------------- wrapper ------------------------------------------------------
@jax.jit
def metanext_stage_forward(x_nchw, params):
    n, cin, hin, win = x_nchw.shape
    assert cin == IN_CHS and hin % 2 == 0 and win % 2 == 0
    ho, wo, c = hin // STRIDE, win // STRIDE, OUT_CHS

    # fold eval-mode BatchNorm (x*s + t) into the 2x2/s2 conv (exact)
    ds = params['downsample']
    s = ds['bn_w'] / jnp.sqrt(ds['bn_v'] + BN_EPS)
    t = ds['bn_b'] - ds['bn_m'] * s
    wconv = ds['conv_w'] * s[None, :, None, None]                     # (O,I,2,2)
    bconv = ds['conv_b'] + jnp.einsum('oikl,i->o', ds['conv_w'], t)   # (O,)
    wds = jnp.transpose(wconv, (2, 3, 1, 0)).reshape(4 * cin, c)      # (ky,kx,ci)->o

    # space-to-depth input: per image, rows ordered (y, x), cols (ky, kx, ci)
    x_nhwc = jnp.transpose(x_nchw, (0, 2, 3, 1))
    xs2d = (x_nhwc.reshape(n, ho, 2, wo, 2, cin)
            .transpose(0, 1, 3, 2, 4, 5)
            .reshape(n, ho * wo, 4 * cin))

    # per-block params: fold eval-BN into the mixer taps, gamma into fc2
    blocks = params['blocks']
    dww = jnp.stack([b['dww'] * b['bn_s'] for b in blocks])               # (D,T,C)
    dwb = jnp.stack([b['dwb'] * b['bn_s'] + b['bn_t'] for b in blocks])   # (D,1,C)
    w1 = jnp.stack([b['w1'] for b in blocks])                             # (D,C,4C)
    b1 = jnp.stack([b['b1'] for b in blocks])                             # (D,1,4C)
    w2 = jnp.stack([b['w2'] * b['gamma'] for b in blocks])                # (D,4C,C)
    b2 = jnp.stack([b['b2'] * b['gamma'] for b in blocks])                # (D,1,C)

    kernel, hp, wp = _make_stage_kernel(ho, wo, c)
    yflat = pl.pallas_call(
        kernel,
        out_shape=jax.ShapeDtypeStruct((n, ho * wo, c), jnp.float32),
        grid_spec=pltpu.PrefetchScalarGridSpec(
            num_scalar_prefetch=0,
            grid=(n,),                                   # one image per grid step
            in_specs=[
                pl.BlockSpec((1, ho * wo, 4 * cin), lambda b: (b, 0, 0)),
                pl.BlockSpec((4 * cin, c), lambda b: (0, 0)),
                pl.BlockSpec((1, c), lambda b: (0, 0)),
                pl.BlockSpec((DEPTH, N_TAPS, c), lambda b: (0, 0, 0)),
                pl.BlockSpec((DEPTH, 1, c), lambda b: (0, 0, 0)),
                pl.BlockSpec((DEPTH, c, HID), lambda b: (0, 0, 0)),
                pl.BlockSpec((DEPTH, 1, HID), lambda b: (0, 0, 0)),
                pl.BlockSpec((DEPTH, HID, c), lambda b: (0, 0, 0)),
                pl.BlockSpec((DEPTH, 1, c), lambda b: (0, 0, 0)),
            ],
            out_specs=pl.BlockSpec((1, ho * wo, c), lambda b: (b, 0, 0)),
            scratch_shapes=[pltpu.VMEM((hp, wp, c), jnp.float32)],
        ),
        compiler_params=pltpu.CompilerParams(
            dimension_semantics=("parallel",),           # megacore batch split
            vmem_limit_bytes=32 * 1024 * 1024),
    )(xs2d.astype(jnp.bfloat16), wds.astype(jnp.bfloat16),
      bconv.reshape(1, c), dww, dwb,
      w1.astype(jnp.bfloat16), b1, w2.astype(jnp.bfloat16), b2)

    # kernel emits (n, h*w, c); interface back to the module's NCHW layout
    return yflat.reshape(n, ho, wo, c).transpose(0, 3, 1, 2)


# ---------------- parameter construction --------------------------------------
def _build_mixer_taps(w_hw, b_hw, w_w, b_w, w_h, b_h, dim, gc):
    """Pack the three depthwise branches + identity into (N_TAPS, dim) weights."""
    idc = dim - 3 * gc
    rows = []
    for (ky, kx) in _TAPS:
        row = jnp.zeros((dim,), jnp.float32)
        if (ky, kx) == (5, 5):
            row = row.at[:idc].set(1.0)                              # identity
        if 4 <= ky <= 6 and 4 <= kx <= 6:
            row = row.at[idc:idc + gc].set(w_hw[:, 0, ky - 4, kx - 4])
        if ky == 5:
            row = row.at[idc + gc:idc + 2 * gc].set(w_w[:, 0, 0, kx])
        if kx == 5:
            row = row.at[idc + 2 * gc:idc + 3 * gc].set(w_h[:, 0, ky, 0])
        rows.append(row)
    dww = jnp.stack(rows, axis=0)
    dwb = jnp.concatenate([jnp.zeros((idc,), jnp.float32), b_hw, b_w, b_h])
    return dww, dwb


def init_params(key):
    gc = int(OUT_CHS * BRANCH_RATIO)
    hid = int(MLP_RATIO * OUT_CHS)
    keys = iter(jax.random.split(key, 64))

    def nrm(shape, scale=0.1):
        return scale * jax.random.normal(next(keys), shape, jnp.float32)

    def uni(shape, lo, hi):
        return jax.random.uniform(next(keys), shape, jnp.float32, lo, hi)

    downsample = dict(
        bn_w=uni((IN_CHS,), 0.8, 1.2), bn_b=nrm((IN_CHS,)),
        bn_m=nrm((IN_CHS,)), bn_v=uni((IN_CHS,), 0.5, 1.5),
        conv_w=nrm((OUT_CHS, IN_CHS, 2, 2), 0.2), conv_b=nrm((OUT_CHS,)),
    )

    blocks = []
    for _ in range(DEPTH):
        w_hw = nrm((gc, 1, SQUARE_K, SQUARE_K), 0.2); b_hw = nrm((gc,))
        w_w = nrm((gc, 1, 1, BAND_K), 0.2);           b_w = nrm((gc,))
        w_h = nrm((gc, 1, BAND_K, 1), 0.2);           b_h = nrm((gc,))
        dww, dwb = _build_mixer_taps(w_hw, b_hw, w_w, b_w, w_h, b_h, OUT_CHS, gc)

        bn_w = uni((OUT_CHS,), 0.8, 1.2); bn_b = nrm((OUT_CHS,))
        bn_m = nrm((OUT_CHS,));           bn_v = uni((OUT_CHS,), 0.5, 1.5)
        bn_s = bn_w / jnp.sqrt(bn_v + BN_EPS)
        bn_t = bn_b - bn_m * bn_s

        # 1x1-conv weights stored directly as (Cin, Cout) matmul matrices
        w1 = nrm((OUT_CHS, hid), 0.1); b1 = nrm((hid,))
        w2 = nrm((hid, OUT_CHS), 0.1); b2 = nrm((OUT_CHS,))
        gamma = jnp.ones((OUT_CHS,), jnp.float32)      # ls_init_value = 1.0

        blocks.append(dict(
            dww=dww, dwb=dwb.reshape(1, OUT_CHS),
            bn_s=bn_s.reshape(1, OUT_CHS), bn_t=bn_t.reshape(1, OUT_CHS),
            w1=w1, b1=b1.reshape(1, hid), w2=w2, b2=b2.reshape(1, OUT_CHS),
            gamma=gamma.reshape(1, OUT_CHS),
            raw=dict(w_hw=w_hw, b_hw=b_hw, w_w=w_w, b_w=b_w, w_h=w_h, b_h=b_h),
        ))
    return dict(downsample=downsample, blocks=blocks)


# ---------------- pure-JAX reference (mirrors the PyTorch forward, NCHW) ------
def _reference_forward(x, params):
    ds = params['downsample']
    s = ds['bn_w'] / jnp.sqrt(ds['bn_v'] + BN_EPS)
    t = ds['bn_b'] - ds['bn_m'] * s
    x = x * s[None, :, None, None] + t[None, :, None, None]
    x = jax.lax.conv_general_dilated(
        x, ds['conv_w'], (STRIDE, STRIDE), 'VALID',
        dimension_numbers=('NCHW', 'OIHW', 'NCHW')
    ) + ds['conv_b'][None, :, None, None]

    for blk in params['blocks']:
        raw = blk['raw']
        gc = raw['w_hw'].shape[0]
        idc = x.shape[1] - 3 * gc
        x_id, x_hw = x[:, :idc], x[:, idc:idc + gc]
        x_w, x_h = x[:, idc + gc:idc + 2 * gc], x[:, idc + 2 * gc:]

        def dw(inp, w, b, pad):
            out = jax.lax.conv_general_dilated(
                inp, w, (1, 1), pad,
                dimension_numbers=('NCHW', 'OIHW', 'NCHW'),
                feature_group_count=inp.shape[1])
            return out + b[None, :, None, None]

        y = jnp.concatenate([
            x_id,
            dw(x_hw, raw['w_hw'], raw['b_hw'], ((1, 1), (1, 1))),
            dw(x_w, raw['w_w'], raw['b_w'], ((0, 0), (PAD, PAD))),
            dw(x_h, raw['w_h'], raw['b_h'], ((PAD, PAD), (0, 0))),
        ], axis=1)
        y = y * blk['bn_s'].reshape(1, -1, 1, 1) + blk['bn_t'].reshape(1, -1, 1, 1)
        N, C, H, W = y.shape
        yf = y.transpose(0, 2, 3, 1).reshape(-1, C)
        h = jax.nn.gelu(yf @ blk['w1'] + blk['b1'], approximate=False)
        h = h @ blk['w2'] + blk['b2']
        h = h * blk['gamma']
        x = h.reshape(N, H, W, C).transpose(0, 3, 1, 2) + x
    return x


# ---------------- main ---------------------------------------------------------
if __name__ == "__main__":
    key = jax.random.PRNGKey(0)
    pkey, xkey = jax.random.split(key)
    params = init_params(pkey)

    # NCHW input, as in the PyTorch module
    x = jax.random.normal(xkey, (2, IN_CHS, 16, 16), jnp.float32)

    y = metanext_stage_forward(x, params)
    y = jax.block_until_ready(y)
    assert y.shape == (2, OUT_CHS, 8, 8), y.shape
    assert bool(jnp.all(jnp.isfinite(y)))

    # sanity check against a pure-f32 / exact-erf-GELU mirror of the PyTorch
    # forward; the gap is dominated by the intentional bf16 matmul operands and
    # tanh-approx GELU (typically ~1e-2 at these scales).
    y_ref = jax.block_until_ready(_reference_forward(x, params))
    err = float(jnp.max(jnp.abs(y - y_ref)))
    assert err < 1e-1, f"max abs err vs reference: {err}"

    print("KERNEL_OK")
</pallas_src>

<mosaic_0001>
module attributes {stable_mosaic.version = 11 : i64} {
  func.func @kernel(%arg0: i32, %arg1: memref<1x64x64xbf16, #tpu.memory_space<vmem>>, %arg2: memref<64x32xbf16, #tpu.memory_space<vmem>>, %arg3: memref<1x32xf32, #tpu.memory_space<vmem>>, %arg4: memref<2x25x32xf32, #tpu.memory_space<vmem>>, %arg5: memref<2x1x32xf32, #tpu.memory_space<vmem>>, %arg6: memref<2x32x128xbf16, #tpu.memory_space<vmem>>, %arg7: memref<2x1x128xf32, #tpu.memory_space<vmem>>, %arg8: memref<2x128x32xbf16, #tpu.memory_space<vmem>>, %arg9: memref<2x1x32xf32, #tpu.memory_space<vmem>>, %arg10: memref<1x64x32xf32, #tpu.memory_space<vmem>>, %arg11: memref<18x24x32xf32, #tpu.memory_space<vmem>>) attributes {dimension_semantics = [#tpu.dimension_semantics<parallel>], iteration_bounds = array<i64: 2>, scalar_prefetch = 0 : i64, scratch_operands = 1 : i64, tpu.core_type = #tpu.core_type<tc>, window_params = [{transform_indices = @transform_0, window_bounds = array<i64: 1, 64, 64>}, {pipeline_mode = #tpu.pipeline_mode<synchronous>, transform_indices = @transform_1, window_bounds = array<i64: 64, 32>}, {pipeline_mode = #tpu.pipeline_mode<synchronous>, transform_indices = @transform_2, window_bounds = array<i64: 1, 32>}, {pipeline_mode = #tpu.pipeline_mode<synchronous>, transform_indices = @transform_3, window_bounds = array<i64: 2, 25, 32>}, {pipeline_mode = #tpu.pipeline_mode<synchronous>, transform_indices = @transform_4, window_bounds = array<i64: 2, 1, 32>}, {pipeline_mode = #tpu.pipeline_mode<synchronous>, transform_indices = @transform_5, window_bounds = array<i64: 2, 32, 128>}, {pipeline_mode = #tpu.pipeline_mode<synchronous>, transform_indices = @transform_6, window_bounds = array<i64: 2, 1, 128>}, {pipeline_mode = #tpu.pipeline_mode<synchronous>, transform_indices = @transform_7, window_bounds = array<i64: 2, 128, 32>}, {pipeline_mode = #tpu.pipeline_mode<synchronous>, transform_indices = @transform_8, window_bounds = array<i64: 2, 1, 32>}, {transform_indices = @transform_9, window_bounds = array<i64: 1, 64, 32>}]} {
    %cst = arith.constant 0.000000e+00 : f32
    %0 = vector.broadcast %cst : f32 to vector<5x24x32xf32>
    %c0 = arith.constant 0 : index
    %c0_0 = arith.constant 0 : index
    %c0_1 = arith.constant 0 : index
    %1 = vector.load %arg11[%c0, %c0_0, %c0_1] : memref<18x24x32xf32, #tpu.memory_space<vmem>>, vector<5x24x32xf32>
    tpu.vector_store %arg11[%c0, %c0_0, %c0_1], %0 {strides = array<i32>} : memref<18x24x32xf32, #tpu.memory_space<vmem>>, vector<5x24x32xf32>,
    %cst_2 = arith.constant 0.000000e+00 : f32
    %2 = vector.broadcast %cst_2 : f32 to vector<5x24x32xf32>
    %c13 = arith.constant 13 : index
    %c0_3 = arith.constant 0 : index
    %c0_4 = arith.constant 0 : index
    %3 = vector.load %arg11[%c13, %c0_3, %c0_4] : memref<18x24x32xf32, #tpu.memory_space<vmem>>, vector<5x24x32xf32>
    tpu.vector_store %arg11[%c13, %c0_3, %c0_4], %2 {strides = array<i32>} : memref<18x24x32xf32, #tpu.memory_space<vmem>>, vector<5x24x32xf32>,
    %cst_5 = arith.constant 0.000000e+00 : f32
    %4 = vector.broadcast %cst_5 : f32 to vector<8x8x32xf32>
    %c5 = arith.constant 5 : index
    %c0_6 = arith.constant 0 : index
    %c0_7 = arith.constant 0 : index
    %5 = vector.load %arg11[%c5, %c0_6, %c0_7] : memref<18x24x32xf32, #tpu.memory_space<vmem>>, vector<8x8x32xf32>
    tpu.vector_store %arg11[%c5, %c0_6, %c0_7], %4 {strides = array<i32>} : memref<18x24x32xf32, #tpu.memory_space<vmem>>, vector<8x8x32xf32>,
    %cst_8 = arith.constant 0.000000e+00 : f32
    %6 = vector.broadcast %cst_8 : f32 to vector<8x8x32xf32>
    %c5_9 = arith.constant 5 : index
    %c16 = arith.constant 16 : index
    %c0_10 = arith.constant 0 : index
    %7 = vector.load %arg11[%c5_9, %c16, %c0_10] : memref<18x24x32xf32, #tpu.memory_space<vmem>>, vector<8x8x32xf32>
    tpu.vector_store %arg11[%c5_9, %c16, %c0_10], %6 {strides = array<i32>} : memref<18x24x32xf32, #tpu.memory_space<vmem>>, vector<8x8x32xf32>,
    %c0_11 = arith.constant 0 : index
    %c0_12 = arith.constant 0 : index
    %c0_13 = arith.constant 0 : index
    %8 = vector.load %arg1[%c0_11, %c0_12, %c0_13] : memref<1x64x64xbf16, #tpu.memory_space<vmem>>, vector<1x64x64xbf16>
    %9 = vector.shape_cast %8 : vector<1x64x64xbf16> to vector<64x64xbf16>
    %c0_14 = arith.constant 0 : index
    %c0_15 = arith.constant 0 : index
    %10 = vector.load %arg2[%c0_14, %c0_15] : memref<64x32xbf16, #tpu.memory_space<vmem>>, vector<64x32xbf16>
    %cst_16 = arith.constant dense<0.000000e+00> : vector<64x32xf32>
    %11 = tpu.matmul %9, %10, %cst_16 {dimension_numbers = #tpu.dot_dimension_numbers<[1], [0], [0], [1], [0, 0, 1, 1], [], []>} : vector<64x64xbf16>, vector<64x32xbf16>, vector<64x32xf32> -> vector<64x32xf32>
    %c0_17 = arith.constant 0 : index
    %c0_18 = arith.constant 0 : index
    %12 = vector.load %arg3[%c0_17, %c0_18] : memref<1x32xf32, #tpu.memory_space<vmem>>, vector<1x32xf32>
    %13 = vector.broadcast %12 : vector<1x32xf32> to vector<64x32xf32>
    %14 = arith.addf %11, %13 : vector<64x32xf32>
    %15 = vector.shape_cast %14 : vector<64x32xf32> to vector<8x8x32xf32>
    %c5_19 = arith.constant 5 : index
    %c8 = arith.constant 8 : index
    %c0_20 = arith.constant 0 : index
    %16 = vector.load %arg11[%c5_19, %c8, %c0_20] : memref<18x24x32xf32, #tpu.memory_space<vmem>>, vector<8x8x32xf32>
    tpu.vector_store %arg11[%c5_19, %c8, %c0_20], %15 {strides = array<i32>} : memref<18x24x32xf32, #tpu.memory_space<vmem>>, vector<8x8x32xf32>,
    %c0_21 = arith.constant 0 : index
    %c0_22 = arith.constant 0 : index
    %c0_23 = arith.constant 0 : index
    %17 = vector.load %arg4[%c0_21, %c0_22, %c0_23] : memref<2x25x32xf32, #tpu.memory_space<vmem>>, vector<1x25x32xf32>
    %18 = vector.shape_cast %17 : vector<1x25x32xf32> to vector<25x32xf32>
    %cst_24 = arith.constant 0.000000e+00 : f32
    %19 = vector.broadcast %cst_24 : f32 to vector<8x8x32xf32>
    %c5_25 = arith.constant 5 : index
    %c3 = arith.constant 3 : index
    %c0_26 = arith.constant 0 : index
    %20 = vector.load %arg11[%c5_25, %c3, %c0_26] : memref<18x24x32xf32, #tpu.memory_space<vmem>>, vector<8x8x32xf32>
    %21 = vector.extract_strided_slice %18 {offsets = [0, 0], sizes = [1, 32], strides = [1, 1]} : vector<25x32xf32> to vector<1x32xf32>
    %22 = vector.shape_cast %21 : vector<1x32xf32> to vector<1x1x32xf32>
    %23 = vector.broadcast %22 : vector<1x1x32xf32> to vector<8x8x32xf32>
    %24 = arith.mulf %20, %23 : vector<8x8x32xf32>
    %25 = arith.addf %19, %24 : vector<8x8x32xf32>
    %c5_27 = arith.constant 5 : index
    %c4 = arith.constant 4 : index
    %c0_28 = arith.constant 0 : index
    %26 = vector.load %arg11[%c5_27, %c4, %c0_28] : memref<18x24x32xf32, #tpu.memory_space<vmem>>, vector<8x8x32xf32>
    %27 = vector.extract_strided_slice %18 {offsets = [1, 0], sizes = [1, 32], strides = [1, 1]} : vector<25x32xf32> to vector<1x32xf32>
    %28 = vector.shape_cast %27 : vector<1x32xf32> to vector<1x1x32xf32>
    %29 = vector.broadcast %28 : vector<1x1x32xf32> to vector<8x8x32xf32>
    %30 = arith.mulf %26, %29 : vector<8x8x32xf32>
    %31 = arith.addf %25, %30 : vector<8x8x32xf32>
    %c5_29 = arith.constant 5 : index
    %c5_30 = arith.constant 5 : index
    %c0_31 = arith.constant 0 : index
    %32 = vector.load %arg11[%c5_29, %c5_30, %c0_31] : memref<18x24x32xf32, #tpu.memory_space<vmem>>, vector<8x8x32xf32>
    %33 = vector.extract_strided_slice %18 {offsets = [2, 0], sizes = [1, 32], strides = [1, 1]} : vector<25x32xf32> to vector<1x32xf32>
    %34 = vector.shape_cast %33 : vector<1x32xf32> to vector<1x1x32xf32>
    %35 = vector.broadcast %34 : vector<1x1x32xf32> to vector<8x8x32xf32>
    %36 = arith.mulf %32, %35 : vector<8x8x32xf32>
    %37 = arith.addf %31, %36 : vector<8x8x32xf32>
    %c5_32 = arith.constant 5 : index
    %c6 = arith.constant 6 : index
    %c0_33 = arith.constant 0 : index
    %38 = vector.load %arg11[%c5_32, %c6, %c0_33] : memref<18x24x32xf32, #tpu.memory_space<vmem>>, vector<8x8x32xf32>
    %39 = vector.extract_strided_slice %18 {offsets = [3, 0], sizes = [1, 32], strides = [1, 1]} : vector<25x32xf32> to vector<1x32xf32>
    %40 = vector.shape_cast %39 : vector<1x32xf32> to vector<1x1x32xf32>
    %41 = vector.broadcast %40 : vector<1x1x32xf32> to vector<8x8x32xf32>
    %42 = arith.mulf %38, %41 : vector<8x8x32xf32>
    %43 = arith.addf %37, %42 : vector<8x8x32xf32>
    %c4_34 = arith.constant 4 : index
    %c7 = arith.constant 7 : index
    %c0_35 = arith.constant 0 : index
    %44 = vector.load %arg11[%c4_34, %c7, %c0_35] : memref<18x24x32xf32, #tpu.memory_space<vmem>>, vector<10x8x32xf32>
    %45 = vector.extract_strided_slice %44 {offsets = [0, 0, 0], sizes = [8, 8, 32], strides = [1, 1, 1]} : vector<10x8x32xf32> to vector<8x8x32xf32>
    %46 = vector.extract_strided_slice %18 {offsets = [4, 0], sizes = [1, 32], strides = [1, 1]} : vector<25x32xf32> to vector<1x32xf32>
    %47 = vector.shape_cast %46 : vector<1x32xf32> to vector<1x1x32xf32>
    %48 = vector.broadcast %47 : vector<1x1x32xf32> to vector<8x8x32xf32>
    %49 = arith.mulf %45, %48 : vector<8x8x32xf32>
    %50 = arith.addf %43, %49 : vector<8x8x32xf32>
    %51 = vector.extract_strided_slice %44 {offsets = [1, 0, 0], sizes = [8, 8, 32], strides = [1, 1, 1]} : vector<10x8x32xf32> to vector<8x8x32xf32>
    %52 = vector.extract_strided_slice %18 {offsets = [5, 0], sizes = [1, 32], strides = [1, 1]} : vector<25x32xf32> to vector<1x32xf32>
    %53 = vector.shape_cast %52 : vector<1x32xf32> to vector<1x1x32xf32>
    %54 = vector.broadcast %53 : vector<1x1x32xf32> to vector<8x8x32xf32>
    %55 = arith.mulf %51, %54 : vector<8x8x32xf32>
    %56 = arith.addf %50, %55 : vector<8x8x32xf32>
    %57 = vector.extract_strided_slice %44 {offsets = [2, 0, 0], sizes = [8, 8, 32], strides = [1, 1, 1]} : vector<10x8x32xf32> to vector<8x8x32xf32>
    %58 = vector.extract_strided_slice %18 {offsets = [6, 0], sizes = [1, 32], strides = [1, 1]} : vector<25x32xf32> to vector<1x32xf32>
    %59 = vector.shape_cast %58 : vector<1x32xf32> to vector<1x1x32xf32>
    %60 = vector.broadcast %59 : vector<1x1x32xf32> to vector<8x8x32xf32>
    %61 = arith.mulf %57, %60 : vector<8x8x32xf32>
    %62 = arith.addf %56, %61 : vector<8x8x32xf32>
    %c0_36 = arith.constant 0 : index
    %c8_37 = arith.constant 8 : index
    %c0_38 = arith.constant 0 : index
    %63 = vector.load %arg11[%c0_36, %c8_37, %c0_38] : memref<18x24x32xf32, #tpu.memory_space<vmem>>, vector<18x8x32xf32>
    %64 = vector.extract_strided_slice %63 {offsets = [0, 0, 0], sizes = [8, 8, 32], strides = [1, 1, 1]} : vector<18x8x32xf32> to vector<8x8x32xf32>
    %65 = vector.extract_strided_slice %18 {offsets = [7, 0], sizes = [1, 32], strides = [1, 1]} : vector<25x32xf32> to vector<1x32xf32>
    %66 = vector.shape_cast %65 : vector<1x32xf32> to vector<1x1x32xf32>
    %67 = vector.broadcast %66 : vector<1x1x32xf32> to vector<8x8x32xf32>
    %68 = arith.mulf %64, %67 : vector<8x8x32xf32>
    %69 = arith.addf %62, %68 : vector<8x8x32xf32>
    %70 = vector.extract_strided_slice %63 {offsets = [1, 0, 0], sizes = [8, 8, 32], strides = [1, 1, 1]} : vector<18x8x32xf32> to vector<8x8x32xf32>
    %71 = vector.extract_strided_slice %18 {offsets = [8, 0], sizes = [1, 32], strides = [1, 1]} : vector<25x32xf32> to vector<1x32xf32>
    %72 = vector.shape_cast %71 : vector<1x32xf32> to vector<1x1x32xf32>
    %73 = vector.broadcast %72 : vector<1x1x32xf32> to vector<8x8x32xf32>
    %74 = arith.mulf %70, %73 : vector<8x8x32xf32>
    %75 = arith.addf %69, %74 : vector<8x8x32xf32>
    %76 = vector.extract_strided_slice %63 {offsets = [2, 0, 0], sizes = [8, 8, 32], strides = [1, 1, 1]} : vector<18x8x32xf32> to vector<8x8x32xf32>
    %77 = vector.extract_strided_slice %18 {offsets = [9, 0], sizes = [1, 32], strides = [1, 1]} : vector<25x32xf32> to vector<1x32xf32>
    %78 = vector.shape_cast %77 : vector<1x32xf32> to vector<1x1x32xf32>
    %79 = vector.broadcast %78 : vector<1x1x32xf32> to vector<8x8x32xf32>
    %80 = arith.mulf %76, %79 : vector<8x8x32xf32>
    %81 = arith.addf %75, %80 : vector<8x8x32xf32>
    %82 = vector.extract_strided_slice %63 {offsets = [3, 0, 0], sizes = [8, 8, 32], strides = [1, 1, 1]} : vector<18x8x32xf32> to vector<8x8x32xf32>
    %83 = vector.extract_strided_slice %18 {offsets = [10, 0], sizes = [1, 32], strides = [1, 1]} : vector<25x32xf32> to vector<1x32xf32>
    %84 = vector.shape_cast %83 : vector<1x32xf32> to vector<1x1x32xf32>
    %85 = vector.broadcast %84 : vector<1x1x32xf32> to vector<8x8x32xf32>
    %86 = arith.mulf %82, %85 : vector<8x8x32xf32>
    %87 = arith.addf %81, %86 : vector<8x8x32xf32>
    %88 = vector.extract_strided_slice %63 {offsets = [4, 0, 0], sizes = [8, 8, 32], strides = [1, 1, 1]} : vector<18x8x32xf32> to vector<8x8x32xf32>
    %89 = vector.extract_strided_slice %18 {offsets = [11, 0], sizes = [1, 32], strides = [1, 1]} : vector<25x32xf32> to vector<1x32xf32>
    %90 = vector.shape_cast %89 : vector<1x32xf32> to vector<1x1x32xf32>
    %91 = vector.broadcast %90 : vector<1x1x32xf32> to vector<8x8x32xf32>
    %92 = arith.mulf %88, %91 : vector<8x8x32xf32>
    %93 = arith.addf %87, %92 : vector<8x8x32xf32>
    %94 = vector.extract_strided_slice %63 {offsets = [5, 0, 0], sizes = [8, 8, 32], strides = [1, 1, 1]} : vector<18x8x32xf32> to vector<8x8x32xf32>
    %95 = vector.extract_strided_slice %18 {offsets = [12, 0], sizes = [1, 32], strides = [1, 1]} : vector<25x32xf32> to vector<1x32xf32>
    %96 = vector.shape_cast %95 : vector<1x32xf32> to vector<1x1x32xf32>
    %97 = vector.broadcast %96 : vector<1x1x32xf32> to vector<8x8x32xf32>
    %98 = arith.mulf %94, %97 : vector<8x8x32xf32>
    %99 = arith.addf %93, %98 : vector<8x8x32xf32>
    %100 = vector.extract_strided_slice %63 {offsets = [6, 0, 0], sizes = [8, 8, 32], strides = [1, 1, 1]} : vector<18x8x32xf32> to vector<8x8x32xf32>
    %101 = vector.extract_strided_slice %18 {offsets = [13, 0], sizes = [1, 32], strides = [1, 1]} : vector<25x32xf32> to vector<1x32xf32>
    %102 = vector.shape_cast %101 : vector<1x32xf32> to vector<1x1x32xf32>
    %103 = vector.broadcast %102 : vector<1x1x32xf32> to vector<8x8x32xf32>
    %104 = arith.mulf %100, %103 : vector<8x8x32xf32>
    %105 = arith.addf %99, %104 : vector<8x8x32xf32>
    %106 = vector.extract_strided_slice %63 {offsets = [7, 0, 0], sizes = [8, 8, 32], strides = [1, 1, 1]} : vector<18x8x32xf32> to vector<8x8x32xf32>
    %107 = vector.extract_strided_slice %18 {offsets = [14, 0], sizes = [1, 32], strides = [1, 1]} : vector<25x32xf32> to vector<1x32xf32>
    %108 = vector.shape_cast %107 : vector<1x32xf32> to vector<1x1x32xf32>
    %109 = vector.broadcast %108 : vector<1x1x32xf32> to vector<8x8x32xf32>
    %110 = arith.mulf %106, %109 : vector<8x8x32xf32>
    %111 = arith.addf %105, %110 : vector<8x8x32xf32>
    %112 = vector.extract_strided_slice %63 {offsets = [8, 0, 0], sizes = [8, 8, 32], strides = [1, 1, 1]} : vector<18x8x32xf32> to vector<8x8x32xf32>
    %113 = vector.extract_strided_slice %18 {offsets = [15, 0], sizes = [1, 32], strides = [1, 1]} : vector<25x32xf32> to vector<1x32xf32>
    %114 = vector.shape_cast %113 : vector<1x32xf32> to vector<1x1x32xf32>
    %115 = vector.broadcast %114 : vector<1x1x32xf32> to vector<8x8x32xf32>
    %116 = arith.mulf %112, %115 : vector<8x8x32xf32>
    %117 = arith.addf %111, %116 : vector<8x8x32xf32>
    %118 = vector.extract_strided_slice %63 {offsets = [9, 0, 0], sizes = [8, 8, 32], strides = [1, 1, 1]} : vector<18x8x32xf32> to vector<8x8x32xf32>
    %119 = vector.extract_strided_slice %18 {offsets = [16, 0], sizes = [1, 32], strides = [1, 1]} : vector<25x32xf32> to vector<1x32xf32>
    %120 = vector.shape_cast %119 : vector<1x32xf32> to vector<1x1x32xf32>
    %121 = vector.broadcast %120 : vector<1x1x32xf32> to vector<8x8x32xf32>
    %122 = arith.mulf %118, %121 : vector<8x8x32xf32>
    %123 = arith.addf %117, %122 : vector<8x8x32xf32>
    %124 = vector.extract_strided_slice %63 {offsets = [10, 0, 0], sizes = [8, 8, 32], strides = [1, 1, 1]} : vector<18x8x32xf32> to vector<8x8x32xf32>
    %125 = vector.extract_strided_slice %18 {offsets = [17, 0], sizes = [1, 32], strides = [1, 1]} : vector<25x32xf32> to vector<1x32xf32>
    %126 = vector.shape_cast %125 : vector<1x32xf32> to vector<1x1x32xf32>
    %127 = vector.broadcast %126 : vector<1x1x32xf32> to vector<8x8x32xf32>
    %128 = arith.mulf %124, %127 : vector<8x8x32xf32>
    %129 = arith.addf %123, %128 : vector<8x8x32xf32>
    %c4_39 = arith.constant 4 : index
    %c9 = arith.constant 9 : index
    %c0_40 = arith.constant 0 : index
    %130 = vector.load %arg11[%c4_39, %c9, %c0_40] : memref<18x24x32xf32, #tpu.memory_space<vmem>>, vector<10x8x32xf32>
    %131 = vector.extract_strided_slice %130 {offsets = [0, 0, 0], sizes = [8, 8, 32], strides = [1, 1, 1]} : vector<10x8x32xf32> to vector<8x8x32xf32>
    %132 = vector.extract_strided_slice %18 {offsets = [18, 0], sizes = [1, 32], strides = [1, 1]} : vector<25x32xf32> to vector<1x32xf32>
    %133 = vector.shape_cast %132 : vector<1x32xf32> to vector<1x1x32xf32>
    %134 = vector.broadcast %133 : vector<1x1x32xf32> to vector<8x8x32xf32>
    %135 = arith.mulf %131, %134 : vector<8x8x32xf32>
    %136 = arith.addf %129, %135 : vector<8x8x32xf32>
    %137 = vector.extract_strided_slice %130 {offsets = [1, 0, 0], sizes = [8, 8, 32], strides = [1, 1, 1]} : vector<10x8x32xf32> to vector<8x8x32xf32>
    %138 = vector.extract_strided_slice %18 {offsets = [19, 0], sizes = [1, 32], strides = [1, 1]} : vector<25x32xf32> to vector<1x32xf32>
    %139 = vector.shape_cast %138 : vector<1x32xf32> to vector<1x1x32xf32>
    %140 = vector.broadcast %139 : vector<1x1x32xf32> to vector<8x8x32xf32>
    %141 = arith.mulf %137, %140 : vector<8x8x32xf32>
    %142 = arith.addf %136, %141 : vector<8x8x32xf32>
    %143 = vector.extract_strided_slice %130 {offsets = [2, 0, 0], sizes = [8, 8, 32], strides = [1, 1, 1]} : vector<10x8x32xf32> to vector<8x8x32xf32>
    %144 = vector.extract_strided_slice %18 {offsets = [20, 0], sizes = [1, 32], strides = [1, 1]} : vector<25x32xf32> to vector<1x32xf32>
    %145 = vector.shape_cast %144 : vector<1x32xf32> to vector<1x1x32xf32>
    %146 = vector.broadcast %145 : vector<1x1x32xf32> to vector<8x8x32xf32>
    %147 = arith.mulf %143, %146 : vector<8x8x32xf32>
    %148 = arith.addf %142, %147 : vector<8x8x32xf32>
    %c5_41 = arith.constant 5 : index
    %c10 = arith.constant 10 : index
    %c0_42 = arith.constant 0 : index
    %149 = vector.load %arg11[%c5_41, %c10, %c0_42] : memref<18x24x32xf32, #tpu.memory_space<vmem>>, vector<8x8x32xf32>
    %150 = vector.extract_strided_slice %18 {offsets = [21, 0], sizes = [1, 32], strides = [1, 1]} : vector<25x32xf32> to vector<1x32xf32>
    %151 = vector.shape_cast %150 : vector<1x32xf32> to vector<1x1x32xf32>
    %152 = vector.broadcast %151 : vector<1x1x32xf32> to vector<8x8x32xf32>
    %153 = arith.mulf %149, %152 : vector<8x8x32xf32>
    %154 = arith.addf %148, %153 : vector<8x8x32xf32>
    %c5_43 = arith.constant 5 : index
    %c11 = arith.constant 11 : index
    %c0_44 = arith.constant 0 : index
    %155 = vector.load %arg11[%c5_43, %c11, %c0_44] : memref<18x24x32xf32, #tpu.memory_space<vmem>>, vector<8x8x32xf32>
    %156 = vector.extract_strided_slice %18 {offsets = [22, 0], sizes = [1, 32], strides = [1, 1]} : vector<25x32xf32> to vector<1x32xf32>
    %157 = vector.shape_cast %156 : vector<1x32xf32> to vector<1x1x32xf32>
    %158 = vector.broadcast %157 : vector<1x1x32xf32> to vector<8x8x32xf32>
    %159 = arith.mulf %155, %158 : vector<8x8x32xf32>
    %160 = arith.addf %154, %159 : vector<8x8x32xf32>
    %c5_45 = arith.constant 5 : index
    %c12 = arith.constant 12 : index
    %c0_46 = arith.constant 0 : index
    %161 = vector.load %arg11[%c5_45, %c12, %c0_46] : memref<18x24x32xf32, #tpu.memory_space<vmem>>, vector<8x8x32xf32>
    %162 = vector.extract_strided_slice %18 {offsets = [23, 0], sizes = [1, 32], strides = [1, 1]} : vector<25x32xf32> to vector<1x32xf32>
    %163 = vector.shape_cast %162 : vector<1x32xf32> to vector<1x1x32xf32>
    %164 = vector.broadcast %163 : vector<1x1x32xf32> to vector<8x8x32xf32>
    %165 = arith.mulf %161, %164 : vector<8x8x32xf32>
    %166 = arith.addf %160, %165 : vector<8x8x32xf32>
    %c5_47 = arith.constant 5 : index
    %c13_48 = arith.constant 13 : index
    %c0_49 = arith.constant 0 : index
    %167 = vector.load %arg11[%c5_47, %c13_48, %c0_49] : memref<18x24x32xf32, #tpu.memory_space<vmem>>, vector<8x8x32xf32>
    %168 = vector.extract_strided_slice %18 {offsets = [24, 0], sizes = [1, 32], strides = [1, 1]} : vector<25x32xf32> to vector<1x32xf32>
    %169 = vector.shape_cast %168 : vector<1x32xf32> to vector<1x1x32xf32>
    %170 = vector.broadcast %169 : vector<1x1x32xf32> to vector<8x8x32xf32>
    %171 = arith.mulf %167, %170 : vector<8x8x32xf32>
    %172 = arith.addf %166, %171 : vector<8x8x32xf32>
    %173 = vector.shape_cast %172 : vector<8x8x32xf32> to vector<64x32xf32>
    %c0_50 = arith.constant 0 : index
    %c0_51 = arith.constant 0 : index
    %c0_52 = arith.constant 0 : index
    %174 = vector.load %arg5[%c0_50, %c0_51, %c0_52] : memref<2x1x32xf32, #tpu.memory_space<vmem>>, vector<1x1x32xf32>
    %175 = vector.shape_cast %174 : vector<1x1x32xf32> to vector<1x32xf32>
    %176 = vector.broadcast %175 : vector<1x32xf32> to vector<64x32xf32>
    %177 = arith.addf %173, %176 : vector<64x32xf32>
    %178 = arith.truncf %177 : vector<64x32xf32> to vector<64x32xbf16>
    %c0_53 = arith.constant 0 : index
    %c0_54 = arith.constant 0 : index
    %c0_55 = arith.constant 0 : index
    %179 = vector.load %arg6[%c0_53, %c0_54, %c0_55] : memref<2x32x128xbf16, #tpu.memory_space<vmem>>, vector<1x32x128xbf16>
    %180 = vector.shape_cast %179 : vector<1x32x128xbf16> to vector<32x128xbf16>
    %cst_56 = arith.constant dense<0.000000e+00> : vector<64x128xf32>
    %181 = tpu.matmul %178, %180, %cst_56 {dimension_numbers = #tpu.dot_dimension_numbers<[1], [0], [0], [1], [0, 0, 1, 1], [], []>} : vector<64x32xbf16>, vector<32x128xbf16>, vector<64x128xf32> -> vector<64x128xf32>
    %c0_57 = arith.constant 0 : index
    %c0_58 = arith.constant 0 : index
    %c0_59 = arith.constant 0 : index
    %182 = vector.load %arg7[%c0_57, %c0_58, %c0_59] : memref<2x1x128xf32, #tpu.memory_space<vmem>>, vector<1x1x128xf32>
    %183 = vector.shape_cast %182 : vector<1x1x128xf32> to vector<1x128xf32>
    %184 = vector.broadcast %183 : vector<1x128xf32> to vector<64x128xf32>
    %185 = arith.addf %181, %184 : vector<64x128xf32>
    %cst_60 = arith.constant 5.000000e-01 : f32
    %186 = vector.broadcast %cst_60 : f32 to vector<64x128xf32>
    %187 = arith.mulf %186, %185 : vector<64x128xf32>
    %cst_61 = arith.constant 4.471500e-02 : f32
    %188 = vector.broadcast %cst_61 : f32 to vector<64x128xf32>
    %189 = arith.mulf %188, %185 : vector<64x128xf32>
    %190 = arith.mulf %189, %185 : vector<64x128xf32>
    %191 = arith.mulf %190, %185 : vector<64x128xf32>
    %192 = arith.addf %185, %191 : vector<64x128xf32>
    %cst_62 = arith.constant 0.797884583 : f32
    %193 = vector.broadcast %cst_62 : f32 to vector<64x128xf32>
    %194 = arith.mulf %193, %192 : vector<64x128xf32>
    %195 = math.tanh %194 : vector<64x128xf32>
    %cst_63 = arith.constant 1.000000e+00 : f32
    %196 = vector.broadcast %cst_63 : f32 to vector<64x128xf32>
    %197 = arith.addf %196, %195 : vector<64x128xf32>
    %198 = arith.mulf %187, %197 : vector<64x128xf32>
    %199 = arith.truncf %198 : vector<64x128xf32> to vector<64x128xbf16>
    %c0_64 = arith.constant 0 : index
    %c0_65 = arith.constant 0 : index
    %c0_66 = arith.constant 0 : index
    %200 = vector.load %arg8[%c0_64, %c0_65, %c0_66] : memref<2x128x32xbf16, #tpu.memory_space<vmem>>, vector<1x128x32xbf16>
    %201 = vector.shape_cast %200 : vector<1x128x32xbf16> to vector<128x32xbf16>
    %cst_67 = arith.constant dense<0.000000e+00> : vector<64x32xf32>
    %202 = tpu.matmul %199, %201, %cst_67 {dimension_numbers = #tpu.dot_dimension_numbers<[1], [0], [0], [1], [0, 0, 1, 1], [], []>} : vector<64x128xbf16>, vector<128x32xbf16>, vector<64x32xf32> -> vector<64x32xf32>
    %c0_68 = arith.constant 0 : index
    %c0_69 = arith.constant 0 : index
    %c0_70 = arith.constant 0 : index
    %203 = vector.load %arg9[%c0_68, %c0_69, %c0_70] : memref<2x1x32xf32, #tpu.memory_space<vmem>>, vector<1x1x32xf32>
    %204 = vector.shape_cast %203 : vector<1x1x32xf32> to vector<1x32xf32>
    %205 = vector.broadcast %204 : vector<1x32xf32> to vector<64x32xf32>
    %206 = arith.addf %202, %205 : vector<64x32xf32>
    %207 = arith.addf %14, %206 : vector<64x32xf32>
    %208 = vector.shape_cast %207 : vector<64x32xf32> to vector<8x8x32xf32>
    %c5_71 = arith.constant 5 : index
    %c8_72 = arith.constant 8 : index
    %c0_73 = arith.constant 0 : index
    %209 = vector.load %arg11[%c5_71, %c8_72, %c0_73] : memref<18x24x32xf32, #tpu.memory_space<vmem>>, vector<8x8x32xf32>
    tpu.vector_store %arg11[%c5_71, %c8_72, %c0_73], %208 {strides = array<i32>} : memref<18x24x32xf32, #tpu.memory_space<vmem>>, vector<8x8x32xf32>,
    %c1 = arith.constant 1 : index
    %c0_74 = arith.constant 0 : index
    %c0_75 = arith.constant 0 : index
    %210 = vector.load %arg4[%c1, %c0_74, %c0_75] : memref<2x25x32xf32, #tpu.memory_space<vmem>>, vector<1x25x32xf32>
    %211 = vector.shape_cast %210 : vector<1x25x32xf32> to vector<25x32xf32>
    %cst_76 = arith.constant 0.000000e+00 : f32
    %212 = vector.broadcast %cst_76 : f32 to vector<8x8x32xf32>
    %c5_77 = arith.constant 5 : index
    %c3_78 = arith.constant 3 : index
    %c0_79 = arith.constant 0 : index
    %213 = vector.load %arg11[%c5_77, %c3_78, %c0_79] : memref<18x24x32xf32, #tpu.memory_space<vmem>>, vector<8x8x32xf32>
    %214 = vector.extract_strided_slice %211 {offsets = [0, 0], sizes = [1, 32], strides = [1, 1]} : vector<25x32xf32> to vector<1x32xf32>
    %215 = vector.shape_cast %214 : vector<1x32xf32> to vector<1x1x32xf32>
    %216 = vector.broadcast %215 : vector<1x1x32xf32> to vector<8x8x32xf32>
    %217 = arith.mulf %213, %216 : vector<8x8x32xf32>
    %218 = arith.addf %212, %217 : vector<8x8x32xf32>
    %c5_80 = arith.constant 5 : index
    %c4_81 = arith.constant 4 : index
    %c0_82 = arith.constant 0 : index
    %219 = vector.load %arg11[%c5_80, %c4_81, %c0_82] : memref<18x24x32xf32, #tpu.memory_space<vmem>>, vector<8x8x32xf32>
    %220 = vector.extract_strided_slice %211 {offsets = [1, 0], sizes = [1, 32], strides = [1, 1]} : vector<25x32xf32> to vector<1x32xf32>
    %221 = vector.shape_cast %220 : vector<1x32xf32> to vector<1x1x32xf32>
    %222 = vector.broadcast %221 : vector<1x1x32xf32> to vector<8x8x32xf32>
    %223 = arith.mulf %219, %222 : vector<8x8x32xf32>
    %224 = arith.addf %218, %223 : vector<8x8x32xf32>
    %c5_83 = arith.constant 5 : index
    %c5_84 = arith.constant 5 : index
    %c0_85 = arith.constant 0 : index
    %225 = vector.load %arg11[%c5_83, %c5_84, %c0_85] : memref<18x24x32xf32, #tpu.memory_space<vmem>>, vector<8x8x32xf32>
    %226 = vector.extract_strided_slice %211 {offsets = [2, 0], sizes = [1, 32], strides = [1, 1]} : vector<25x32xf32> to vector<1x32xf32>
    %227 = vector.shape_cast %226 : vector<1x32xf32> to vector<1x1x32xf32>
    %228 = vector.broadcast %227 : vector<1x1x32xf32> to vector<8x8x32xf32>
    %229 = arith.mulf %225, %228 : vector<8x8x32xf32>
    %230 = arith.addf %224, %229 : vector<8x8x32xf32>
    %c5_86 = arith.constant 5 : index
    %c6_87 = arith.constant 6 : index
    %c0_88 = arith.constant 0 : index
    %231 = vector.load %arg11[%c5_86, %c6_87, %c0_88] : memref<18x24x32xf32, #tpu.memory_space<vmem>>, vector<8x8x32xf32>
    %232 = vector.extract_strided_slice %211 {offsets = [3, 0], sizes = [1, 32], strides = [1, 1]} : vector<25x32xf32> to vector<1x32xf32>
    %233 = vector.shape_cast %232 : vector<1x32xf32> to vector<1x1x32xf32>
    %234 = vector.broadcast %233 : vector<1x1x32xf32> to vector<8x8x32xf32>
    %235 = arith.mulf %231, %234 : vector<8x8x32xf32>
    %236 = arith.addf %230, %235 : vector<8x8x32xf32>
    %c4_89 = arith.constant 4 : index
    %c7_90 = arith.constant 7 : index
    %c0_91 = arith.constant 0 : index
    %237 = vector.load %arg11[%c4_89, %c7_90, %c0_91] : memref<18x24x32xf32, #tpu.memory_space<vmem>>, vector<10x8x32xf32>
    %238 = vector.extract_strided_slice %237 {offsets = [0, 0, 0], sizes = [8, 8, 32], strides = [1, 1, 1]} : vector<10x8x32xf32> to vector<8x8x32xf32>
    %239 = vector.extract_strided_slice %211 {offsets = [4, 0], sizes = [1, 32], strides = [1, 1]} : vector<25x32xf32> to vector<1x32xf32>
    %240 = vector.shape_cast %239 : vector<1x32xf32> to vector<1x1x32xf32>
    %241 = vector.broadcast %240 : vector<1x1x32xf32> to vector<8x8x32xf32>
    %242 = arith.mulf %238, %241 : vector<8x8x32xf32>
    %243 = arith.addf %236, %242 : vector<8x8x32xf32>
    %244 = vector.extract_strided_slice %237 {offsets = [1, 0, 0], sizes = [8, 8, 32], strides = [1, 1, 1]} : vector<10x8x32xf32> to vector<8x8x32xf32>
    %245 = vector.extract_strided_slice %211 {offsets = [5, 0], sizes = [1, 32], strides = [1, 1]} : vector<25x32xf32> to vector<1x32xf32>
    %246 = vector.shape_cast %245 : vector<1x32xf32> to vector<1x1x32xf32>
    %247 = vector.broadcast %246 : vector<1x1x32xf32> to vector<8x8x32xf32>
    %248 = arith.mulf %244, %247 : vector<8x8x32xf32>
    %249 = arith.addf %243, %248 : vector<8x8x32xf32>
    %250 = vector.extract_strided_slice %237 {offsets = [2, 0, 0], sizes = [8, 8, 32], strides = [1, 1, 1]} : vector<10x8x32xf32> to vector<8x8x32xf32>
    %251 = vector.extract_strided_slice %211 {offsets = [6, 0], sizes = [1, 32], strides = [1, 1]} : vector<25x32xf32> to vector<1x32xf32>
    %252 = vector.shape_cast %251 : vector<1x32xf32> to vector<1x1x32xf32>
    %253 = vector.broadcast %252 : vector<1x1x32xf32> to vector<8x8x32xf32>
    %254 = arith.mulf %250, %253 : vector<8x8x32xf32>
    %255 = arith.addf %249, %254 : vector<8x8x32xf32>
    %c0_92 = arith.constant 0 : index
    %c8_93 = arith.constant 8 : index
    %c0_94 = arith.constant 0 : index
    %256 = vector.load %arg11[%c0_92, %c8_93, %c0_94] : memref<18x24x32xf32, #tpu.memory_space<vmem>>, vector<18x8x32xf32>
    %257 = vector.extract_strided_slice %256 {offsets = [0, 0, 0], sizes = [8, 8, 32], strides = [1, 1, 1]} : vector<18x8x32xf32> to vector<8x8x32xf32>
    %258 = vector.extract_strided_slice %211 {offsets = [7, 0], sizes = [1, 32], strides = [1, 1]} : vector<25x32xf32> to vector<1x32xf32>
    %259 = vector.shape_cast %258 : vector<1x32xf32> to vector<1x1x32xf32>
    %260 = vector.broadcast %259 : vector<1x1x32xf32> to vector<8x8x32xf32>
    %261 = arith.mulf %257, %260 : vector<8x8x32xf32>
    %262 = arith.addf %255, %261 : vector<8x8x32xf32>
    %263 = vector.extract_strided_slice %256 {offsets = [1, 0, 0], sizes = [8, 8, 32], strides = [1, 1, 1]} : vector<18x8x32xf32> to vector<8x8x32xf32>
    %264 = vector.extract_strided_slice %211 {offsets = [8, 0], sizes = [1, 32], strides = [1, 1]} : vector<25x32xf32> to vector<1x32xf32>
    %265 = vector.shape_cast %264 : vector<1x32xf32> to vector<1x1x32xf32>
    %266 = vector.broadcast %265 : vector<1x1x32xf32> to vector<8x8x32xf32>
    %267 = arith.mulf %263, %266 : vector<8x8x32xf32>
    %268 = arith.addf %262, %267 : vector<8x8x32xf32>
    %269 = vector.extract_strided_slice %256 {offsets = [2, 0, 0], sizes = [8, 8, 32], strides = [1, 1, 1]} : vector<18x8x32xf32> to vector<8x8x32xf32>
    %270 = vector.extract_strided_slice %211 {offsets = [9, 0], sizes = [1, 32], strides = [1, 1]} : vector<25x32xf32> to vector<1x32xf32>
    %271 = vector.shape_cast %270 : vector<1x32xf32> to vector<1x1x32xf32>
    %272 = vector.broadcast %271 : vector<1x1x32xf32> to vector<8x8x32xf32>
    %273 = arith.mulf %269, %272 : vector<8x8x32xf32>
    %274 = arith.addf %268, %273 : vector<8x8x32xf32>
    %275 = vector.extract_strided_slice %256 {offsets = [3, 0, 0], sizes = [8, 8, 32], strides = [1, 1, 1]} : vector<18x8x32xf32> to vector<8x8x32xf32>
    %276 = vector.extract_strided_slice %211 {offsets = [10, 0], sizes = [1, 32], strides = [1, 1]} : vector<25x32xf32> to vector<1x32xf32>
    %277 = vector.shape_cast %276 : vector<1x32xf32> to vector<1x1x32xf32>
    %278 = vector.broadcast %277 : vector<1x1x32xf32> to vector<8x8x32xf32>
    %279 = arith.mulf %275, %278 : vector<8x8x32xf32>
    %280 = arith.addf %274, %279 : vector<8x8x32xf32>
    %281 = vector.extract_strided_slice %256 {offsets = [4, 0, 0], sizes = [8, 8, 32], strides = [1, 1, 1]} : vector<18x8x32xf32> to vector<8x8x32xf32>
    %282 = vector.extract_strided_slice %211 {offsets = [11, 0], sizes = [1, 32], strides = [1, 1]} : vector<25x32xf32> to vector<1x32xf32>
    %283 = vector.shape_cast %282 : vector<1x32xf32> to vector<1x1x32xf32>
    %284 = vector.broadcast %283 : vector<1x1x32xf32> to vector<8x8x32xf32>
    %285 = arith.mulf %281, %284 : vector<8x8x32xf32>
    %286 = arith.addf %280, %285 : vector<8x8x32xf32>
    %287 = vector.extract_strided_slice %256 {offsets = [5, 0, 0], sizes = [8, 8, 32], strides = [1, 1, 1]} : vector<18x8x32xf32> to vector<8x8x32xf32>
    %288 = vector.extract_strided_slice %211 {offsets = [12, 0], sizes = [1, 32], strides = [1, 1]} : vector<25x32xf32> to vector<1x32xf32>
    %289 = vector.shape_cast %288 : vector<1x32xf32> to vector<1x1x32xf32>
    %290 = vector.broadcast %289 : vector<1x1x32xf32> to vector<8x8x32xf32>
    %291 = arith.mulf %287, %290 : vector<8x8x32xf32>
    %292 = arith.addf %286, %291 : vector<8x8x32xf32>
    %293 = vector.extract_strided_slice %256 {offsets = [6, 0, 0], sizes = [8, 8, 32], strides = [1, 1, 1]} : vector<18x8x32xf32> to vector<8x8x32xf32>
    %294 = vector.extract_strided_slice %211 {offsets = [13, 0], sizes = [1, 32], strides = [1, 1]} : vector<25x32xf32> to vector<1x32xf32>
    %295 = vector.shape_cast %294 : vector<1x32xf32> to vector<1x1x32xf32>
    %296 = vector.broadcast %295 : vector<1x1x32xf32> to vector<8x8x32xf32>
    %297 = arith.mulf %293, %296 : vector<8x8x32xf32>
    %298 = arith.addf %292, %297 : vector<8x8x32xf32>
    %299 = vector.extract_strided_slice %256 {offsets = [7, 0, 0], sizes = [8, 8, 32], strides = [1, 1, 1]} : vector<18x8x32xf32> to vector<8x8x32xf32>
    %300 = vector.extract_strided_slice %211 {offsets = [14, 0], sizes = [1, 32], strides = [1, 1]} : vector<25x32xf32> to vector<1x32xf32>
    %301 = vector.shape_cast %300 : vector<1x32xf32> to vector<1x1x32xf32>
    %302 = vector.broadcast %301 : vector<1x1x32xf32> to vector<8x8x32xf32>
    %303 = arith.mulf %299, %302 : vector<8x8x32xf32>
    %304 = arith.addf %298, %303 : vector<8x8x32xf32>
    %305 = vector.extract_strided_slice %256 {offsets = [8, 0, 0], sizes = [8, 8, 32], strides = [1, 1, 1]} : vector<18x8x32xf32> to vector<8x8x32xf32>
    %306 = vector.extract_strided_slice %211 {offsets = [15, 0], sizes = [1, 32], strides = [1, 1]} : vector<25x32xf32> to vector<1x32xf32>
    %307 = vector.shape_cast %306 : vector<1x32xf32> to vector<1x1x32xf32>
    %308 = vector.broadcast %307 : vector<1x1x32xf32> to vector<8x8x32xf32>
    %309 = arith.mulf %305, %308 : vector<8x8x32xf32>
    %310 = arith.addf %304, %309 : vector<8x8x32xf32>
    %311 = vector.extract_strided_slice %256 {offsets = [9, 0, 0], sizes = [8, 8, 32], strides = [1, 1, 1]} : vector<18x8x32xf32> to vector<8x8x32xf32>
    %312 = vector.extract_strided_slice %211 {offsets = [16, 0], sizes = [1, 32], strides = [1, 1]} : vector<25x32xf32> to vector<1x32xf32>
    %313 = vector.shape_cast %312 : vector<1x32xf32> to vector<1x1x32xf32>
    %314 = vector.broadcast %313 : vector<1x1x32xf32> to vector<8x8x32xf32>
    %315 = arith.mulf %311, %314 : vector<8x8x32xf32>
    %316 = arith.addf %310, %315 : vector<8x8x32xf32>
    %317 = vector.extract_strided_slice %256 {offsets = [10, 0, 0], sizes = [8, 8, 32], strides = [1, 1, 1]} : vector<18x8x32xf32> to vector<8x8x32xf32>
    %318 = vector.extract_strided_slice %211 {offsets = [17, 0], sizes = [1, 32], strides = [1, 1]} : vector<25x32xf32> to vector<1x32xf32>
    %319 = vector.shape_cast %318 : vector<1x32xf32> to vector<1x1x32xf32>
    %320 = vector.broadcast %319 : vector<1x1x32xf32> to vector<8x8x32xf32>
    %321 = arith.mulf %317, %320 : vector<8x8x32xf32>
    %322 = arith.addf %316, %321 : vector<8x8x32xf32>
    %c4_95 = arith.constant 4 : index
    %c9_96 = arith.constant 9 : index
    %c0_97 = arith.constant 0 : index
    %323 = vector.load %arg11[%c4_95, %c9_96, %c0_97] : memref<18x24x32xf32, #tpu.memory_space<vmem>>, vector<10x8x32xf32>
    %324 = vector.extract_strided_slice %323 {offsets = [0, 0, 0], sizes = [8, 8, 32], strides = [1, 1, 1]} : vector<10x8x32xf32> to vector<8x8x32xf32>
    %325 = vector.extract_strided_slice %211 {offsets = [18, 0], sizes = [1, 32], strides = [1, 1]} : vector<25x32xf32> to vector<1x32xf32>
    %326 = vector.shape_cast %325 : vector<1x32xf32> to vector<1x1x32xf32>
    %327 = vector.broadcast %326 : vector<1x1x32xf32> to vector<8x8x32xf32>
    %328 = arith.mulf %324, %327 : vector<8x8x32xf32>
    %329 = arith.addf %322, %328 : vector<8x8x32xf32>
    %330 = vector.extract_strided_slice %323 {offsets = [1, 0, 0], sizes = [8, 8, 32], strides = [1, 1, 1]} : vector<10x8x32xf32> to vector<8x8x32xf32>
    %331 = vector.extract_strided_slice %211 {offsets = [19, 0], sizes = [1, 32], strides = [1, 1]} : vector<25x32xf32> to vector<1x32xf32>
    %332 = vector.shape_cast %331 : vector<1x32xf32> to vector<1x1x32xf32>
    %333 = vector.broadcast %332 : vector<1x1x32xf32> to vector<8x8x32xf32>
    %334 = arith.mulf %330, %333 : vector<8x8x32xf32>
    %335 = arith.addf %329, %334 : vector<8x8x32xf32>
    %336 = vector.extract_strided_slice %323 {offsets = [2, 0, 0], sizes = [8, 8, 32], strides = [1, 1, 1]} : vector<10x8x32xf32> to vector<8x8x32xf32>
    %337 = vector.extract_strided_slice %211 {offsets = [20, 0], sizes = [1, 32], strides = [1, 1]} : vector<25x32xf32> to vector<1x32xf32>
    %338 = vector.shape_cast %337 : vector<1x32xf32> to vector<1x1x32xf32>
    %339 = vector.broadcast %338 : vector<1x1x32xf32> to vector<8x8x32xf32>
    %340 = arith.mulf %336, %339 : vector<8x8x32xf32>
    %341 = arith.addf %335, %340 : vector<8x8x32xf32>
    %c5_98 = arith.constant 5 : index
    %c10_99 = arith.constant 10 : index
    %c0_100 = arith.constant 0 : index
    %342 = vector.load %arg11[%c5_98, %c10_99, %c0_100] : memref<18x24x32xf32, #tpu.memory_space<vmem>>, vector<8x8x32xf32>
    %343 = vector.extract_strided_slice %211 {offsets = [21, 0], sizes = [1, 32], strides = [1, 1]} : vector<25x32xf32> to vector<1x32xf32>
    %344 = vector.shape_cast %343 : vector<1x32xf32> to vector<1x1x32xf32>
    %345 = vector.broadcast %344 : vector<1x1x32xf32> to vector<8x8x32xf32>
    %346 = arith.mulf %342, %345 : vector<8x8x32xf32>
    %347 = arith.addf %341, %346 : vector<8x8x32xf32>
    %c5_101 = arith.constant 5 : index
    %c11_102 = arith.constant 11 : index
    %c0_103 = arith.constant 0 : index
    %348 = vector.load %arg11[%c5_101, %c11_102, %c0_103] : memref<18x24x32xf32, #tpu.memory_space<vmem>>, vector<8x8x32xf32>
    %349 = vector.extract_strided_slice %211 {offsets = [22, 0], sizes = [1, 32], strides = [1, 1]} : vector<25x32xf32> to vector<1x32xf32>
    %350 = vector.shape_cast %349 : vector<1x32xf32> to vector<1x1x32xf32>
    %351 = vector.broadcast %350 : vector<1x1x32xf32> to vector<8x8x32xf32>
    %352 = arith.mulf %348, %351 : vector<8x8x32xf32>
    %353 = arith.addf %347, %352 : vector<8x8x32xf32>
    %c5_104 = arith.constant 5 : index
    %c12_105 = arith.constant 12 : index
    %c0_106 = arith.constant 0 : index
    %354 = vector.load %arg11[%c5_104, %c12_105, %c0_106] : memref<18x24x32xf32, #tpu.memory_space<vmem>>, vector<8x8x32xf32>
    %355 = vector.extract_strided_slice %211 {offsets = [23, 0], sizes = [1, 32], strides = [1, 1]} : vector<25x32xf32> to vector<1x32xf32>
    %356 = vector.shape_cast %355 : vector<1x32xf32> to vector<1x1x32xf32>
    %357 = vector.broadcast %356 : vector<1x1x32xf32> to vector<8x8x32xf32>
    %358 = arith.mulf %354, %357 : vector<8x8x32xf32>
    %359 = arith.addf %353, %358 : vector<8x8x32xf32>
    %c5_107 = arith.constant 5 : index
    %c13_108 = arith.constant 13 : index
    %c0_109 = arith.constant 0 : index
    %360 = vector.load %arg11[%c5_107, %c13_108, %c0_109] : memref<18x24x32xf32, #tpu.memory_space<vmem>>, vector<8x8x32xf32>
    %361 = vector.extract_strided_slice %211 {offsets = [24, 0], sizes = [1, 32], strides = [1, 1]} : vector<25x32xf32> to vector<1x32xf32>
    %362 = vector.shape_cast %361 : vector<1x32xf32> to vector<1x1x32xf32>
    %363 = vector.broadcast %362 : vector<1x1x32xf32> to vector<8x8x32xf32>
    %364 = arith.mulf %360, %363 : vector<8x8x32xf32>
    %365 = arith.addf %359, %364 : vector<8x8x32xf32>
    %366 = vector.shape_cast %365 : vector<8x8x32xf32> to vector<64x32xf32>
    %c1_110 = arith.constant 1 : index
    %c0_111 = arith.constant 0 : index
    %c0_112 = arith.constant 0 : index
    %367 = vector.load %arg5[%c1_110, %c0_111, %c0_112] : memref<2x1x32xf32, #tpu.memory_space<vmem>>, vector<1x1x32xf32>
    %368 = vector.shape_cast %367 : vector<1x1x32xf32> to vector<1x32xf32>
    %369 = vector.broadcast %368 : vector<1x32xf32> to vector<64x32xf32>
    %370 = arith.addf %366, %369 : vector<64x32xf32>
    %371 = arith.truncf %370 : vector<64x32xf32> to vector<64x32xbf16>
    %c1_113 = arith.constant 1 : index
    %c0_114 = arith.constant 0 : index
    %c0_115 = arith.constant 0 : index
    %372 = vector.load %arg6[%c1_113, %c0_114, %c0_115] : memref<2x32x128xbf16, #tpu.memory_space<vmem>>, vector<1x32x128xbf16>
    %373 = vector.shape_cast %372 : vector<1x32x128xbf16> to vector<32x128xbf16>
    %cst_116 = arith.constant dense<0.000000e+00> : vector<64x128xf32>
    %374 = tpu.matmul %371, %373, %cst_116 {dimension_numbers = #tpu.dot_dimension_numbers<[1], [0], [0], [1], [0, 0, 1, 1], [], []>} : vector<64x32xbf16>, vector<32x128xbf16>, vector<64x128xf32> -> vector<64x128xf32>
    %c1_117 = arith.constant 1 : index
    %c0_118 = arith.constant 0 : index
    %c0_119 = arith.constant 0 : index
    %375 = vector.load %arg7[%c1_117, %c0_118, %c0_119] : memref<2x1x128xf32, #tpu.memory_space<vmem>>, vector<1x1x128xf32>
    %376 = vector.shape_cast %375 : vector<1x1x128xf32> to vector<1x128xf32>
    %377 = vector.broadcast %376 : vector<1x128xf32> to vector<64x128xf32>
    %378 = arith.addf %374, %377 : vector<64x128xf32>
    %cst_120 = arith.constant 5.000000e-01 : f32
    %379 = vector.broadcast %cst_120 : f32 to vector<64x128xf32>
    %380 = arith.mulf %379, %378 : vector<64x128xf32>
    %cst_121 = arith.constant 4.471500e-02 : f32
    %381 = vector.broadcast %cst_121 : f32 to vector<64x128xf32>
    %382 = arith.mulf %381, %378 : vector<64x128xf32>
    %383 = arith.mulf %382, %378 : vector<64x128xf32>
    %384 = arith.mulf %383, %378 : vector<64x128xf32>
    %385 = arith.addf %378, %384 : vector<64x128xf32>
    %cst_122 = arith.constant 0.797884583 : f32
    %386 = vector.broadcast %cst_122 : f32 to vector<64x128xf32>
    %387 = arith.mulf %386, %385 : vector<64x128xf32>
    %388 = math.tanh %387 : vector<64x128xf32>
    %cst_123 = arith.constant 1.000000e+00 : f32
    %389 = vector.broadcast %cst_123 : f32 to vector<64x128xf32>
    %390 = arith.addf %389, %388 : vector<64x128xf32>
    %391 = arith.mulf %380, %390 : vector<64x128xf32>
    %392 = arith.truncf %391 : vector<64x128xf32> to vector<64x128xbf16>
    %c1_124 = arith.constant 1 : index
    %c0_125 = arith.constant 0 : index
    %c0_126 = arith.constant 0 : index
    %393 = vector.load %arg8[%c1_124, %c0_125, %c0_126] : memref<2x128x32xbf16, #tpu.memory_space<vmem>>, vector<1x128x32xbf16>
    %394 = vector.shape_cast %393 : vector<1x128x32xbf16> to vector<128x32xbf16>
    %cst_127 = arith.constant dense<0.000000e+00> : vector<64x32xf32>
    %395 = tpu.matmul %392, %394, %cst_127 {dimension_numbers = #tpu.dot_dimension_numbers<[1], [0], [0], [1], [0, 0, 1, 1], [], []>} : vector<64x128xbf16>, vector<128x32xbf16>, vector<64x32xf32> -> vector<64x32xf32>
    %c1_128 = arith.constant 1 : index
    %c0_129 = arith.constant 0 : index
    %c0_130 = arith.constant 0 : index
    %396 = vector.load %arg9[%c1_128, %c0_129, %c0_130] : memref<2x1x32xf32, #tpu.memory_space<vmem>>, vector<1x1x32xf32>
    %397 = vector.shape_cast %396 : vector<1x1x32xf32> to vector<1x32xf32>
    %398 = vector.broadcast %397 : vector<1x32xf32> to vector<64x32xf32>
    %399 = arith.addf %395, %398 : vector<64x32xf32>
    %400 = arith.addf %207, %399 : vector<64x32xf32>
    %c0_131 = arith.constant 0 : index
    %c0_132 = arith.constant 0 : index
    %c0_133 = arith.constant 0 : index
    %401 = vector.load %arg10[%c0_131, %c0_132, %c0_133] : memref<1x64x32xf32, #tpu.memory_space<vmem>>, vector<1x64x32xf32>
    %402 = vector.shape_cast %401 : vector<1x64x32xf32> to vector<64x32xf32>
    %403 = vector.shape_cast %400 : vector<64x32xf32> to vector<1x64x32xf32>
    tpu.vector_store %arg10[%c0_131, %c0_132, %c0_133], %403 {strides = array<i32>} : memref<1x64x32xf32, #tpu.memory_space<vmem>>, vector<1x64x32xf32>,
    return
  }
  func.func @transform_0(%arg0: i32) -> (i32, i32, i32) {
    %c0_i32 = arith.constant 0 : i32
    %c0_i32_0 = arith.constant 0 : i32
    %c0_i32_1 = arith.constant 0 : i32
    return %arg0, %c0_i32, %c0_i32_0 : i32, i32, i32
  }
  func.func @transform_1(%arg0: i32) -> (i32, i32) {
    %c0_i32 = arith.constant 0 : i32
    %c0_i32_0 = arith.constant 0 : i32
    %c0_i32_1 = arith.constant 0 : i32
    return %c0_i32, %c0_i32_0 : i32, i32
  }
  func.func @transform_2(%arg0: i32) -> (i32, i32) {
    %c0_i32 = arith.constant 0 : i32
    %c0_i32_0 = arith.constant 0 : i32
    %c0_i32_1 = arith.constant 0 : i32
    return %c0_i32, %c0_i32_0 : i32, i32
  }
  func.func @transform_3(%arg0: i32) -> (i32, i32, i32) {
    %c0_i32 = arith.constant 0 : i32
    %c0_i32_0 = arith.constant 0 : i32
    %c0_i32_1 = arith.constant 0 : i32
    %c0_i32_2 = arith.constant 0 : i32
    return %c0_i32, %c0_i32_0, %c0_i32_1 : i32, i32, i32
  }
  func.func @transform_4(%arg0: i32) -> (i32, i32, i32) {
    %c0_i32 = arith.constant 0 : i32
    %c0_i32_0 = arith.constant 0 : i32
    %c0_i32_1 = arith.constant 0 : i32
    %c0_i32_2 = arith.constant 0 : i32
    return %c0_i32, %c0_i32_0, %c0_i32_1 : i32, i32, i32
  }
  func.func @transform_5(%arg0: i32) -> (i32, i32, i32) {
    %c0_i32 = arith.constant 0 : i32
    %c0_i32_0 = arith.constant 0 : i32
    %c0_i32_1 = arith.constant 0 : i32
    %c0_i32_2 = arith.constant 0 : i32
    return %c0_i32, %c0_i32_0, %c0_i32_1 : i32, i32, i32
  }
  func.func @transform_6(%arg0: i32) -> (i32, i32, i32) {
    %c0_i32 = arith.constant 0 : i32
    %c0_i32_0 = arith.constant 0 : i32
    %c0_i32_1 = arith.constant 0 : i32
    %c0_i32_2 = arith.constant 0 : i32
    return %c0_i32, %c0_i32_0, %c0_i32_1 : i32, i32, i32
  }
  func.func @transform_7(%arg0: i32) -> (i32, i32, i32) {
    %c0_i32 = arith.constant 0 : i32
    %c0_i32_0 = arith.constant 0 : i32
    %c0_i32_1 = arith.constant 0 : i32
    %c0_i32_2 = arith.constant 0 : i32
    return %c0_i32, %c0_i32_0, %c0_i32_1 : i32, i32, i32
  }
  func.func @transform_8(%arg0: i32) -> (i32, i32, i32) {
    %c0_i32 = arith.constant 0 : i32
    %c0_i32_0 = arith.constant 0 : i32
    %c0_i32_1 = arith.constant 0 : i32
    %c0_i32_2 = arith.constant 0 : i32
    return %c0_i32, %c0_i32_0, %c0_i32_1 : i32, i32, i32
  }
  func.func @transform_9(%arg0: i32) -> (i32, i32, i32) {
    %c0_i32 = arith.constant 0 : i32
    %c0_i32_0 = arith.constant 0 : i32
    %c0_i32_1 = arith.constant 0 : i32
    return %arg0, %c0_i32, %c0_i32_0 : i32, i32, i32
  }
}

</mosaic_0001>

<bundles_post_ra>
// kernel: metanext_stage_forward.1
= control target key start
LH: loop header
LB: loop body
LE: loop exit
PB: predicated region body
PF: predicated region fallthrough
CT: control target
= control target key end

     0   :  { %14 = vsyncpa [#allocation4], 0  ;;  %s4005_s0 = inlined_call_operand.vmem [shape: bf16[2,64,64], index: 0, kind: input, shape index: {}]   ;;  %s4006_s1 = inlined_call_operand.vmem [shape: bf16[64,32], index: 1, kind: input, shape index: {}]   ;;  %s4007_s2 = inlined_call_operand.vmem [shape: f32[1,32], index: 2, kind: input, shape index: {}]   ;;  %s4008_s3 = inlined_call_operand.vmem [shape: f32[2,25,32], index: 3, kind: input, shape index: {}]   ;;  %s4009_s4 = inlined_call_operand.vmem [shape: f32[2,1,32], index: 4, kind: input, shape index: {}]   ;;  %s4010_s5 = inlined_call_operand.vmem [shape: bf16[2,32,128], index: 5, kind: input, shape index: {}]   ;;  %s4011_s6 = inlined_call_operand.vmem [shape: f32[2,1,128], index: 6, kind: input, shape index: {}]   ;;  %s4012_s7 = inlined_call_operand.vmem [shape: bf16[2,128,32], index: 7, kind: input, shape index: {}]   ;;  %s4013_s8 = inlined_call_operand.vmem [shape: f32[2,1,32], index: 8, kind: input, shape index: {}]   ;;  %s4014_s9 = inlined_call_operand.hbm [shape: f32[2,64,32], index: 9, kind: output, shape index: {}]  }
   0x1   :  { %16 = vsyncpa [#allocation4 + $0x1], 0  ;;  %s2569_s30 = smov 0   ;;  %s2571_s10 = smov 0  }
   0x2   :  { %s2573_s11 = smov 0   ;;  %s2575_s12 = smov 0  }
   0x3 LB: > { %s2590_s13 = sadd.s32 4294967295, %s2514_s12   ;;  %s2174_s14 = sadd.s32 4294967294, %s2514_s12   ;;  %s2514_s12 = sphi %s2575_s12, %s4219_s12   ;;  %s2510_s11 = sphi %s2573_s11, %s4218_s11   ;;  %s2506_s10 = sphi %s2571_s10, %s4217_s10   ;;  %s2502_s30 = sphi %s2569_s30, %s4216_s30  }
   0x4   : > { %s2594_s15 = sadd.s32 1, %s2514_s12   ;;  %s223_s16 = sadd.s32 1, %s2510_s11 }
   0x5   : > { %s220_s17 = ssub.s32 %s2514_s12, %s2594_s15  ;;  %p233_p0 = scmp.ne.s32.totalorder %s2510_s11, %s2506_s10 }
   0x6   : > { %p221_p1 = scmp.eq.s32.totalorder %s220_s17, 0  ;;  %p234_p2 = scmp.eq.s32.totalorder %s2590_s13, 1 }
   0x7   : > { %p239_p3 = scmp.ne.s32.totalorder %s2506_s10, %s2502_s30  ;;  %p240_p4 = scmp.eq.s32.totalorder %s2174_s14, 1 }
   0x8   : > { %s2605_s18 = scalar_select %p221_p1, %s2510_s11, %s223_s16  }
   0x9   : > { %p2607_p5 = por %p234_p2, %p233_p0  ;;  %p2611_p6 = por %p240_p4, %p239_p3 }
   0xa   : > { %p2177_p7 = scmp.ge.s32.totalorder %s2514_s12, 1  ;;  %p290_p8 = scmp.lt.s32.totalorder %s2514_s12, 3 }
   0xc   : > { %p291_p9 = pnand %p2177_p7, %p290_p8 }
   0xe   : > { %294 = sbr.rel (%p291_p9) target bundleno = 1022 (0x3fe), region = 56 }
  0x13   : > { %v2345_v0 = vld [vmem:[%s4006_s1 + $0x18] sm:$0xff]  ;;  %p326_p10 = scmp.lt.s32.totalorder %s2590_s13, 1  ;;  %v2344_v1 = vld [vmem:[%s4006_s1 + $0x10] sm:$0xff]  ;;  %v2343_v2 = vld [vmem:[%s4006_s1 + $0x8] sm:$0xff]  ;;  %vm445_vm0 = vcmask 523264   ;;  %vm332_vm1 = vcmask 261120  }
  0x14   : > { %462 = vmatpush.bf16.msra.mxu0 %v2345_v0  ;;  %v2342_v3 = vld [vmem:[%s4006_s1] sm:$0xff]  ;;  %v2516_v6 = vmov 0.0   ;;  %v496_v13 = vld [vmem:[%s4008_s3 + $0x8] sm:$0xff]  ;;  %v2693_v17 = vld [vmem:[%s4008_s3 + $0x10] sm:$0xff]  ;;  %s323_s14 = sand.u32 1, %s2506_s10   ;;  %s2366_s23 = sshll.u32 %s2590_s13, 6 }
  0x15   : > { %s327_s25 = scalar_select %p326_p10, %s2590_s13, 1  ;;  %345 = vst.msk [vmem:[#allocation2 + $0x60] sm:$0xff] %vm332_vm1, %v2516_v6  ;;  %v2671_v9 = vld [vmem:[%s4007_s2] ss:$0 sm:$0xff]  ;;  %v2703_v25 = vperm.slane %v496_v13, 0  ;;  %v2705_v26 = vperm.slane %v496_v13, 1 }
  0x16   : > { %346 = vst.msk [vmem:[#allocation2 + $0x68] sm:$0xff] %vm332_vm1, %v2516_v6  ;;  %v495_v12 = vld [vmem:[%s4008_s3] sm:$0xff]  ;;  %v2707_v27 = vperm.slane %v496_v13, 2  ;;  %v2709_v28 = vperm.slane %v496_v13, 3  ;;  %v2718_v33 = vperm.slane %v496_v13, 4  ;;  %v2721_v34 = vperm.slane %v2693_v17, 2  ;;  %s2108_s26 = scalar_lea.hbm %s4014_s9, %s2366_s23 }
  0x17   : > { %s2337_s28 = sshll.u32 %s327_s25, 5  ;;  %365 = vst.msk [vmem:[#allocation2 + $0x78] sm:$0xff] %vm332_vm1, %v2516_v6  ;;  %v2684_v14 = vperm.slane %v495_v12, 0  ;;  %v2686_v15 = vperm.slane %v495_v12, 1  ;;  %v2688_v16 = vperm.slane %v495_v12, 2  ;;  %v2695_v18 = vperm.slane %v495_v12, 3 }
  0x18   : > { %463 = vmatpush.bf16.msra.mxu0 %v2344_v1  ;;  %s330_s21 = scalar_lea.vmem %s4005_s0, %s2337_s28  ;;  %334 = vst.msk [vmem:[#allocation2 + $0x8] sm:$0xff] %vm332_vm1, %v2516_v6  ;;  %v2697_v20 = vperm.slane %v495_v12, 4  ;;  %v2699_v21 = vperm.slane %v495_v12, 5  ;;  %v2701_v22 = vperm.slane %v495_v12, 7  ;;  %v2724_v35 = vperm.slane %v2693_v17, 3  ;;  %s2111_s28 = sshll.u32 %s2108_s26, 4  ;;  %s2112_s28 = int_to_ptr.hbm [resolvable:$true] %s2111_s28 }
  0x19   : > { %v2338_v4 = vld [vmem:[%s330_s21] sm:$0xff]  ;;  %v2339_v5 = vld [vmem:[%s330_s21 + $0x8] sm:$0xff]  ;;  %v2340_v7 = vld [vmem:[%s330_s21 + $0x10] sm:$0xff]  ;;  %337 = vst.msk [vmem:[#allocation2 + $0x20] sm:$0xff] %vm332_vm1, %v2516_v6  ;;  %v2728_v40 = vperm.slane %v2693_v17, 5  ;;  %v2731_v41 = vperm.slane %v2693_v17, 6 }
  0x1a   : > { %340 = vst.msk [vmem:[#allocation2 + $0x38] sm:$0xff] %vm332_vm1, %v2516_v6  ;;  %v2341_v8 = vld [vmem:[%s330_s21 + $0x18] sm:$0xff]  ;;  %v2734_v42 = vperm.slane %v2693_v17, 7  ;;  %v2740_v45 = vperm.slane %v495_v12, 6  ;;  %v2744_v47 = vperm.slane %v496_v13, 5  ;;  %v2757_v52 = vperm.slane %v2693_v17, 4 }
  0x1b   : > { %343 = vst.msk [vmem:[#allocation2 + $0x50] sm:$0xff] %vm332_vm1, %v2516_v6  ;;  %v2764_v58 = vperm.slane %v496_v13, 6  ;;  %v2784_v1 = vld [vmem:[%s4008_s3 + $0x18] ss:$0 sm:$0xff]  ;;  %s2178_s21 = sshll.u32 %s323_s14, 6  ;;  %s2097_s13 = scalar_lea.sflag [#allocation4], %s323_s14 }
  0x1c   : > { %464 = vmatpush.bf16.msra.mxu0 %v2343_v2  ;;  %347 = vst.msk [vmem:[#allocation2 + $0x70] sm:$0xff] %vm332_vm1, %v2516_v6  ;;  %s3946_s22 = scalar_lea.vmem [#allocation3], %s2178_s21  ;;  %s2466_s29 = sshra.s32 %s2112_s28, 4  ;;  %s2467_s29 = int_to_ptr.hbm [resolvable:$true] %s2466_s29 }
  0x1d   : > { %349 = vst.msk [vmem:[#allocation2 + $0x138] sm:$0xff] %vm332_vm1, %v2516_v6  ;;  %v600_v19 = vld [vmem:[#allocation2 + $0x67] sm:$0xff]  ;;  %s2109_s27 = sshll.u32 %s3946_s22, 4  ;;  %s2468_s16 = scalar_lea.hbm %s2467_s29, 64  ;;  %s2110_s27 = int_to_ptr.vmem [resolvable:$true] %s2109_s27 }
  0x1e   : > { %350 = vst.msk [vmem:[#allocation2 + $0x140] sm:$0xff] %vm332_vm1, %v2516_v6  ;;  %v611_v39 = vmul.f32 %v2697_v20, %v600_v19  ;;  %v2742_v46 = vld [vmem:[#allocation2 + $0x68] sm:$0xff]  ;;  %p2469_p11 = scmp.ne.s32.totalorder %s2467_s29, %s2468_s16  ;;  %s2472_s23 = scalar_lea.hbm %s4014_s9, 128 }
  0x1f   : > { %351 = vst.msk [vmem:[#allocation2 + $0x148] sm:$0xff] %vm332_vm1, %v2516_v6  ;;  %v661_v24 = vld [vmem:[#allocation2 + $0x8] sm:$0xff]  ;;  %v2779_v62 = vmul.f32 %v2709_v28, %v2742_v46  ;;  %p2473_p0 = scmp.lt.s32.totalorder %s2467_s29, %s4014_s9  ;;  %p2474_p1 = scmp.lt.s32.totalorder %s2472_s23, %s2468_s16 }
  0x20   : > { %465 = vmatpush.bf16.msra.mxu0 %v2342_v3  ;;  %353 = vst.msk [vmem:[#allocation2 + $0x158] sm:$0xff] %vm332_vm1, %v2516_v6  ;;  %v662_v30 = vld [vmem:[#allocation2 + $0x20] sm:$0xff]  ;;  %v2747_v49 = vmul.f32 %v2701_v22, %v661_v24  ;;  %p2470_p12 = pnand %p2469_p11, %p2607_p5 }
  0x21   : > { %356 = vst.msk [vmem:[#allocation2 + $0x170] sm:$0xff] %vm332_vm1, %v2516_v6  ;;  %v2714_v31 = vld [vmem:[#allocation2 + $0x38] sm:$0xff]  ;;  %v2750_v50 = vmul.f32 %v2703_v25, %v662_v30  ;;  %v2767_v59 = vmul.f32 %v2701_v22, %v662_v30  ;;  %p2475_p2 = por %p2474_p1, %p2473_p0 }
  0x22   : > { %359 = vst.msk [vmem:[#allocation2 + $0x188] sm:$0xff] %vm332_vm1, %v2516_v6  ;;  %v2716_v32 = vld [vmem:[#allocation2 + $0x50] sm:$0xff]  ;;  %v2754_v51 = vmul.f32 %v2705_v26, %v2714_v31  ;;  %v2771_v60 = vmul.f32 %v2703_v25, %v2714_v31  ;;  %p2471_p13 = pneg %p2470_p12 }
  0x23   : > { %2213 = vmatmul.msk.bf16.vlgmr.msra.gmra.mxu0 %vm445_vm0, %v2338_v4  ;;  %362 = vst.msk [vmem:[#allocation2 + $0x1a0] sm:$0xff] %vm332_vm1, %v2516_v6  ;;  %v2762_v57 = vmul.f32 %v2707_v27, %v2716_v32  ;;  %v2775_v61 = vmul.f32 %v2705_v26, %v2716_v32  ;;  %v2789_v4 = vmul.f32 %v2707_v27, %v2742_v46 }
  0x24   : > { %366 = vst.msk [vmem:[#allocation2 + $0x90] sm:$0xff] %vm332_vm1, %v2516_v6  ;;  %p2476_p3 = pnand %p2475_p2, %p2471_p13 }
  0x25   : > { %367 = vst.msk [vmem:[#allocation2 + $0xa8] sm:$0xff] %vm332_vm1, %v2516_v6 }
  0x26   : > { %368 = vst.msk [vmem:[#allocation2 + $0xc0] sm:$0xff] %vm332_vm1, %v2516_v6 }
  0x27   : > { %369 = vst.msk [vmem:[#allocation2 + $0xd8] sm:$0xff] %vm332_vm1, %v2516_v6 }
  0x28   : > { %370 = vst.msk [vmem:[#allocation2 + $0xf0] sm:$0xff] %vm332_vm1, %v2516_v6 }
  0x29   : > { %371 = vst.msk [vmem:[#allocation2 + $0x108] sm:$0xff] %vm332_vm1, %v2516_v6 }
  0x2a   : > { %372 = vst.msk [vmem:[#allocation2 + $0x120] sm:$0xff] %vm332_vm1, %v2516_v6 }
  0x2b   : > { %373 = vst.msk [vmem:[#allocation2 + $0x88] sm:$0xff] %vm332_vm1, %v2516_v6 }
  0x2c   : > { %374 = vst.msk [vmem:[#allocation2 + $0xa0] sm:$0xff] %vm332_vm1, %v2516_v6 }
  0x2d   : > { %375 = vst.msk [vmem:[#allocation2 + $0xb8] sm:$0xff] %vm332_vm1, %v2516_v6 }
  0x2e   : > { %376 = vst.msk [vmem:[#allocation2 + $0xd0] sm:$0xff] %vm332_vm1, %v2516_v6 }
  0x2f   : > { %377 = vst.msk [vmem:[#allocation2 + $0xe8] sm:$0xff] %vm332_vm1, %v2516_v6 }
  0x30   : > { %378 = vst.msk [vmem:[#allocation2 + $0x100] sm:$0xff] %vm332_vm1, %v2516_v6 }
  0x31   : > { %379 = vst.msk [vmem:[#allocation2 + $0x118] sm:$0xff] %vm332_vm1, %v2516_v6 }
  0x32   : > { %380 = vst.msk [vmem:[#allocation2 + $0x130] sm:$0xff] %vm332_vm1, %v2516_v6 }
  0x33   : > { %2214 = vmatmul.msk.bf16.gmra.mxu0 %vm445_vm0, %v2339_v5  ;;  %4078 = vst [vmem:[#allocation7_spill] sm:$0xff] %v2701_v22  ;;  %v2791_v5 = vperm.slane %v496_v13, 7 }
  0x34   : > { %4079 = vst [vmem:[#allocation8_spill] sm:$0xff] %v2703_v25 }
  0x35   : > { %4080 = vst [vmem:[#allocation9_spill] sm:$0xff] %v2705_v26 }
  0x36   : > { %4081 = vst [vmem:[#allocation10_spill] sm:$0xff] %v2707_v27 }
  0x37   : > { %4083 = vst [vmem:[#allocation12_spill] sm:$0xff] %v2721_v34 }
  0x38   : > { %4084 = vst [vmem:[#allocation13_spill] sm:$0xff] %v2724_v35 }
  0x39   : > { %4085 = vst [vmem:[#allocation14_spill] sm:$0xff] %v2728_v40 }
  0x3a   : > { %4086 = vst [vmem:[#allocation15_spill] sm:$0xff] %v2731_v41 }
  0x3b   : > { %4087 = vst [vmem:[#allocation16_spill] sm:$0xff] %v2734_v42 }
  0x3c   : > { %4088 = vst [vmem:[#allocation17_spill] sm:$0xff] %v2757_v52 }
  0x3d   : > { %4089 = vst [vmem:[#allocation18_spill] sm:$0xff] %v2784_v1 }
  0x43   : > { %2215 = vmatmul.msk.bf16.gmra.mxu0 %vm445_vm0, %v2340_v7 }
  0x53   : > { %2216 = vmatmul.msk.bf16.gmra.mxu0 %vm445_vm0, %v2341_v8 }
  0xa0   : > { %v467_v10 = vpop.f32.mrf.mxu0 }
  0xa1   : > { %v2674_v11 = vadd.f32 %v2671_v9, %v467_v10 }
  0xa3   : > { %4077 = vst [vmem:[#allocation6_spill] sm:$0xff] %v2674_v11 }
  0xa4   : > { %487 = vst.msk [vmem:[#allocation2 + $0x80] sm:$0xff] %vm332_vm1, %v2674_v11 }
  0xa8   : > { %v469_v23 = vpop.f32.mrf.mxu0 }
  0xa9   : > { %v2712_v29 = vadd.f32 %v2671_v9, %v469_v23 }
  0xab   : > { %4082 = vst [vmem:[#allocation11_spill] sm:$0xff] %v2712_v29  ;;  %v499_v36 = vld [vmem:[#allocation2 + $0x7b] sm:$0xff]  ;;  %v952_v6 = vld [vmem:[#allocation2 + $0x83] sm:$0xff] }
  0xac   : > { %v524_v37 = vld [vmem:[#allocation2 + $0x7c] sm:$0xff]  ;;  %v508_v43 = vmul.f32 %v2684_v14, %v499_v36  ;;  %488 = vst.msk [vmem:[#allocation2 + $0x98] sm:$0xff] %vm332_vm1, %v2712_v29  ;;  %v977_v7 = vld [vmem:[#allocation2 + $0x84] sm:$0xff] }
  0xad   : > { %v549_v38 = vld [vmem:[#allocation2 + $0x7d] sm:$0xff]  ;;  %v533_v44 = vmul.f32 %v2686_v15, %v524_v37  ;;  %v1002_v8 = vld [vmem:[#allocation2 + $0x85] sm:$0xff] }
  0xae   : > { %v574_v48 = vld [vmem:[#allocation2 + $0x7e] sm:$0xff]  ;;  %v558_v54 = vmul.f32 %v2688_v16, %v549_v38 }
  0xaf   : > { %v541_v53 = vadd.f32 %v533_v44, %v508_v43  ;;  %v601_v55 = vld [vmem:[#allocation2 + $0x7f] sm:$0xff]  ;;  %v583_v3 = vmul.f32 %v2695_v18, %v574_v48 }
  0xb0   : > { %v666_v56 = vld [vmem:[#allocation2 + $0x80] sm:$0xff]  ;;  %v612_v10 = vmul.f32 %v2697_v20, %v601_v55  ;;  %v628_v12 = vmul.f32 %v2699_v21, %v601_v55  ;;  %v472_v19 = vpop.f32.mrf.mxu0  ;;  %v2820_v55 = vmul.f32 %v2784_v1, %v1002_v8 }
  0xb1   : > { %v867_v63 = vld [vmem:[#allocation2 + $0x81] sm:$0xff]  ;;  %v566_v2 = vadd.f32 %v558_v54, %v541_v53  ;;  %v2796_v23 = vmul.f32 %v2709_v28, %v666_v56  ;;  %v2799_v24 = vmul.f32 %v2718_v33, %v666_v56  ;;  %v2802_v36 = vadd.f32 %v2671_v9, %v472_v19 }
  0xb2   : > { %v927_v0 = vld [vmem:[#allocation2 + $0x82] sm:$0xff]  ;;  %v2805_v13 = vmul.f32 %v2721_v34, %v867_v63  ;;  %v2808_v37 = vmul.f32 %v2724_v35, %v867_v63  ;;  %v2814_v53 = vmul.f32 %v2731_v41, %v952_v6  ;;  %v2817_v54 = vmul.f32 %v2734_v42, %v977_v7  ;;  %4096 = vst [vmem:[#allocation25_spill] sm:$0xff] %v2820_v55 }
  0xb3   : > { %v591_v30 = vadd.f32 %v583_v3, %v566_v2  ;;  %4090 = vst [vmem:[#allocation19_spill] sm:$0xff] %v2802_v36  ;;  %v500_v38 = vld [vmem:[#allocation2 + $0x93] sm:$0xff]  ;;  %v2811_v48 = vmul.f32 %v2728_v40, %v927_v0  ;;  %v2828_v0 = vmul.f32 %v2701_v22, %v2714_v31  ;;  %v2831_v6 = vperm.slane %v2693_v17, 0 }
  0xb4   : > { %4091 = vst [vmem:[#allocation20_spill] sm:$0xff] %v2805_v13  ;;  %v525_v43 = vld [vmem:[#allocation2 + $0x94] sm:$0xff]  ;;  %v509_v3 = vmul.f32 %v2684_v14, %v500_v38  ;;  %v2835_v7 = vmul.f32 %v2703_v25, %v2716_v32  ;;  %v2841_v8 = vmul.f32 %v2707_v27, %v666_v56 }
  0xb5   : > { %4092 = vst [vmem:[#allocation21_spill] sm:$0xff] %v2808_v37  ;;  %v550_v44 = vld [vmem:[#allocation2 + $0x95] sm:$0xff]  ;;  %v619_v2 = vadd.f32 %v611_v39, %v591_v30  ;;  %v534_v63 = vmul.f32 %v2686_v15, %v525_v43  ;;  %v2838_v39 = vmul.f32 %v2705_v26, %v666_v56  ;;  %v1003_v37 = vld [vmem:[#allocation2 + $0x9d] sm:$0xff] }
  0xb6   : > { %4093 = vst [vmem:[#allocation22_spill] sm:$0xff] %v2811_v48  ;;  %v575_v19 = vld [vmem:[#allocation2 + $0x96] sm:$0xff]  ;;  %v559_v43 = vmul.f32 %v2688_v16, %v550_v44  ;;  %v2853_v48 = vmul.f32 %v2701_v22, %v666_v56 }
  0xb7   : > { %4094 = vst [vmem:[#allocation23_spill] sm:$0xff] %v2814_v53  ;;  %v602_v29 = vld [vmem:[#allocation2 + $0x97] sm:$0xff]  ;;  %v636_v30 = vadd.f32 %v628_v12, %v619_v2  ;;  %v542_v38 = vadd.f32 %v534_v63, %v509_v3  ;;  %v584_v55 = vmul.f32 %v2695_v18, %v575_v19  ;;  %v2850_v53 = vmul.f32 %v2705_v26, %v2742_v46 }
  0xb8   : > { %4095 = vst [vmem:[#allocation24_spill] sm:$0xff] %v2817_v54  ;;  %v645_v31 = vmul.f32 %v2740_v45, %v602_v29  ;;  %v868_v11 = vld [vmem:[#allocation2 + $0x99] sm:$0xff]  ;;  %v2856_v12 = vmul.f32 %v2703_v25, %v666_v56  ;;  %v2859_v44 = vmul.f32 %v2697_v20, %v602_v29  ;;  %v629_v3 = vmul.f32 %v2699_v21, %v602_v29 }
  0xb9   : > { %489 = vst.msk [vmem:[#allocation2 + $0xb0] sm:$0xff] %vm332_vm1, %v2802_v36  ;;  %v2845_v36 = vld [vmem:[#allocation2 + $0x98] sm:$0xff]  ;;  %v567_v2 = vadd.f32 %v559_v43, %v542_v38  ;;  %v2871_v56 = vmul.f32 %v2724_v35, %v868_v11  ;;  %v2874_v38 = vmul.f32 %v2757_v52, %v868_v11 }
  0xba   : > { %4097 = vst [vmem:[#allocation26_spill] sm:$0xff] %v2831_v6  ;;  %v928_v54 = vld [vmem:[#allocation2 + $0x9a] sm:$0xff]  ;;  %v653_v63 = vadd.f32 %v645_v31, %v636_v30 }
  0xbb   : > { %4098 = vst [vmem:[#allocation27_spill] sm:$0xff] %v2838_v39  ;;  %v953_v13 = vld [vmem:[#allocation2 + $0x9b] sm:$0xff]  ;;  %v474_v39 = vpop.f32.mrf.mxu0  ;;  %v592_v29 = vadd.f32 %v584_v55, %v567_v2  ;;  %v2881_v31 = vmul.f32 %v2728_v40, %v928_v54  ;;  %v2893_v55 = vmul.f32 %v2784_v1, %v1003_v37  ;;  %v2906_v37 = vmul.f32 %v2703_v25, %v2742_v46 }
  0xbc   : > { %4099 = vst [vmem:[#allocation28_spill] sm:$0xff] %v2841_v8  ;;  %v978_v19 = vld [vmem:[#allocation2 + $0x9c] sm:$0xff]  ;;  %v2864_v8 = vmul.f32 %v2718_v33, %v2845_v36  ;;  %v2877_v30 = vadd.f32 %v2671_v9, %v474_v39  ;;  %v688_v43 = vadd.f32 %v2747_v49, %v653_v63 }
  0xbd   : > { %4100 = vst [vmem:[#allocation29_spill] sm:$0xff] %v2845_v36  ;;  %v620_v39 = vadd.f32 %v612_v10, %v592_v29  ;;  %v2910_v10 = vmul.f32 %v2707_v27, %v2845_v36 }
  0xbe   : > { %4101 = vst [vmem:[#allocation30_spill] sm:$0xff] %v2850_v53 }
  0xbf   : > { %4102 = vst [vmem:[#allocation31_spill] sm:$0xff] %v2853_v48  ;;  %v2868_v48 = vmul.f32 %v2744_v47, %v2845_v36 }
  0xc0   : > { %4103 = vst [vmem:[#allocation32_spill] sm:$0xff] %v2856_v12  ;;  %v501_v12 = vld [vmem:[#allocation2 + $0xab] sm:$0xff] }
  0xc1   : > { %4104 = vst [vmem:[#allocation33_spill] sm:$0xff] %v2864_v8  ;;  %v526_v53 = vld [vmem:[#allocation2 + $0xac] sm:$0xff]  ;;  %v2884_v8 = vperm.slane %v2693_v17, 1  ;;  %v510_v49 = vmul.f32 %v2684_v14, %v501_v12  ;;  %v2901_v17 = vmul.f32 %v2701_v22, %v2716_v32  ;;  %v637_v12 = vadd.f32 %v629_v3, %v620_v39 }
  0xc2   : > { %4105 = vst [vmem:[#allocation34_spill] sm:$0xff] %v2871_v56  ;;  %v551_v6 = vld [vmem:[#allocation2 + $0xad] sm:$0xff]  ;;  %v2887_v56 = vmul.f32 %v2731_v41, %v953_v13  ;;  %v535_v54 = vmul.f32 %v2686_v15, %v526_v53  ;;  %v2914_v53 = vmul.f32 %v2709_v28, %v2845_v36  ;;  %v2930_v3 = vmul.f32 %v2705_v26, %v2845_v36 }
  0xc3   : > { %4106 = vst [vmem:[#allocation35_spill] sm:$0xff] %v2874_v38  ;;  %v2890_v38 = vmul.f32 %v2734_v42, %v978_v19  ;;  %v576_v2 = vld [vmem:[#allocation2 + $0xae] sm:$0xff]  ;;  %v560_v13 = vmul.f32 %v2688_v16, %v551_v6  ;;  %v705_v6 = vadd.f32 %v2750_v50, %v688_v43 }
  0xc4   : > { %4107 = vst [vmem:[#allocation36_spill] sm:$0xff] %v2877_v30  ;;  %v603_v63 = vld [vmem:[#allocation2 + $0xaf] sm:$0xff]  ;;  %v543_v19 = vadd.f32 %v535_v54, %v510_v49  ;;  %v585_v1 = vmul.f32 %v2695_v18, %v576_v2 }
  0xc5   : > { %4108 = vst [vmem:[#allocation37_spill] sm:$0xff] %v2881_v31  ;;  %v646_v29 = vmul.f32 %v2740_v45, %v603_v63  ;;  %v2917_v32 = vld [vmem:[#allocation2 + $0xb0] sm:$0xff]  ;;  %v2933_v49 = vmul.f32 %v2697_v20, %v603_v63  ;;  %v722_v50 = vadd.f32 %v2754_v51, %v705_v6  ;;  %v630_v2 = vmul.f32 %v2699_v21, %v603_v63 }
  0xc6   : > { %4109 = vst [vmem:[#allocation38_spill] sm:$0xff] %v2887_v56  ;;  %v568_v39 = vadd.f32 %v560_v13, %v543_v19  ;;  %v869_v43 = vld [vmem:[#allocation2 + $0xb1] sm:$0xff] }
  0xc7   : > { %4110 = vst [vmem:[#allocation39_spill] sm:$0xff] %v2890_v38  ;;  %v2926_v38 = vmul.f32 %v2703_v25, %v2845_v36  ;;  %v654_v54 = vadd.f32 %v646_v29, %v637_v12  ;;  %v2943_v25 = vmul.f32 %v2764_v58, %v2917_v32  ;;  %v739_v63 = vadd.f32 %v2762_v57, %v722_v50  ;;  %v929_v29 = vld [vmem:[#allocation2 + $0xb2] sm:$0xff] }
  0xc8   : > { %4111 = vst [vmem:[#allocation40_spill] sm:$0xff] %v2893_v55  ;;  %v2922_v55 = vmul.f32 %v2721_v34, %v868_v11  ;;  %v477_v11 = vpop.f32.mrf.mxu0  ;;  %v593_v19 = vadd.f32 %v585_v1, %v568_v39  ;;  %v954_v6 = vld [vmem:[#allocation2 + $0xb3] sm:$0xff]  ;;  %v2962_v1 = vmul.f32 %v2718_v33, %v2917_v32 }
  0xc9   : > { %490 = vst.msk [vmem:[#allocation2 + $0xc8] sm:$0xff] %vm332_vm1, %v2877_v30  ;;  %v866_v30 = vld [vmem:[#allocation2 + $0x69] sm:$0xff]  ;;  %v2949_v12 = vadd.f32 %v2671_v9, %v477_v11  ;;  %v689_v51 = vadd.f32 %v2767_v59, %v654_v54  ;;  %v2965_v59 = vmul.f32 %v2721_v34, %v869_v43 }
  0xca   : > { %4112 = vst [vmem:[#allocation41_spill] sm:$0xff] %v2917_v32  ;;  %v2946_v13 = vmul.f32 %v2721_v34, %v866_v30  ;;  %v2958_v30 = vmul.f32 %v2709_v28, %v2917_v32  ;;  %v621_v57 = vadd.f32 %v2859_v44, %v593_v19 }
  0xcb   : > { %4113 = vst [vmem:[#allocation42_spill] sm:$0xff] %v2922_v55  ;;  %v2939_v55 = vmul.f32 %v2744_v47, %v2917_v32 }
  0xcc   : > { %4114 = vst [vmem:[#allocation43_spill] sm:$0xff] %v2926_v38  ;;  %v2954_v38 = vmul.f32 %v2757_v52, %v869_v43  ;;  %v638_v44 = vadd.f32 %v630_v2, %v621_v57 }
  0xcd   : > { %4115 = vst [vmem:[#allocation44_spill] sm:$0xff] %v2930_v3  ;;  %v979_v3 = vld [vmem:[#allocation2 + $0xb4] sm:$0xff] }
  0xce   : > { %4116 = vst [vmem:[#allocation45_spill] sm:$0xff] %v2949_v12 }
  0xcf   : > { %4117 = vst [vmem:[#allocation46_spill] sm:$0xff] %v2954_v38  ;;  %v2973_v38 = vmul.f32 %v2724_v35, %v869_v43  ;;  %v756_v43 = vadd.f32 %v2779_v62, %v739_v63 }
  0xd0   : > { %v502_v36 = vld [vmem:[#allocation2 + $0xc3] sm:$0xff]  ;;  %4118 = vst [vmem:[#allocation47_spill] sm:$0xff] %v2958_v30  ;;  %v479_v63 = vpop.f32.mrf.mxu0 }
  0xd1   : > { %v527_v56 = vld [vmem:[#allocation2 + $0xc4] sm:$0xff]  ;;  %4119 = vst [vmem:[#allocation48_spill] sm:$0xff] %v2965_v59  ;;  %v511_v39 = vmul.f32 %v2684_v14, %v502_v36  ;;  %v2978_v59 = vmul.f32 %v2728_v40, %v929_v29  ;;  %v2981_v36 = vmul.f32 %v2731_v41, %v954_v6  ;;  %v2993_v29 = vmul.f32 %v2701_v22, %v2742_v46 }
  0xd2   : > { %v552_v31 = vld [vmem:[#allocation2 + $0xc5] sm:$0xff]  ;;  %v536_v54 = vmul.f32 %v2686_v15, %v527_v56  ;;  %491 = vst.msk [vmem:[#allocation2 + $0xe0] sm:$0xff] %vm332_vm1, %v2949_v12  ;;  %v706_v12 = vadd.f32 %v2771_v60, %v689_v51  ;;  %v2997_v6 = vmul.f32 %v2705_v26, %v2917_v32  ;;  %v773_v60 = vadd.f32 %v2799_v24, %v756_v43 }
  0xd3   : > { %v577_v50 = vld [vmem:[#allocation2 + $0xc6] sm:$0xff]  ;;  %4120 = vst [vmem:[#allocation49_spill] sm:$0xff] %v2973_v38  ;;  %v561_v30 = vmul.f32 %v2688_v16, %v552_v31  ;;  %v2989_v31 = vmul.f32 %v2734_v42, %v979_v3 }
  0xd4   : > { %v604_v11 = vld [vmem:[#allocation2 + $0xc7] sm:$0xff]  ;;  %4121 = vst [vmem:[#allocation50_spill] sm:$0xff] %v2981_v36  ;;  %v544_v56 = vadd.f32 %v536_v54, %v511_v39  ;;  %v586_v38 = vmul.f32 %v2695_v18, %v577_v50  ;;  %v723_v39 = vadd.f32 %v2775_v61, %v706_v12  ;;  %v3014_v61 = vadd.f32 %v2671_v9, %v479_v63 }
  0xd5   : > { %v647_v34 = vmul.f32 %v2740_v45, %v604_v11  ;;  %v2983_v19 = vld [vmem:[#allocation2 + $0xc8] sm:$0xff]  ;;  %4122 = vst [vmem:[#allocation51_spill] sm:$0xff] %v2989_v31  ;;  %v3004_v51 = vmul.f32 %v2697_v20, %v604_v11  ;;  %v631_v3 = vmul.f32 %v2699_v21, %v604_v11  ;;  %v790_v43 = vadd.f32 %v2868_v48, %v773_v60 }
  0xd6   : > { %v569_v2 = vadd.f32 %v561_v30, %v544_v56  ;;  %v3001_v62 = vld [vmem:[#allocation2 + $0xc9] sm:$0xff]  ;;  %v3009_v46 = vmul.f32 %v2764_v58, %v2983_v19  ;;  %v816_v30 = vmul.f32 %v2791_v5, %v2983_v19  ;;  %4124 = vst [vmem:[#allocation53_spill] sm:$0xff] %v3014_v61  ;;  %v740_v24 = vadd.f32 %v2789_v4, %v723_v39 }
  0xd7   : > { %v655_v57 = vadd.f32 %v647_v34, %v638_v44  ;;  %4123 = vst [vmem:[#allocation52_spill] sm:$0xff] %v3001_v62  ;;  %v3019_v12 = vmul.f32 %v2718_v33, %v2983_v19  ;;  %v930_v54 = vld [vmem:[#allocation2 + $0xca] sm:$0xff]  ;;  %v3029_v4 = vmul.f32 %v2724_v35, %v3001_v62  ;;  %v3038_v48 = vmul.f32 %v2757_v52, %v3001_v62 }
  0xd8   : > { %v594_v34 = vadd.f32 %v586_v38, %v569_v2  ;;  %v955_v50 = vld [vmem:[#allocation2 + $0xcb] sm:$0xff]  ;;  %v3025_v38 = vmul.f32 %v2744_v47, %v2983_v19  ;;  %492 = vst.msk [vmem:[#allocation2 + $0xf8] sm:$0xff] %vm332_vm1, %v3014_v61  ;;  %v757_v62 = vadd.f32 %v2796_v23, %v740_v24 }
  0xd9   : > { %v503_v11 = vld [vmem:[#allocation2 + $0xdb] sm:$0xff]  ;;  %v690_v26 = vadd.f32 %v2828_v0, %v655_v57  ;;  %v2347_v57 = vld [vmem:[%s4010_s5 + $0x8] sm:$0xff]  ;;  %v3048_v60 = vmul.f32 %v2731_v41, %v955_v50 }
  0xda   : > { %v528_v44 = vld [vmem:[#allocation2 + $0xdc] sm:$0xff]  ;;  %v622_v2 = vadd.f32 %v2933_v49, %v594_v34  ;;  %v512_v39 = vmul.f32 %v2684_v14, %v503_v11  ;;  %v3045_v49 = vmul.f32 %v2728_v40, %v930_v54  ;;  %v3052_v34 = vmul.f32 %v2707_v27, %v2917_v32  ;;  %1081 = vmatpush.bf16.msra.mxu1 %v2347_v57  ;;  %v4127_v32 = vld [vmem:[#allocation33_spill] sm:$0xff] }
  0xdb   : > { %v553_v56 = vld [vmem:[#allocation2 + $0xdd] sm:$0xff]  ;;  %v537_v63 = vmul.f32 %v2686_v15, %v528_v44  ;;  %4126 = vst [vmem:[#allocation55_spill] sm:$0xff] %v3048_v60  ;;  %v774_v23 = vadd.f32 %v4127_v32, %v757_v62  ;;  %2367 = vmatpush.bf16.msra.mxu3 %v2347_v57  ;;  %v4129_v60 = vld [vmem:[#allocation26_spill] sm:$0xff] }
  0xdc   : > { %v578_v42 = vld [vmem:[#allocation2 + $0xde] sm:$0xff]  ;;  %v562_v0 = vmul.f32 %v2688_v16, %v553_v56  ;;  %4125 = vst [vmem:[#allocation54_spill] sm:$0xff] %v3045_v49  ;;  %v639_v11 = vadd.f32 %v631_v3, %v622_v2  ;;  %v807_v3 = vadd.f32 %v2943_v25, %v790_v43  ;;  %v707_v2 = vadd.f32 %v2835_v7, %v690_v26  ;;  %v4130_v26 = vld [vmem:[#allocation30_spill] sm:$0xff] }
  0xdd   : > { %v605_v22 = vld [vmem:[#allocation2 + $0xdf] sm:$0xff]  ;;  %v545_v44 = vadd.f32 %v537_v63, %v512_v39  ;;  %v587_v31 = vmul.f32 %v2695_v18, %v578_v42  ;;  %v482_v42 = vpop.f32.mrf.mxu0  ;;  %v791_v32 = vadd.f32 %v2939_v55, %v774_v23 }
  0xde   : > { %v648_v61 = vmul.f32 %v2740_v45, %v605_v22  ;;  %v3055_v35 = vld [vmem:[#allocation2 + $0xe0] sm:$0xff]  ;;  %v3060_v54 = vmul.f32 %v2697_v20, %v605_v22  ;;  %v632_v63 = vmul.f32 %v2699_v21, %v605_v22  ;;  %v724_v7 = vadd.f32 %v4130_v26, %v707_v2 }
  0xdf   : > { %v609_v56 = vld [vmem:[#allocation2 + $0x13f] sm:$0xff]  ;;  %v570_v39 = vadd.f32 %v562_v0, %v545_v44  ;;  %v817_v40 = vmul.f32 %v2791_v5, %v3055_v35  ;;  %v833_v49 = vmul.f32 %v4129_v60, %v3055_v35  ;;  %v3080_v22 = vadd.f32 %v2671_v9, %v482_v42  ;;  %v504_v0 = vld [vmem:[#allocation2 + $0xf3] sm:$0xff] }
  0xe0   : > { %v2346_v50 = vld [vmem:[%s4010_s5] sm:$0xff]  ;;  %v656_v41 = vadd.f32 %v648_v61, %v639_v11  ;;  %v3070_v24 = vmul.f32 %v2740_v45, %v609_v56  ;;  %v3085_v62 = vmul.f32 %v2744_v47, %v3055_v35  ;;  %v529_v57 = vld [vmem:[#allocation2 + $0xf4] sm:$0xff]  ;;  %v824_v44 = vadd.f32 %v816_v30, %v807_v3 }
  0xe1   : > { %v3076_v25 = vld [vmem:[#allocation2 + $0x140] sm:$0xff]  ;;  %v595_v43 = vadd.f32 %v587_v31, %v570_v39  ;;  %4131 = vst [vmem:[#allocation26_spill] sm:$0xff] %v3080_v22  ;;  %v554_v11 = vld [vmem:[#allocation2 + $0xf5] sm:$0xff]  ;;  %1082 = vmatpush.bf16.msra.mxu1 %v2346_v50  ;;  %v801_v39 = vmul.f32 %v2764_v58, %v3055_v35  ;;  %v513_v23 = vmul.f32 %v2684_v14, %v504_v0 }
  0xe2   : > { %4128 = vst [vmem:[#allocation33_spill] sm:$0xff] %v3070_v24  ;;  %v3087_v61 = vld [vmem:[#allocation2 + $0xe1] sm:$0xff]  ;;  %v691_v56 = vadd.f32 %v2901_v17, %v656_v41  ;;  %v538_v42 = vmul.f32 %v2686_v15, %v529_v57  ;;  %v579_v26 = vld [vmem:[#allocation2 + $0xf6] sm:$0xff]  ;;  %v3102_v41 = vmul.f32 %v2884_v8, %v3076_v25  ;;  %v563_v17 = vmul.f32 %v2688_v16, %v554_v11 }
  0xe3   : > { %v4132_v2 = vld [vmem:[#allocation28_spill] sm:$0xff]  ;;  %v623_v55 = vadd.f32 %v3004_v51, %v595_v43  ;;  %v606_v24 = vld [vmem:[#allocation2 + $0xf7] sm:$0xff]  ;;  %493 = vst.msk [vmem:[#allocation2 + $0x110] sm:$0xff] %vm332_vm1, %v3080_v22  ;;  %v841_v30 = vadd.f32 %v833_v49, %v824_v44  ;;  %v3107_v51 = vmul.f32 %v2757_v52, %v3087_v61  ;;  %2368 = vmatpush.bf16.msra.mxu3 %v2346_v50 }
  0xe4   : > { %v741_v31 = vadd.f32 %v4132_v2, %v724_v7  ;;  %v3096_v36 = vld [vmem:[#allocation2 + $0xf8] sm:$0xff]  ;;  %v3111_v3 = vmul.f32 %v2707_v27, %v2983_v19  ;;  %v546_v43 = vadd.f32 %v538_v42, %v513_v23  ;;  %v588_v0 = vmul.f32 %v2695_v18, %v579_v26 }
  0xe5   : > { %v640_v7 = vadd.f32 %v632_v63, %v623_v55  ;;  %v808_v57 = vadd.f32 %v3009_v46, %v791_v32  ;;  %v649_v2 = vmul.f32 %v2740_v45, %v606_v24  ;;  %v850_v49 = vmul.f32 %v2884_v8, %v3096_v36  ;;  %v484_v46 = vpop.f32.mrf.mxu0  ;;  %v4133_v42 = vld [vmem:[#allocation27_spill] sm:$0xff] }
  0xe6   : > { %v708_v11 = vadd.f32 %v2906_v37, %v691_v56  ;;  %v758_v44 = vadd.f32 %v2914_v53, %v741_v31  ;;  %v571_v50 = vadd.f32 %v563_v17, %v546_v43  ;;  %v3121_v22 = vmul.f32 %v2697_v20, %v606_v24 }
  0xe7   : > { %v633_v63 = vmul.f32 %v2699_v21, %v606_v24  ;;  %v834_v55 = vmul.f32 %v4129_v60, %v3096_v36  ;;  %v657_v23 = vadd.f32 %v649_v2, %v640_v7  ;;  %v858_v32 = vadd.f32 %v850_v49, %v841_v30 }
  0xe8   : > { %v725_v26 = vadd.f32 %v4133_v42, %v708_v11  ;;  %v775_v27 = vadd.f32 %v2962_v1, %v758_v44  ;;  %v596_v52 = vadd.f32 %v588_v0, %v571_v50  ;;  %v3129_v37 = vadd.f32 %v2671_v9, %v484_v46  ;;  %v4135_v50 = vld [vmem:[#allocation21_spill] sm:$0xff]  ;;  %v4136_v42 = vld [vmem:[#allocation47_spill] sm:$0xff] }
  0xe9   : > { %v825_v53 = vadd.f32 %v817_v40, %v808_v57  ;;  %v802_v56 = vmul.f32 %v2764_v58, %v3096_v36  ;;  %v885_v43 = vadd.f32 %v2946_v13, %v858_v32  ;;  %v818_v1 = vmul.f32 %v2791_v5, %v3096_v36 }
  0xea   : > { %4134 = vst [vmem:[#allocation30_spill] sm:$0xff] %v3129_v37  ;;  %v505_v31 = vld [vmem:[#allocation2 + $0x10b] sm:$0xff]  ;;  %v742_v7 = vadd.f32 %v2910_v10, %v725_v26  ;;  %v792_v30 = vadd.f32 %v3025_v38, %v775_v27  ;;  %v624_v0 = vadd.f32 %v3060_v54, %v596_v52  ;;  %v3147_v10 = vmul.f32 %v2709_v28, %v2983_v19 }
  0xeb   : > { %v530_v24 = vld [vmem:[#allocation2 + $0x10c] sm:$0xff]  ;;  %v514_v9 = vmul.f32 %v2684_v14, %v505_v31  ;;  %494 = vst.msk [vmem:[#allocation2 + $0x128] sm:$0xff] %vm332_vm1, %v3129_v37  ;;  %v842_v52 = vadd.f32 %v834_v55, %v825_v53  ;;  %v692_v38 = vadd.f32 %v2993_v29, %v657_v23  ;;  %v902_v46 = vadd.f32 %v4135_v50, %v885_v43  ;;  %v4137_v53 = vld [vmem:[#allocation35_spill] sm:$0xff] }
  0xec   : > { %v555_v17 = vld [vmem:[#allocation2 + $0x10d] sm:$0xff]  ;;  %v539_v40 = vmul.f32 %v2686_v15, %v530_v24  ;;  %v641_v54 = vadd.f32 %v633_v63, %v624_v0  ;;  %v759_v26 = vadd.f32 %v4136_v42, %v742_v7  ;;  %v809_v31 = vadd.f32 %v801_v39, %v792_v30  ;;  %v4138_v0 = vld [vmem:[#allocation32_spill] sm:$0xff] }
  0xed   : > { %v580_v57 = vld [vmem:[#allocation2 + $0x10e] sm:$0xff]  ;;  %v564_v27 = vmul.f32 %v2688_v16, %v555_v17  ;;  %v919_v29 = vadd.f32 %v4137_v53, %v902_v46  ;;  %v753_v43 = vmul.f32 %v2709_v28, %v3055_v35  ;;  %v4139_v7 = vld [vmem:[#allocation20_spill] sm:$0xff] }
  0xee   : > { %v607_v2 = vld [vmem:[#allocation2 + $0x10f] sm:$0xff]  ;;  %v547_v11 = vadd.f32 %v539_v40, %v514_v9  ;;  %v589_v32 = vmul.f32 %v2695_v18, %v580_v57  ;;  %v776_v23 = vadd.f32 %v3019_v12, %v759_v26  ;;  %v709_v9 = vadd.f32 %v4138_v0, %v692_v38  ;;  %v4141_v38 = vld [vmem:[#allocation31_spill] sm:$0xff] }
  0xef   : > { %v3141_v49 = vld [vmem:[#allocation2 + $0x110] sm:$0xff]  ;;  %v650_v13 = vmul.f32 %v2740_v45, %v607_v2  ;;  %v618_v63 = vmul.f32 %v2697_v20, %v607_v2  ;;  %v826_v50 = vadd.f32 %v818_v1, %v809_v31  ;;  %v769_v1 = vmul.f32 %v2718_v33, %v3055_v35 }
  0xf0   : > { %v851_v44 = vmul.f32 %v2884_v8, %v3141_v49  ;;  %v835_v24 = vmul.f32 %v4129_v60, %v3141_v49  ;;  %v572_v17 = vadd.f32 %v564_v27, %v547_v11  ;;  %v4140_v30 = vld [vmem:[#allocation22_spill] sm:$0xff]  ;;  %v634_v27 = vmul.f32 %v2699_v21, %v607_v2 }
  0xf1   : > { %v658_v37 = vadd.f32 %v650_v13, %v641_v54  ;;  %v944_v57 = vadd.f32 %v4140_v30, %v919_v29  ;;  %v793_v20 = vadd.f32 %v3085_v62, %v776_v23  ;;  %v819_v12 = vmul.f32 %v2791_v5, %v3141_v49  ;;  %v4142_v31 = vld [vmem:[#allocation34_spill] sm:$0xff] }
  0xf2   : > { %v859_v55 = vadd.f32 %v851_v44, %v842_v52  ;;  %v597_v40 = vadd.f32 %v589_v32, %v572_v17  ;;  %v506_v13 = vld [vmem:[#allocation2 + $0x123] sm:$0xff]  ;;  %v843_v42 = vadd.f32 %v835_v24, %v826_v50  ;;  %v4145_v0 = vld [vmem:[#allocation46_spill] sm:$0xff] }
  0xf3   : > { %v531_v52 = vld [vmem:[#allocation2 + $0x124] sm:$0xff]  ;;  %v693_v11 = vadd.f32 %v4141_v38, %v658_v37  ;;  %v515_v44 = vmul.f32 %v2684_v14, %v506_v13  ;;  %v770_v37 = vmul.f32 %v2718_v33, %v3096_v36  ;;  %v810_v23 = vadd.f32 %v802_v56, %v793_v20 }
  0xf4   : > { %v886_v39 = vadd.f32 %v4139_v7, %v859_v55  ;;  %v556_v54 = vld [vmem:[#allocation2 + $0x125] sm:$0xff]  ;;  %v540_v46 = vmul.f32 %v2686_v15, %v531_v52  ;;  %v625_v2 = vadd.f32 %v3121_v22, %v597_v40  ;;  %v4144_v15 = vld [vmem:[#allocation23_spill] sm:$0xff] }
  0xf5   : > { %v3174_v32 = vld [vmem:[#allocation2 + $0x128] sm:$0xff]  ;;  %v4143_v17 = vld [vmem:[#allocation44_spill] sm:$0xff]  ;;  %v565_v14 = vmul.f32 %v2688_v16, %v556_v54  ;;  %v969_v29 = vadd.f32 %v4144_v15, %v944_v57  ;;  %v827_v16 = vadd.f32 %v819_v12, %v810_v23 }
  0xf6   : > { %v581_v26 = vld [vmem:[#allocation2 + $0x126] sm:$0xff]  ;;  %v903_v62 = vadd.f32 %v4142_v31, %v886_v39  ;;  %v726_v55 = vadd.f32 %v4143_v17, %v709_v9  ;;  %v548_v53 = vadd.f32 %v540_v46, %v515_v44  ;;  %v836_v22 = vmul.f32 %v4129_v60, %v3174_v32  ;;  %v4146_v39 = vld [vmem:[#allocation43_spill] sm:$0xff] }
  0xf7   : > { %v608_v24 = vld [vmem:[#allocation2 + $0x127] sm:$0xff]  ;;  %v852_v40 = vmul.f32 %v2884_v8, %v3174_v32  ;;  %v710_v9 = vadd.f32 %v4146_v39, %v693_v11  ;;  %v590_v50 = vmul.f32 %v2695_v18, %v581_v26  ;;  %v4149_v11 = vld [vmem:[#allocation38_spill] sm:$0xff] }
  0xf8   : > { %v920_v7 = vadd.f32 %v4145_v0, %v903_v62  ;;  %v573_v30 = vadd.f32 %v565_v14, %v548_v53  ;;  %v4147_v13 = vld [vmem:[#allocation24_spill] sm:$0xff]  ;;  %v4148_v54 = vld [vmem:[#allocation37_spill] sm:$0xff]  ;;  %v743_v38 = vadd.f32 %v3052_v34, %v726_v55  ;;  %v635_v46 = vmul.f32 %v2699_v21, %v608_v24  ;;  %v4150_v53 = vld [vmem:[#allocation42_spill] sm:$0xff] }
  0xf9   : > { %v994_v52 = vadd.f32 %v4147_v13, %v969_v29  ;;  %v860_v56 = vadd.f32 %v852_v40, %v843_v42  ;;  %v727_v20 = vadd.f32 %v2997_v6, %v710_v9  ;;  %v651_v31 = vmul.f32 %v2740_v45, %v608_v24  ;;  %v4151_v42 = vld [vmem:[#allocation25_spill] sm:$0xff]  ;;  %v3206_v6 = vld [vmem:[%s4009_s4] ss:$0 sm:$0xff]  ;;  %v4152_v34 = vld [vmem:[#allocation39_spill] sm:$0xff] }
  0xfa   : > { %v945_v57 = vadd.f32 %v4148_v54, %v920_v7  ;;  %v598_v44 = vadd.f32 %v590_v50, %v573_v30  ;;  %v844_v62 = vadd.f32 %v836_v22, %v827_v16  ;;  %v760_v12 = vadd.f32 %v3147_v10, %v743_v38  ;;  %v4153_v29 = vld [vmem:[#allocation49_spill] sm:$0xff]  ;;  %v4155_v22 = vld [vmem:[#allocation40_spill] sm:$0xff]  ;;  %v3231_v54 = vld [vmem:[#allocation2 + $0x170] sm:$0xff] }
  0xfb   : > { %v887_v18 = vadd.f32 %v4150_v53, %v860_v56  ;;  %v744_v26 = vadd.f32 %v3111_v3, %v727_v20  ;;  %v642_v14 = vadd.f32 %v634_v27, %v625_v2  ;;  %v1019_v15 = vadd.f32 %v4151_v42, %v994_v52  ;;  %v4154_v27 = vld [vmem:[#allocation48_spill] sm:$0xff]  ;;  %v3228_v52 = vld [vmem:[#allocation2 + $0x158] sm:$0xff]  ;;  %v4156_v38 = vld [vmem:[#allocation50_spill] sm:$0xff] }
  0xfc   : > { %v970_v17 = vadd.f32 %v4149_v11, %v945_v57  ;;  %v861_v21 = vadd.f32 %v3102_v41, %v844_v62  ;;  %v786_v45 = vmul.f32 %v2744_v47, %v3096_v36  ;;  %v777_v24 = vadd.f32 %v769_v1, %v760_v12  ;;  %v1004_v62 = vld [vmem:[#allocation2 + $0xb5] sm:$0xff]  ;;  %v1005_v12 = vld [vmem:[#allocation2 + $0xcd] sm:$0xff] }
  0xfd   : > { %v904_v23 = vadd.f32 %v4153_v29, %v887_v18  ;;  %v761_v3 = vadd.f32 %v753_v43, %v744_v26  ;;  %v626_v10 = vadd.f32 %v618_v63, %v598_v44  ;;  %v787_v0 = vmul.f32 %v2744_v47, %v3141_v49  ;;  %v980_v44 = vld [vmem:[#allocation2 + $0xcc] sm:$0xff] }
  0xfe   : > { %v995_v55 = vadd.f32 %v4152_v34, %v970_v17  ;;  %v888_v2 = vadd.f32 %v4154_v27, %v861_v21  ;;  %v803_v7 = vmul.f32 %v2764_v58, %v3141_v49  ;;  %v794_v9 = vadd.f32 %v786_v45, %v777_v24  ;;  %v4157_v18 = vld [vmem:[#allocation54_spill] sm:$0xff]  ;;  %v4159_v29 = vld [vmem:[#allocation29_spill] sm:$0xff] }
  0xff   : > { %v921_v40 = vadd.f32 %v3038_v48, %v904_v23  ;;  %v778_v39 = vadd.f32 %v770_v37, %v761_v3  ;;  %v1031_v30 = vadd.f32 %v3206_v6, %v1019_v15  ;;  %v804_v63 = vmul.f32 %v2764_v58, %v3174_v32  ;;  %v4158_v15 = vld [vmem:[#allocation51_spill] sm:$0xff] }
 0x100   : > { %v1020_v41 = vadd.f32 %v4155_v22, %v995_v55  ;;  %v905_v43 = vadd.f32 %v3029_v4, %v888_v2  ;;  %v820_v1 = vmul.f32 %v2791_v5, %v3174_v32  ;;  %v811_v48 = vadd.f32 %v803_v7, %v794_v9  ;;  %v4160_v23 = vld [vmem:[#allocation7_spill] sm:$0xff] }
 0x101   : > { %v946_v13 = vadd.f32 %v2978_v59, %v921_v40  ;;  %v795_v16 = vadd.f32 %v787_v0, %v778_v39  ;;  %v821_v4 = vmul.f32 %v2791_v5, %v3076_v25  ;;  %v837_v57 = vmul.f32 %v4129_v60, %v3076_v25  ;;  %v3253_v22 = vld [vmem:[#allocation2 + $0xf9] sm:$0xff] }
 0x102   : > { %v1032_v50 = vadd.f32 %v3206_v6, %v1020_v41  ;;  %v922_v37 = vadd.f32 %v3107_v51, %v905_v43  ;;  %v838_v56 = vmul.f32 %v4129_v60, %v3228_v52  ;;  %v828_v17 = vadd.f32 %v820_v1, %v811_v48  ;;  %v3255_v41 = vld [vmem:[#allocation2 + $0x111] sm:$0xff]  ;;  %v4164_v40 = vld [vmem:[#allocation52_spill] sm:$0xff] }
 0x103   : > { %v971_v59 = vadd.f32 %v4156_v38, %v946_v13  ;;  %v812_v11 = vadd.f32 %v804_v63, %v795_v16  ;;  %v643_v53 = vadd.f32 %v635_v46, %v626_v10  ;;  %v659_v51 = vadd.f32 %v651_v31, %v642_v14  ;;  %v4161_v46 = vld [vmem:[#allocation55_spill] sm:$0xff]  ;;  %v4162_v14 = vld [vmem:[#allocation16_spill] sm:$0xff]  ;;  %v4163_v10 = vld [vmem:[#allocation18_spill] sm:$0xff] }
 0x104   : > { %v1039_v20 = vpack.c.bf16 %v1032_v50, %v1031_v30  ;;  %v947_v26 = vadd.f32 %v4157_v18, %v922_v37  ;;  %v854_v42 = vmul.f32 %v2884_v8, %v3228_v52  ;;  %v845_v34 = vadd.f32 %v837_v57, %v828_v17  ;;  %v4165_v39 = vld [vmem:[#allocation12_spill] sm:$0xff]  ;;  %v4166_v30 = vld [vmem:[#allocation33_spill] sm:$0xff] }
 0x105   : > { %v996_v21 = vadd.f32 %v4158_v15, %v971_v59  ;;  %v829_v45 = vadd.f32 %v821_v4, %v812_v11  ;;  %v855_v55 = vmul.f32 %v2884_v8, %v3231_v54  ;;  %v686_v3 = vmul.f32 %v4160_v23, %v4159_v29  ;;  %v931_v13 = vld [vmem:[#allocation2 + $0xe2] sm:$0xff] }
 0x106   : > { %2225 = vmatmul.msk.bf16.vlgmr.msra.gmra.mxu1 %vm332_vm1, %v1039_v20  ;;  %v972_v31 = vadd.f32 %v4161_v46, %v947_v26  ;;  %v989_v24 = vmul.f32 %v4162_v14, %v980_v44  ;;  %v1013_v27 = vmul.f32 %v4163_v10, %v1004_v62  ;;  %v1014_v2 = vmul.f32 %v4163_v10, %v1005_v12  ;;  %v4167_v4 = vld [vmem:[#allocation13_spill] sm:$0xff]  ;;  %v957_v26 = vld [vmem:[#allocation2 + $0xfb] sm:$0xff] }
 0x107   : > { %v846_v0 = vadd.f32 %v838_v56, %v829_v45  ;;  %v862_v7 = vadd.f32 %v854_v42, %v845_v34  ;;  %v881_v9 = vmul.f32 %v4165_v39, %v4164_v40  ;;  %v660_v43 = vadd.f32 %v4166_v30, %v643_v53  ;;  %v932_v56 = vld [vmem:[#allocation2 + $0xfa] sm:$0xff]  ;;  %v956_v20 = vld [vmem:[#allocation2 + $0xe3] sm:$0xff] }
 0x108   : > { %v694_v63 = vadd.f32 %v686_v3, %v659_v51  ;;  %v997_v1 = vadd.f32 %v989_v24, %v972_v31  ;;  %v1021_v50 = vadd.f32 %v1013_v27, %v996_v21  ;;  %v882_v48 = vmul.f32 %v4165_v39, %v3087_v61  ;;  %v4168_v44 = vld [vmem:[#allocation17_spill] sm:$0xff]  ;;  %v4169_v51 = vld [vmem:[#allocation14_spill] sm:$0xff]  ;;  %v4171_v21 = vld [vmem:[#allocation15_spill] sm:$0xff] }
 0x109   : > { %v863_v16 = vadd.f32 %v855_v55, %v846_v0  ;;  %v889_v37 = vadd.f32 %v881_v9, %v862_v7  ;;  %v898_v57 = vmul.f32 %v4167_v4, %v3087_v61  ;;  %v899_v59 = vmul.f32 %v4167_v4, %v3253_v22  ;;  %v4170_v12 = vld [vmem:[#allocation41_spill] sm:$0xff]  ;;  %v4172_v34 = vld [vmem:[#allocation8_spill] sm:$0xff] }
 0x10a   : > { %v1022_v38 = vadd.f32 %v1014_v2, %v997_v1  ;;  %v915_v62 = vmul.f32 %v4168_v44, %v3253_v22  ;;  %v916_v11 = vmul.f32 %v4168_v44, %v3255_v41  ;;  %v940_v18 = vmul.f32 %v4169_v51, %v931_v13  ;;  %v981_v46 = vld [vmem:[#allocation2 + $0xe4] sm:$0xff]  ;;  %v982_v31 = vld [vmem:[#allocation2 + $0xfc] sm:$0xff] }
 0x10b   : > { %v890_v17 = vadd.f32 %v882_v48, %v863_v16  ;;  %v906_v53 = vadd.f32 %v898_v57, %v889_v37  ;;  %v687_v61 = vmul.f32 %v4160_v23, %v4170_v12  ;;  %v1033_v42 = vadd.f32 %v3206_v6, %v1021_v50  ;;  %v4173_v7 = vld [vmem:[#allocation9_spill] sm:$0xff]  ;;  %v4174_v37 = vld [vmem:[#allocation10_spill] sm:$0xff] }
 0x10c   : > { %v941_v15 = vmul.f32 %v4169_v51, %v932_v56  ;;  %v965_v45 = vmul.f32 %v4171_v21, %v956_v20  ;;  %v703_v55 = vmul.f32 %v4172_v34, %v4170_v12  ;;  %v704_v27 = vmul.f32 %v4172_v34, %v2983_v19  ;;  %v1006_v1 = vld [vmem:[#allocation2 + $0xe5] sm:$0xff]  ;;  %v1007_v20 = vld [vmem:[#allocation2 + $0xfd] sm:$0xff] }
 0x10d   : > { %v907_v29 = vadd.f32 %v899_v59, %v890_v17  ;;  %v923_v3 = vadd.f32 %v915_v62, %v906_v53  ;;  %v695_v24 = vadd.f32 %v687_v61, %v660_v43  ;;  %v1034_v2 = vadd.f32 %v3206_v6, %v1022_v38 }
 0x10e   : > { %v966_v23 = vmul.f32 %v4171_v21, %v957_v26  ;;  %v711_v0 = vadd.f32 %v703_v55, %v694_v63  ;;  %v720_v40 = vmul.f32 %v4173_v7, %v2983_v19  ;;  %v721_v13 = vmul.f32 %v4173_v7, %v3055_v35 }
 0x10f   : > { %v924_v9 = vadd.f32 %v916_v11, %v907_v29  ;;  %v948_v30 = vadd.f32 %v940_v18, %v923_v3  ;;  %v712_v50 = vadd.f32 %v704_v27, %v695_v24  ;;  %v990_v43 = vmul.f32 %v4162_v14, %v981_v46 }
 0x110   : > { %v991_v16 = vmul.f32 %v4162_v14, %v982_v31  ;;  %v728_v48 = vadd.f32 %v720_v40, %v711_v0  ;;  %v737_v57 = vmul.f32 %v4174_v37, %v3055_v35  ;;  %v738_v19 = vmul.f32 %v4174_v37, %v3096_v36 }
 0x111   : > { %v949_v56 = vadd.f32 %v941_v15, %v924_v9  ;;  %v973_v63 = vadd.f32 %v965_v45, %v948_v30  ;;  %v729_v38 = vadd.f32 %v721_v13, %v712_v50  ;;  %v1040_v59 = vpack.c.bf16 %v1034_v2, %v1033_v42 }
 0x112   : > { %v1015_v62 = vmul.f32 %v4163_v10, %v1006_v1  ;;  %v745_v11 = vadd.f32 %v737_v57, %v728_v48  ;;  %v754_v17 = vmul.f32 %v2709_v28, %v3096_v36  ;;  %v755_v35 = vmul.f32 %v2709_v28, %v3141_v49  ;;  %v875_v48 = vld [vmem:[#allocation2 + $0x141] sm:$0xff] }
 0x113   : > { %v974_v53 = vadd.f32 %v966_v23, %v949_v56  ;;  %v998_v18 = vadd.f32 %v990_v43, %v973_v63  ;;  %v746_v26 = vadd.f32 %v738_v19, %v729_v38  ;;  %v1016_v12 = vmul.f32 %v4163_v10, %v1007_v20  ;;  %v677_v23 = vld [vmem:[#allocation2 + $0x188] sm:$0xff]  ;;  %v933_v38 = vld [vmem:[#allocation2 + $0x112] sm:$0xff] }
 0x114   : > { %v762_v61 = vadd.f32 %v754_v17, %v745_v11  ;;  %v771_v15 = vmul.f32 %v2718_v33, %v3141_v49  ;;  %v772_v42 = vmul.f32 %v2718_v33, %v3174_v32  ;;  %v789_v55 = vmul.f32 %v2744_v47, %v3076_v25 }
 0x115   : > { %v999_v45 = vadd.f32 %v991_v16, %v974_v53  ;;  %v1023_v34 = vadd.f32 %v1015_v62, %v998_v18  ;;  %v763_v36 = vadd.f32 %v755_v35, %v746_v26  ;;  %v788_v28 = vmul.f32 %v2744_v47, %v3174_v32  ;;  %v678_v32 = vld [vmem:[#allocation2 + $0x1a0] sm:$0xff]  ;;  %v874_v16 = vld [vmem:[#allocation2 + $0x129] sm:$0xff] }
 0x116   : > { %2226 = vmatmul.msk.bf16.gmra.mxu1 %vm332_vm1, %v1040_v59  ;;  %v779_v29 = vadd.f32 %v771_v15, %v762_v61  ;;  %v805_v3 = vmul.f32 %v2764_v58, %v3076_v25  ;;  %v806_v33 = vmul.f32 %v2764_v58, %v3228_v52  ;;  %v822_v24 = vmul.f32 %v2791_v5, %v3228_v52  ;;  %v934_v62 = vld [vmem:[#allocation2 + $0x12a] sm:$0xff] }
 0x117   : > { %v1024_v46 = vadd.f32 %v1016_v12, %v999_v45  ;;  %v780_v49 = vadd.f32 %v772_v42, %v763_v36  ;;  %v1035_v27 = vadd.f32 %v3206_v6, %v1023_v34  ;;  %v823_v47 = vmul.f32 %v2791_v5, %v3231_v54  ;;  %v984_v12 = vld [vmem:[#allocation2 + $0x12c] sm:$0xff]  ;;  %v1008_v42 = vld [vmem:[#allocation2 + $0x115] sm:$0xff] }
 0x118   : > { %v796_v31 = vadd.f32 %v788_v28, %v779_v29  ;;  %v839_v7 = vmul.f32 %v4129_v60, %v3231_v54  ;;  %v840_v9 = vmul.f32 %v4129_v60, %v677_v23  ;;  %v856_v52 = vmul.f32 %v2884_v8, %v677_v23  ;;  %v1009_v34 = vld [vmem:[#allocation2 + $0x12d] sm:$0xff] }
 0x119   : > { %v1036_v2 = vadd.f32 %v3206_v6, %v1024_v46  ;;  %v797_v0 = vadd.f32 %v789_v55, %v780_v49  ;;  %v857_v50 = vmul.f32 %v2884_v8, %v678_v32  ;;  %v883_v54 = vmul.f32 %v4165_v39, %v3253_v22  ;;  %v958_v22 = vld [vmem:[#allocation2 + $0x113] sm:$0xff]  ;;  %v2349_v23 = vld [vmem:[%s4012_s7 + $0x8] sm:$0xff] }
 0x11a   : > { %v813_v25 = vadd.f32 %v805_v3, %v796_v31  ;;  %v884_v60 = vmul.f32 %v4165_v39, %v3255_v41  ;;  %v900_v56 = vmul.f32 %v4167_v4, %v3255_v41  ;;  %v901_v20 = vmul.f32 %v4167_v4, %v874_v16  ;;  %v959_v39 = vld [vmem:[#allocation2 + $0x12b] sm:$0xff]  ;;  %v983_v41 = vld [vmem:[#allocation2 + $0x114] sm:$0xff] }
 0x11b   : > { %v1041_v40 = vpack.c.bf16 %v1036_v2, %v1035_v27  ;;  %v814_v58 = vadd.f32 %v806_v33, %v797_v0  ;;  %v918_v8 = vmul.f32 %v4168_v44, %v875_v48  ;;  %v917_v59 = vmul.f32 %v4168_v44, %v874_v16  ;;  %v2351_v27 = vld [vmem:[%s4012_s7 + $0x18] sm:$0xff]  ;;  %v2350_v2 = vld [vmem:[%s4012_s7 + $0x10] sm:$0xff]  ;;  %v3367_v0 = vld [vmem:[%s4011_s6] ss:$0 sm:$0xff] }
 0x11c   : > { %v830_v30 = vadd.f32 %v822_v24, %v813_v25  ;;  %v942_v53 = vmul.f32 %v4169_v51, %v933_v38  ;;  %v943_v26 = vmul.f32 %v4169_v51, %v934_v62  ;;  %v967_v4 = vmul.f32 %v4171_v21, %v958_v22  ;;  %v2355_v24 = vld [vmem:[%s4012_s7 + $0x38] sm:$0xff]  ;;  %v2348_v25 = vld [vmem:[%s4012_s7] sm:$0xff] }
 0x11d   : > { %2227 = vmatmul.msk.bf16.vlgmr.msra.gmra.mxu3 %vm332_vm1, %v1041_v40  ;;  %v831_v1 = vadd.f32 %v823_v47, %v814_v58  ;;  %v968_v15 = vmul.f32 %v4171_v21, %v959_v39  ;;  %v992_v45 = vmul.f32 %v4162_v14, %v983_v41  ;;  %v993_v55 = vmul.f32 %v4162_v14, %v984_v12  ;;  %v2354_v14 = vld [vmem:[%s4012_s7 + $0x30] sm:$0xff] }
 0x11e   : > { %v847_v13 = vadd.f32 %v839_v7, %v830_v30  ;;  %v1017_v28 = vmul.f32 %v4163_v10, %v1008_v42  ;;  %v1018_v3 = vmul.f32 %v4163_v10, %v1009_v34  ;;  %1248 = vmatpush.bf16.msra.mxu2 %v2355_v24  ;;  %v2353_v10 = vld [vmem:[%s4012_s7 + $0x28] sm:$0xff] }
 0x11f   : > { %v848_v43 = vadd.f32 %v840_v9, %v831_v1 }
 0x120   : > { %v864_v5 = vadd.f32 %v856_v52, %v847_v13 }
 0x121   : > { %v865_v37 = vadd.f32 %v857_v50, %v848_v43 }
 0x122   : > { %v891_v57 = vadd.f32 %v883_v54, %v864_v5  ;;  %1249 = vmatpush.bf16.msra.mxu2 %v2354_v14 }
 0x123   : > { %v892_v63 = vadd.f32 %v884_v60, %v865_v37 }
 0x124   : > { %v908_v19 = vadd.f32 %v900_v56, %v891_v57 }
 0x125   : > { %v909_v11 = vadd.f32 %v901_v20, %v892_v63 }
 0x126   : > { %v925_v17 = vadd.f32 %v917_v59, %v908_v19  ;;  %1250 = vmatpush.bf16.msra.mxu2 %v2353_v10 }
 0x127   : > { %v926_v18 = vadd.f32 %v918_v8, %v909_v11 }
 0x128   : > { %v950_v35 = vadd.f32 %v942_v53, %v925_v17 }
 0x129   : > { %v951_v61 = vadd.f32 %v943_v26, %v926_v18 }
 0x12a   : > { %v975_v44 = vadd.f32 %v967_v4, %v950_v35 }
 0x12b   : > { %v976_v36 = vadd.f32 %v968_v15, %v951_v61 }
 0x12c   : > { %v1000_v29 = vadd.f32 %v992_v45, %v975_v44 }
 0x12d   : > { %v1001_v51 = vadd.f32 %v993_v55, %v976_v36 }
 0x12e   : > { %v1025_v46 = vadd.f32 %v1017_v28, %v1000_v29 }
 0x12f   : > { %v1026_v49 = vadd.f32 %v1018_v3, %v1001_v51 }
 0x130   : > { %v1037_v33 = vadd.f32 %v3206_v6, %v1025_v46 }
 0x131   : > { %v1038_v21 = vadd.f32 %v3206_v6, %v1026_v49  ;;  %v2352_v6 = vld [vmem:[%s4012_s7 + $0x20] sm:$0xff] }
 0x132   : > { %1251 = vmatpush.bf16.msra.mxu2 %v2352_v6 }
 0x133   : > { %v1042_v31 = vpack.c.bf16 %v1038_v21, %v1037_v33 }
 0x135   : > { %2228 = vmatmul.msk.bf16.gmra.mxu3 %vm332_vm1, %v1042_v31 }
 0x136   : > { %1252 = vmatpush.bf16.msra.mxu2 %v2351_v27 }
 0x13a   : > { %1253 = vmatpush.bf16.msra.mxu2 %v2350_v2 }
 0x13e   : > { %1254 = vmatpush.bf16.msra.mxu2 %v2349_v23 }
 0x142   : > { %1255 = vmatpush.bf16.msra.mxu2 %v2348_v25 }
 0x183   : > { %v1084_v47 = vpop.f32.mrf.mxu1 }
 0x184   : > { %v1085_v32 = vadd.f32 %v3367_v0, %v1084_v47 }
 0x186   : > { %v1112_v7 = vmul.f32 0.044715, %v1085_v32  ;;  %v1104_v59 = vmul.f32 0.5, %v1085_v32 }
 0x188   : > { %v1120_v40 = vmul.f32 %v1112_v7, %v1085_v32 }
 0x18a   : > { %v1128_v58 = vmul.f32 %v1120_v40, %v1085_v32 }
 0x18b   : > { %v1086_v9 = vpop.f32.mrf.mxu1 }
 0x18c   : > { %v1087_v30 = vadd.f32 %v3367_v0, %v1086_v9  ;;  %v1136_v52 = vadd.f32 %v1128_v58, %v1085_v32 }
 0x18e   : > { %v1113_v1 = vmul.f32 0.044715, %v1087_v30  ;;  %v1144_v13 = vmul.f32 0.7978846, %v1136_v52  ;;  %v1105_v62 = vmul.f32 0.5, %v1087_v30 }
 0x190   : > { %v1121_v50 = vmul.f32 %v1113_v1, %v1087_v30  ;;  %2420 = vtanh.f32 %v1144_v13 }
 0x192   : > { %v1129_v43 = vmul.f32 %v1121_v50, %v1087_v30 }
 0x193   : > { %v1089_v5 = vpop.f32.mrf.mxu1 }
 0x194   : > { %v1090_v16 = vadd.f32 %v3367_v0, %v1089_v5  ;;  %v1137_v48 = vadd.f32 %v1129_v43, %v1087_v30 }
 0x196   : > { %v1145_v54 = vmul.f32 0.7978846, %v1137_v48  ;;  %v1114_v37 = vmul.f32 0.044715, %v1090_v16  ;;  %v2421_v60 = vpop.eup %2420  ;;  %v1106_v46 = vmul.f32 0.5, %v1090_v16 }
 0x197   : > { %v1160_v20 = vadd.f32 1.0, %v2421_v60 }
 0x198   : > { %2422 = vtanh.f32 %v1145_v54  ;;  %v1122_v63 = vmul.f32 %v1114_v37, %v1090_v16 }
 0x199   : > { %v1168_v39 = vmul.f32 %v1160_v20, %v1104_v59 }
 0x19a   : > { %v1130_v19 = vmul.f32 %v1122_v63, %v1090_v16 }
 0x19b   : > { %v1091_v57 = vpop.f32.mrf.mxu1 }
 0x19c   : > { %v1092_v56 = vadd.f32 %v3367_v0, %v1091_v57  ;;  %v1138_v17 = vadd.f32 %v1130_v19, %v1090_v16 }
 0x19e   : > { %v2423_v8 = vpop.eup %2422  ;;  %v1115_v38 = vmul.f32 0.044715, %v1092_v56  ;;  %v1146_v35 = vmul.f32 0.7978846, %v1138_v17  ;;  %v1107_v49 = vmul.f32 0.5, %v1092_v56 }
 0x19f   : > { %v1161_v11 = vadd.f32 1.0, %v2423_v8 }
 0x1a0   : > { %v1123_v22 = vmul.f32 %v1115_v38, %v1092_v56  ;;  %v1094_v53 = vpop.f32.mrf.mxu3  ;;  %2424 = vtanh.f32 %v1146_v35  ;;  %v4177_v35 = vld [vmem:[#allocation11_spill] sm:$0xff] }
 0x1a1   : > { %v1169_v18 = vmul.f32 %v1161_v11, %v1105_v62  ;;  %v1095_v26 = vadd.f32 %v3367_v0, %v1094_v53 }
 0x1a2   : > { %v1131_v41 = vmul.f32 %v1123_v22, %v1092_v56  ;;  %v3383_v22 = vld [vmem:[%s4013_s8] ss:$0 sm:$0xff] }
 0x1a3   : > { %v1176_v4 = vpack.c.bf16 %v1169_v18, %v1168_v39  ;;  %v1116_v12 = vmul.f32 0.044715, %v1095_v26  ;;  %v1108_v30 = vmul.f32 0.5, %v1095_v26  ;;  %v4175_v39 = vld [vmem:[#allocation6_spill] sm:$0xff] }
 0x1a4   : > { %v1139_v61 = vadd.f32 %v1131_v41, %v1092_v56 }
 0x1a5   : > { %1256 = vmatmul.bf16.vlgmr.msra.gmra.mxu2 %v1176_v4  ;;  %v1124_v42 = vmul.f32 %v1116_v12, %v1095_v26 }
 0x1a6   : > { %v1147_v15 = vmul.f32 0.7978846, %v1139_v61  ;;  %v2425_v34 = vpop.eup %2424 }
 0x1a7   : > { %v1132_v44 = vmul.f32 %v1124_v42, %v1095_v26  ;;  %v1162_v28 = vadd.f32 1.0, %v2425_v34  ;;  %v4181_v34 = vld [vmem:[#allocation36_spill] sm:$0xff] }
 0x1a8   : > { %2426 = vtanh.f32 %v1147_v15  ;;  %v1096_v45 = vpop.f32.mrf.mxu3  ;;  %v4179_v15 = vld [vmem:[#allocation19_spill] sm:$0xff] }
 0x1a9   : > { %v1097_v36 = vadd.f32 %v3367_v0, %v1096_v45  ;;  %v1140_v29 = vadd.f32 %v1132_v44, %v1095_v26  ;;  %v1170_v24 = vmul.f32 %v1162_v28, %v1106_v46  ;;  %v2356_v46 = vld [vmem:[%s4010_s5 + $0x10] sm:$0xff] }
 0x1ab   : > { %v1117_v55 = vmul.f32 0.044715, %v1097_v36  ;;  %v1148_v31 = vmul.f32 0.7978846, %v1140_v29  ;;  %v1109_v7 = vmul.f32 0.5, %v1097_v36 }
 0x1ad   : > { %v1125_v3 = vmul.f32 %v1117_v55, %v1097_v36  ;;  %2428 = vtanh.f32 %v1148_v31  ;;  %v2357_v55 = vld [vmem:[%s4010_s5 + $0x18] sm:$0xff] }
 0x1ae   : > { %v2427_v51 = vpop.eup %2426  ;;  %1882 = vmatpush.bf16.msrb.mxu3 %v2357_v55  ;;  %v3472_v55 = vld [vmem:[#allocation2 + $0x38] sm:$0xff] }
 0x1af   : > { %v1163_v33 = vadd.f32 1.0, %v2427_v51  ;;  %v1133_v21 = vmul.f32 %v1125_v3, %v1097_v36  ;;  %v4183_v51 = vld [vmem:[#allocation45_spill] sm:$0xff] }
 0x1b1   : > { %v1171_v14 = vmul.f32 %v1163_v33, %v1107_v49  ;;  %v1141_v10 = vadd.f32 %v1133_v21, %v1097_v36  ;;  %v2261_v49 = vld [vmem:[%s4008_s3 + $0x20] sm:$0xff] }
 0x1b2   : > { %v3422_v31 = vperm.slane %v2261_v49, 0  ;;  %1883 = vmatpush.bf16.msrb.mxu3 %v2356_v46 }
 0x1b3   : > { %v1177_v6 = vpack.c.bf16 %v1171_v14, %v1170_v24  ;;  %v1149_v27 = vmul.f32 0.7978846, %v1141_v10  ;;  %v2429_v23 = vpop.eup %2428  ;;  %v3424_v24 = vperm.slane %v2261_v49, 1  ;;  %v3426_v14 = vperm.slane %v2261_v49, 2 }
 0x1b4   : > { %v1164_v40 = vadd.f32 1.0, %v2429_v23  ;;  %4185 = vst [vmem:[#allocation32_spill] sm:$0xff] %v3422_v31 }
 0x1b5   : > { %1261 = vmatmul.bf16.gmra.mxu2 %v1177_v6  ;;  %2430 = vtanh.f32 %v1149_v27 }
 0x1b6   : > { %v1172_v13 = vmul.f32 %v1164_v40, %v1108_v30  ;;  %v3436_v30 = vperm.slane %v2261_v49, 4 }
 0x1b8   : > { %v1099_v2 = vpop.f32.mrf.mxu3 }
 0x1b9   : > { %v1100_v47 = vadd.f32 %v3367_v0, %v1099_v2  ;;  %v3430_v2 = vperm.slane %v2261_v49, 3 }
 0x1bb   : > { %v2431_v32 = vpop.eup %2430  ;;  %v1118_v25 = vmul.f32 0.044715, %v1100_v47  ;;  %v1110_v38 = vmul.f32 0.5, %v1100_v47 }
 0x1bc   : > { %v1165_v58 = vadd.f32 1.0, %v2431_v32 }
 0x1bd   : > { %v1126_v9 = vmul.f32 %v1118_v25, %v1100_v47 }
 0x1be   : > { %v1173_v52 = vmul.f32 %v1165_v58, %v1109_v7 }
 0x1bf   : > { %v1134_v1 = vmul.f32 %v1126_v9, %v1100_v47  ;;  %v1398_v9 = vld [vmem:[#allocation2 + $0x67] sm:$0xff] }
 0x1c0   : > { %v1101_v50 = vpop.f32.mrf.mxu3  ;;  %v1178_v16 = vpack.c.bf16 %v1173_v52, %v1172_v13 }
 0x1c1   : > { %v1102_v43 = vadd.f32 %v3367_v0, %v1101_v50  ;;  %v1142_v5 = vadd.f32 %v1134_v1, %v1100_v47 }
 0x1c3   : > { %v1119_v48 = vmul.f32 0.044715, %v1102_v43  ;;  %v1150_v37 = vmul.f32 0.7978846, %v1142_v5  ;;  %v1111_v19 = vmul.f32 0.5, %v1102_v43 }
 0x1c5   : > { %1266 = vmatmul.bf16.gmra.mxu2 %v1178_v16  ;;  %v1127_v54 = vmul.f32 %v1119_v48, %v1102_v43  ;;  %2432 = vtanh.f32 %v1150_v37 }
 0x1c7   : > { %v1135_v60 = vmul.f32 %v1127_v54, %v1102_v43 }
 0x1c9   : > { %v1143_v57 = vadd.f32 %v1135_v60, %v1102_v43 }
 0x1cb   : > { %v1151_v56 = vmul.f32 0.7978846, %v1143_v57  ;;  %v2433_v63 = vpop.eup %2432  ;;  %v1409_v57 = vmul.f32 %v3436_v30, %v1398_v9 }
 0x1cc   : > { %v1166_v20 = vadd.f32 1.0, %v2433_v63  ;;  %v4186_v63 = vld [vmem:[#allocation53_spill] sm:$0xff] }
 0x1cd   : > { %2434 = vtanh.f32 %v1151_v56  ;;  %v3444_v56 = vperm.slane %v2261_v49, 5 }
 0x1ce   : > { %v1174_v62 = vmul.f32 %v1166_v20, %v1110_v38  ;;  %v3451_v38 = vperm.slane %v2261_v49, 6 }
 0x1d3   : > { %v2435_v8 = vpop.eup %2434 }
 0x1d4   : > { %v1167_v59 = vadd.f32 1.0, %v2435_v8 }
 0x1d6   : > { %v1175_v11 = vmul.f32 %v1167_v59, %v1111_v19  ;;  %v2262_v19 = vld [vmem:[%s4008_s3 + $0x28] sm:$0xff] }
 0x1d7   : > { %v3497_v9 = vperm.slane %v2262_v19, 5 }
 0x1d8   : > { %v1179_v0 = vpack.c.bf16 %v1175_v11, %v1174_v62 }
 0x1da   : > { %1271 = vmatmul.bf16.gmra.mxu2 %v1179_v0 }
 0x228   : > { %v1257_v17 = vpop.f32.mrf.mxu2 }
 0x229   : > { %v1258_v53 = vadd.f32 %v3383_v22, %v1257_v17  ;;  %v1459_v17 = vld [vmem:[#allocation2 + $0x8] sm:$0xff] }
 0x22b   : > { %v3387_v18 = vadd.f32 %v1258_v53, %v4175_v39  ;;  %v3461_v53 = vperm.slane %v2261_v49, 7 }
 0x22d   : > { %4176 = vst [vmem:[#allocation28_spill] sm:$0xff] %v3387_v18 }
 0x22e   : > { %1285 = vst.msk [vmem:[#allocation2 + $0x80] sm:$0xff] %vm332_vm1, %v3387_v18 }
 0x230   : > { %v1259_v26 = vpop.f32.mrf.mxu2 }
 0x231   : > { %v1260_v41 = vadd.f32 %v3383_v22, %v1259_v26 }
 0x233   : > { %v3393_v4 = vadd.f32 %v1260_v41, %v4177_v35 }
 0x235   : > { %4178 = vst [vmem:[#allocation27_spill] sm:$0xff] %v3393_v4  ;;  %v1298_v33 = vld [vmem:[#allocation2 + $0x7b] sm:$0xff] }
 0x236   : > { %1286 = vst.msk [vmem:[#allocation2 + $0x98] sm:$0xff] %vm332_vm1, %v3393_v4  ;;  %v1323_v10 = vld [vmem:[#allocation2 + $0x7c] sm:$0xff]  ;;  %v1307_v23 = vmul.f32 %v3422_v31, %v1298_v33  ;;  %v3478_v33 = vld [vmem:[#allocation2 + $0x50] sm:$0xff] }
 0x237   : > { %v1348_v27 = vld [vmem:[#allocation2 + $0x7d] sm:$0xff]  ;;  %v1332_v32 = vmul.f32 %v3424_v24, %v1323_v10 }
 0x238   : > { %v1262_v12 = vpop.f32.mrf.mxu2  ;;  %v1373_v40 = vld [vmem:[#allocation2 + $0x7e] sm:$0xff]  ;;  %v1357_v13 = vmul.f32 %v3426_v14, %v1348_v27 }
 0x239   : > { %v1263_v61 = vadd.f32 %v3383_v22, %v1262_v12  ;;  %v1340_v1 = vadd.f32 %v1332_v32, %v1307_v23  ;;  %v1382_v16 = vmul.f32 %v3430_v2, %v1373_v40  ;;  %v1399_v54 = vld [vmem:[#allocation2 + $0x7f] sm:$0xff]  ;;  %v3487_v23 = vperm.slane %v2262_v19, 3 }
 0x23a   : > { %v1410_v0 = vmul.f32 %v3436_v30, %v1399_v54  ;;  %v1426_v41 = vmul.f32 %v3444_v56, %v1399_v54  ;;  %v3491_v32 = vld [vmem:[#allocation2 + $0x80] sm:$0xff]  ;;  %v3493_v40 = vperm.slane %v2262_v19, 2  ;;  %v3511_v54 = vld [vmem:[%s4008_s3 + $0x30] sm:$0xff] }
 0x23b   : > { %v3399_v42 = vadd.f32 %v1263_v61, %v4179_v15  ;;  %v1365_v37 = vadd.f32 %v1357_v13, %v1340_v1  ;;  %v1460_v15 = vld [vmem:[#allocation2 + $0x20] sm:$0xff] }
 0x23d   : > { %4180 = vst [vmem:[#allocation21_spill] sm:$0xff] %v3399_v42  ;;  %v1299_v21 = vld [vmem:[#allocation2 + $0x93] sm:$0xff]  ;;  %v1390_v59 = vadd.f32 %v1382_v16, %v1365_v37 }
 0x23e   : > { %1287 = vst.msk [vmem:[#allocation2 + $0xb0] sm:$0xff] %vm332_vm1, %v3399_v42  ;;  %v1324_v6 = vld [vmem:[#allocation2 + $0x94] sm:$0xff]  ;;  %v1308_v47 = vmul.f32 %v3422_v31, %v1299_v21 }
 0x23f   : > { %v1333_v25 = vmul.f32 %v3424_v24, %v1324_v6  ;;  %v1349_v7 = vld [vmem:[#allocation2 + $0x95] sm:$0xff]  ;;  %v1417_v39 = vadd.f32 %v1409_v57, %v1390_v59  ;;  %v1547_v57 = vmul.f32 %v3487_v23, %v3491_v32 }
 0x240   : > { %v1264_v44 = vpop.f32.mrf.mxu2  ;;  %v1374_v58 = vld [vmem:[#allocation2 + $0x96] sm:$0xff]  ;;  %v1358_v43 = vmul.f32 %v3426_v14, %v1349_v7 }
 0x241   : > { %v1265_v45 = vadd.f32 %v3383_v22, %v1264_v44  ;;  %v1341_v50 = vadd.f32 %v1333_v25, %v1308_v47  ;;  %v1383_v48 = vmul.f32 %v3430_v2, %v1374_v58  ;;  %v3449_v8 = vld [vmem:[#allocation2 + $0x97] sm:$0xff]  ;;  %v3470_v44 = vperm.slane %v2262_v19, 0  ;;  %v3489_v47 = vld [vmem:[#allocation2 + $0x68] sm:$0xff] }
 0x242   : > { %v1427_v35 = vmul.f32 %v3444_v56, %v3449_v8  ;;  %v1443_v12 = vmul.f32 %v3451_v38, %v3449_v8  ;;  %v3495_v58 = vperm.slane %v2262_v19, 4  ;;  %v1530_v16 = vmul.f32 %v3493_v40, %v3489_v47 }
 0x243   : > { %v3405_v36 = vadd.f32 %v1265_v45, %v4181_v34  ;;  %v1366_v60 = vadd.f32 %v1358_v43, %v1341_v50  ;;  %v1434_v45 = vadd.f32 %v1426_v41, %v1417_v39  ;;  %v1495_v21 = vmul.f32 %v3470_v44, %v1460_v15  ;;  %v3501_v50 = vld [vmem:[#allocation2 + $0x98] sm:$0xff]  ;;  %v4191_v41 = vld [vmem:[#allocation26_spill] sm:$0xff] }
 0x244   : > { %v1496_v10 = vmul.f32 %v3470_v44, %v3472_v55  ;;  %v1563_v39 = vmul.f32 %v3495_v58, %v3491_v32 }
 0x245   : > { %4182 = vst [vmem:[#allocation47_spill] sm:$0xff] %v3405_v36  ;;  %v1391_v62 = vadd.f32 %v1383_v48, %v1366_v60  ;;  %v3456_v11 = vld [vmem:[#allocation2 + $0xaf] sm:$0xff]  ;;  %v1451_v46 = vadd.f32 %v1443_v12, %v1434_v45  ;;  %v1546_v60 = vmul.f32 %v3487_v23, %v3489_v47 }
 0x246   : > { %1288 = vst.msk [vmem:[#allocation2 + $0xc8] sm:$0xff] %vm332_vm1, %v3405_v36  ;;  %v1444_v61 = vmul.f32 %v3451_v38, %v3456_v11  ;;  %v3513_v37 = vld [vmem:[#allocation2 + $0xb0] sm:$0xff] }
 0x247   : > { %v1418_v26 = vadd.f32 %v1410_v0, %v1391_v62  ;;  %v1375_v42 = vld [vmem:[#allocation2 + $0xae] sm:$0xff] }
 0x248   : > { %v1267_v29 = vpop.f32.mrf.mxu2 }
 0x249   : > { %v1268_v28 = vadd.f32 %v3383_v22, %v1267_v29  ;;  %v1435_v34 = vadd.f32 %v1427_v35, %v1418_v26  ;;  %v1478_v29 = vmul.f32 %v3461_v53, %v1459_v17  ;;  %v3528_v26 = vperm.slane %v3511_v54, 0 }
 0x24b   : > { %v3414_v3 = vadd.f32 %v1268_v28, %v4183_v51  ;;  %v1479_v28 = vmul.f32 %v3461_v53, %v1460_v15  ;;  %v3476_v51 = vperm.slane %v2262_v19, 1  ;;  %v1452_v49 = vadd.f32 %v1444_v61, %v1435_v34  ;;  %4190 = vst [vmem:[#allocation34_spill] sm:$0xff] %v3528_v26 }
 0x24c   : > { %v1486_v25 = vadd.f32 %v1478_v29, %v1451_v46  ;;  %v1580_v61 = vmul.f32 %v3497_v9, %v3501_v50  ;;  %v3540_v15 = vperm.slane %v3511_v54, 1  ;;  %v1581_v29 = vmul.f32 %v3497_v9, %v3513_v37  ;;  %v1664_v46 = vld [vmem:[#allocation2 + $0x69] sm:$0xff] }
 0x24d   : > { %4184 = vst [vmem:[#allocation35_spill] sm:$0xff] %v3414_v3  ;;  %v1512_v6 = vmul.f32 %v3476_v51, %v3472_v55  ;;  %v1513_v27 = vmul.f32 %v3476_v51, %v3478_v33  ;;  %v1487_v7 = vadd.f32 %v1479_v28, %v1452_v49  ;;  %v3521_v59 = vld [vmem:[#allocation2 + $0xc8] sm:$0xff] }
 0x24e   : > { %1289 = vst.msk [vmem:[#allocation2 + $0xe0] sm:$0xff] %vm332_vm1, %v3414_v3  ;;  %v1503_v13 = vadd.f32 %v1495_v21, %v1486_v25  ;;  %v1300_v49 = vld [vmem:[#allocation2 + $0xab] sm:$0xff]  ;;  %v3557_v25 = vperm.slane %v3511_v54, 2 }
 0x24f   : > { %v1504_v43 = vadd.f32 %v1496_v10, %v1487_v7  ;;  %v1325_v7 = vld [vmem:[#allocation2 + $0xac] sm:$0xff] }
 0x250   : > { %v1269_v52 = vpop.f32.mrf.mxu2  ;;  %v1520_v0 = vadd.f32 %v1512_v6, %v1503_v13  ;;  %4193 = vst [vmem:[#allocation23_spill] sm:$0xff] %v3557_v25  ;;  %v1376_v4 = vld [vmem:[#allocation2 + $0xc6] sm:$0xff] }
 0x251   : > { %v1270_v5 = vadd.f32 %v3383_v22, %v1269_v52  ;;  %v3499_v52 = vperm.slane %v2262_v19, 6  ;;  %v1521_v17 = vadd.f32 %v1513_v27, %v1504_v43  ;;  %v3554_v27 = vld [vmem:[#allocation2 + $0x81] sm:$0xff] }
 0x253   : > { %v3447_v20 = vadd.f32 %v1270_v5, %v4186_v63  ;;  %4188 = vst [vmem:[#allocation22_spill] sm:$0xff] %v3499_v52  ;;  %v1529_v5 = vmul.f32 %v3493_v40, %v3478_v33  ;;  %v3519_v63 = vperm.slane %v2262_v19, 7  ;;  %v1564_v19 = vmul.f32 %v3495_v58, %v3501_v50 }
 0x254   : > { %v1538_v34 = vadd.f32 %v1530_v16, %v1521_v17  ;;  %v1597_v28 = vmul.f32 %v3499_v52, %v3513_v37  ;;  %v1598_v21 = vmul.f32 %v3499_v52, %v3521_v59  ;;  %v1351_v17 = vld [vmem:[#allocation2 + $0xc5] sm:$0xff] }
 0x255   : > { %4187 = vst [vmem:[#allocation20_spill] sm:$0xff] %v3447_v20  ;;  %v3523_v62 = vld [vmem:[#allocation2 + $0xe0] sm:$0xff]  ;;  %v1537_v45 = vadd.f32 %v1529_v5, %v1520_v0  ;;  %v1614_v10 = vmul.f32 %v3519_v63, %v3521_v59 }
 0x256   : > { %1290 = vst.msk [vmem:[#allocation2 + $0xf8] sm:$0xff] %vm332_vm1, %v3447_v20  ;;  %v1615_v6 = vmul.f32 %v3519_v63, %v3523_v62  ;;  %v1555_v43 = vadd.f32 %v1547_v57, %v1538_v34  ;;  %v1631_v5 = vmul.f32 %v3528_v26, %v3523_v62  ;;  %v1326_v0 = vld [vmem:[#allocation2 + $0xc4] sm:$0xff]  ;;  %v1309_v20 = vmul.f32 %v3422_v31, %v1300_v49 }
 0x257   : > { %4189 = vst [vmem:[#allocation31_spill] sm:$0xff] %v3519_v63  ;;  %v1554_v13 = vadd.f32 %v1546_v60, %v1537_v45  ;;  %v1334_v34 = vmul.f32 %v3424_v24, %v1325_v7  ;;  %v1335_v36 = vmul.f32 %v3424_v24, %v1326_v0  ;;  %v1360_v49 = vmul.f32 %v3426_v14, %v1351_v17 }
 0x258   : > { %v1572_v45 = vadd.f32 %v1564_v19, %v1555_v43  ;;  %v4194_v19 = vld [vmem:[#allocation30_spill] sm:$0xff]  ;;  %v3579_v7 = vperm.slane %v3511_v54, 3  ;;  %v1384_v43 = vmul.f32 %v3430_v2, %v1375_v42  ;;  %v1412_v42 = vmul.f32 %v3436_v30, %v3456_v11 }
 0x259   : > { %v1571_v57 = vadd.f32 %v1563_v39, %v1554_v13 }
 0x25b   : > { %v1588_v63 = vadd.f32 %v1580_v61, %v1571_v57  ;;  %v3585_v61 = vld [vmem:[#allocation2 + $0xc7] sm:$0xff]  ;;  %v1428_v57 = vmul.f32 %v3444_v56, %v3456_v11  ;;  %v1481_v11 = vmul.f32 %v3461_v53, %v3478_v33 }
 0x25d   : > { %v1272_v1 = vpop.f32.mrf.mxu2  ;;  %v3533_v12 = vld [vmem:[#allocation2 + $0xf8] sm:$0xff] }
 0x25e   : > { %v1273_v48 = vadd.f32 %v3383_v22, %v1272_v1  ;;  %v1350_v1 = vld [vmem:[#allocation2 + $0xad] sm:$0xff]  ;;  %v1632_v16 = vmul.f32 %v3528_v26, %v3533_v12  ;;  %v1676_v26 = vmul.f32 %v3557_v25, %v3554_v27 }
 0x260   : > { %v3531_v35 = vadd.f32 %v1273_v48, %v4191_v41  ;;  %v1301_v48 = vld [vmem:[#allocation2 + $0xc3] sm:$0xff]  ;;  %v1648_v41 = vmul.f32 %v3540_v15, %v3533_v12 }
 0x261   : > { %v1310_v3 = vmul.f32 %v3422_v31, %v1301_v48  ;;  %v1589_v48 = vadd.f32 %v1581_v29, %v1572_v45  ;;  %v1342_v31 = vadd.f32 %v1334_v34, %v1309_v20  ;;  %v3598_v29 = vld [vmem:[#allocation2 + $0xdf] sm:$0xff] }
 0x262   : > { %4192 = vst [vmem:[#allocation44_spill] sm:$0xff] %v3531_v35 }
 0x263   : > { %1291 = vst.msk [vmem:[#allocation2 + $0x110] sm:$0xff] %vm332_vm1, %v3531_v35  ;;  %v1675_v35 = vmul.f32 %v3557_v25, %v1664_v46  ;;  %v1359_v46 = vmul.f32 %v3426_v14, %v1350_v1  ;;  %v1343_v39 = vadd.f32 %v1335_v36, %v1310_v3  ;;  %v1606_v1 = vadd.f32 %v1598_v21, %v1589_v48 }
 0x264   : > { %v3592_v36 = vperm.slane %v3511_v54, 4  ;;  %v3604_v21 = vperm.slane %v3511_v54, 6  ;;  %v1480_v48 = vmul.f32 %v3461_v53, %v3472_v55  ;;  %v1498_v55 = vmul.f32 %v3470_v44, %v3489_v47 }
 0x265   : > { %v1274_v60 = vpop.f32.mrf.mxu2  ;;  %v1367_v25 = vadd.f32 %v1359_v46, %v1342_v31  ;;  %v1368_v17 = vadd.f32 %v1360_v49, %v1343_v39  ;;  %v1623_v31 = vadd.f32 %v1615_v6, %v1606_v1  ;;  %v1445_v46 = vmul.f32 %v3451_v38, %v3585_v61 }
 0x266   : > { %v1275_v18 = vadd.f32 %v3383_v22, %v1274_v60  ;;  %v1385_v22 = vmul.f32 %v3430_v2, %v1376_v4  ;;  %v1605_v60 = vadd.f32 %v1597_v28, %v1588_v63  ;;  %v1411_v4 = vmul.f32 %v3436_v30, %v3449_v8 }
 0x267   : > { %v1392_v20 = vadd.f32 %v1384_v43, %v1367_v25  ;;  %v3601_v28 = vperm.slane %v3511_v54, 5  ;;  %v1429_v8 = vmul.f32 %v3444_v56, %v3585_v61  ;;  %v1640_v34 = vadd.f32 %v1632_v16, %v1623_v31  ;;  %v1725_v16 = vld [vmem:[#allocation2 + $0x82] sm:$0xff] }
 0x268   : > { %v3576_v13 = vadd.f32 %v1275_v18, %v4194_v19  ;;  %v1622_v3 = vadd.f32 %v1614_v10, %v1605_v60  ;;  %v1393_v63 = vadd.f32 %v1385_v22, %v1368_v17  ;;  %v3610_v10 = vld [vmem:[#allocation2 + $0x99] sm:$0xff]  ;;  %v1446_v49 = vmul.f32 %v3451_v38, %v3598_v29 }
 0x269   : > { %v1419_v6 = vadd.f32 %v1411_v4, %v1392_v20  ;;  %v1692_v60 = vmul.f32 %v3579_v7, %v3554_v27  ;;  %v1693_v1 = vmul.f32 %v3579_v7, %v3610_v10  ;;  %v1497_v17 = vmul.f32 %v3470_v44, %v3478_v33  ;;  %v3638_v33 = vld [vmem:[%s4008_s3 + $0x38] ss:$0 sm:$0xff] }
 0x26a   : > { %4195 = vst [vmem:[#allocation46_spill] sm:$0xff] %v3576_v13  ;;  %v3583_v0 = vld [vmem:[#allocation2 + $0x110] sm:$0xff]  ;;  %v1639_v45 = vadd.f32 %v1631_v5, %v1622_v3  ;;  %v1420_v25 = vadd.f32 %v1412_v42, %v1393_v63  ;;  %v1750_v42 = vld [vmem:[#allocation2 + $0x83] sm:$0xff]  ;;  %v1709_v20 = vmul.f32 %v3592_v36, %v3610_v10  ;;  %v1734_v63 = vmul.f32 %v3601_v28, %v1725_v16 }
 0x26b   : > { %1292 = vst.msk [vmem:[#allocation2 + $0x128] sm:$0xff] %vm332_vm1, %v3576_v13  ;;  %v1649_v18 = vmul.f32 %v3540_v15, %v3583_v0  ;;  %v3620_v5 = vld [vmem:[#allocation2 + $0xb1] sm:$0xff]  ;;  %v1436_v43 = vadd.f32 %v1428_v57, %v1419_v6 }
 0x26c   : > { %v1656_v39 = vadd.f32 %v1648_v41, %v1639_v45  ;;  %v1437_v22 = vadd.f32 %v1429_v8, %v1420_v25  ;;  %v1710_v27 = vmul.f32 %v3592_v36, %v3620_v5  ;;  %v1751_v8 = vld [vmem:[#allocation2 + $0x9b] sm:$0xff]  ;;  %v1800_v45 = vld [vmem:[#allocation2 + $0x85] sm:$0xff] }
 0x26d   : > { %v1657_v19 = vadd.f32 %v1649_v18, %v1640_v34  ;;  %v1726_v18 = vld [vmem:[#allocation2 + $0x9a] sm:$0xff]  ;;  %v1453_v3 = vadd.f32 %v1445_v46, %v1436_v43  ;;  %v1759_v46 = vmul.f32 %v3604_v21, %v1750_v42  ;;  %v1775_v43 = vld [vmem:[#allocation2 + $0x84] sm:$0xff] }
 0x26e   : > { %v1683_v4 = vadd.f32 %v1675_v35, %v1656_v39  ;;  %v1454_v31 = vadd.f32 %v1446_v49, %v1437_v22  ;;  %v1735_v25 = vmul.f32 %v3601_v28, %v1726_v18  ;;  %v3645_v49 = vperm.slane %v3511_v54, 7  ;;  %v1776_v22 = vld [vmem:[#allocation2 + $0x9c] sm:$0xff] }
 0x26f   : > { %v1684_v41 = vadd.f32 %v1676_v26, %v1657_v19  ;;  %v1514_v26 = vmul.f32 %v3476_v51, %v3489_v47  ;;  %v1488_v34 = vadd.f32 %v1480_v48, %v1453_v3  ;;  %v1515_v39 = vmul.f32 %v3476_v51, %v3491_v32  ;;  %v1801_v42 = vld [vmem:[#allocation2 + $0x9d] sm:$0xff] }
 0x270   : > { %v1700_v35 = vadd.f32 %v1692_v60, %v1683_v4  ;;  %v1489_v6 = vadd.f32 %v1481_v11, %v1454_v31  ;;  %v1760_v4 = vmul.f32 %v3604_v21, %v1751_v8  ;;  %v1809_v48 = vmul.f32 %v3638_v33, %v1800_v45 }
 0x271   : > { %v1701_v57 = vadd.f32 %v1693_v1, %v1684_v41  ;;  %v1505_v60 = vadd.f32 %v1497_v17, %v1488_v34  ;;  %v1531_v11 = vmul.f32 %v3493_v40, %v3491_v32  ;;  %v1532_v54 = vmul.f32 %v3493_v40, %v3501_v50 }
 0x272   : > { %v1717_v19 = vadd.f32 %v1709_v20, %v1700_v35  ;;  %v1506_v1 = vadd.f32 %v1498_v55, %v1489_v6  ;;  %v1784_v20 = vmul.f32 %v3645_v49, %v1775_v43  ;;  %v1785_v17 = vmul.f32 %v3645_v49, %v1776_v22  ;;  %v1302_v43 = vld [vmem:[#allocation2 + $0xdb] sm:$0xff]  ;;  %v1303_v22 = vld [vmem:[#allocation2 + $0xf3] sm:$0xff] }
 0x273   : > { %v1718_v16 = vadd.f32 %v1710_v27, %v1701_v57  ;;  %v1522_v3 = vadd.f32 %v1514_v26, %v1505_v60  ;;  %v1548_v55 = vmul.f32 %v3487_v23, %v3501_v50  ;;  %v1549_v27 = vmul.f32 %v3487_v23, %v3513_v37  ;;  %v3665_v26 = vld [vmem:[%s4009_s4 + $0x1] ss:$0 sm:$0xff] }
 0x274   : > { %v1742_v41 = vadd.f32 %v1734_v63, %v1717_v19  ;;  %v1523_v31 = vadd.f32 %v1515_v39, %v1506_v1  ;;  %v1810_v63 = vmul.f32 %v3638_v33, %v1801_v42  ;;  %4196 = vst [vmem:[#allocation43_spill] sm:$0xff] %v3665_v26  ;;  %v1565_v34 = vmul.f32 %v3495_v58, %v3513_v37  ;;  %v1327_v60 = vld [vmem:[#allocation2 + $0xdc] sm:$0xff] }
 0x275   : > { %v1743_v18 = vadd.f32 %v1735_v25, %v1718_v16  ;;  %v1539_v8 = vadd.f32 %v1531_v11, %v1522_v3  ;;  %v1566_v6 = vmul.f32 %v3495_v58, %v3521_v59  ;;  %v1582_v25 = vmul.f32 %v3497_v9, %v3521_v59 }
 0x276   : > { %v1767_v35 = vadd.f32 %v1759_v46, %v1742_v41  ;;  %v1540_v45 = vadd.f32 %v1532_v54, %v1523_v31  ;;  %v1583_v1 = vmul.f32 %v3497_v9, %v3523_v62  ;;  %v1600_v11 = vmul.f32 %v3499_v52, %v3533_v12  ;;  %v4197_v54 = vld [vmem:[#allocation31_spill] sm:$0xff] }
 0x277   : > { %v1768_v57 = vadd.f32 %v1760_v4, %v1743_v18  ;;  %v1556_v19 = vadd.f32 %v1548_v55, %v1539_v8  ;;  %v1599_v4 = vmul.f32 %v3499_v52, %v3523_v62  ;;  %v1616_v41 = vmul.f32 %v4197_v54, %v3533_v12  ;;  %v3681_v55 = vld [vmem:[#allocation2 + $0x128] sm:$0xff] }
 0x278   : > { %v1792_v46 = vadd.f32 %v1784_v20, %v1767_v35  ;;  %v1557_v16 = vadd.f32 %v1549_v27, %v1540_v45  ;;  %v1328_v20 = vld [vmem:[#allocation2 + $0xf4] sm:$0xff]  ;;  %v1617_v27 = vmul.f32 %v4197_v54, %v3583_v0  ;;  %v4198_v35 = vld [vmem:[#allocation32_spill] sm:$0xff]  ;;  %v1336_v45 = vmul.f32 %v3424_v24, %v1327_v60 }
 0x279   : > { %v1793_v39 = vadd.f32 %v1785_v17, %v1768_v57  ;;  %v1573_v3 = vadd.f32 %v1565_v34, %v1556_v19  ;;  %v1352_v17 = vld [vmem:[#allocation2 + $0xdd] sm:$0xff]  ;;  %v1311_v57 = vmul.f32 %v4198_v35, %v1302_v43  ;;  %v1312_v8 = vmul.f32 %v4198_v35, %v1303_v22  ;;  %v4199_v19 = vld [vmem:[#allocation34_spill] sm:$0xff] }
 0x27a   : > { %v1817_v18 = vadd.f32 %v1809_v48, %v1792_v46  ;;  %v1574_v31 = vadd.f32 %v1566_v6, %v1557_v16  ;;  %v1353_v6 = vld [vmem:[#allocation2 + $0xf5] sm:$0xff]  ;;  %v1377_v46 = vld [vmem:[#allocation2 + $0xde] sm:$0xff]  ;;  %v1633_v16 = vmul.f32 %v4199_v19, %v3583_v0  ;;  %v1337_v54 = vmul.f32 %v3424_v24, %v1328_v20 }
 0x27b   : > { %v1818_v42 = vadd.f32 %v1810_v63, %v1793_v39  ;;  %v1590_v63 = vadd.f32 %v1582_v25, %v1573_v3  ;;  %v3690_v39 = vld [vmem:[#allocation2 + $0x140] sm:$0xff]  ;;  %v1344_v43 = vadd.f32 %v1336_v45, %v1311_v57  ;;  %v1361_v22 = vmul.f32 %v3426_v14, %v1352_v17  ;;  %v1378_v25 = vld [vmem:[#allocation2 + $0xf6] sm:$0xff] }
 0x27c   : > { %v1830_v13 = vadd.f32 %v3665_v26, %v1817_v18  ;;  %v1591_v34 = vadd.f32 %v1583_v1, %v1574_v31  ;;  %v1634_v18 = vmul.f32 %v4199_v19, %v3681_v55  ;;  %v1345_v1 = vadd.f32 %v1337_v54, %v1312_v8  ;;  %v3706_v54 = vld [vmem:[#allocation2 + $0xf7] sm:$0xff] }
 0x27d   : > { %v1831_v48 = vadd.f32 %v3665_v26, %v1818_v42  ;;  %v1607_v60 = vadd.f32 %v1599_v4, %v1590_v63  ;;  %v1362_v42 = vmul.f32 %v3426_v14, %v1353_v6  ;;  %v1369_v3 = vadd.f32 %v1361_v22, %v1344_v43  ;;  %v1727_v22 = vld [vmem:[#allocation2 + $0xb2] sm:$0xff] }
 0x27e   : > { %v1608_v52 = vadd.f32 %v1600_v11, %v1591_v34  ;;  %v1386_v31 = vmul.f32 %v3430_v2, %v1377_v46  ;;  %v1650_v17 = vmul.f32 %v3540_v15, %v3681_v55  ;;  %v1387_v11 = vmul.f32 %v3430_v2, %v1378_v25 }
 0x27f   : > { %v1838_v35 = vpack.c.bf16 %v1831_v48, %v1830_v13  ;;  %v1624_v26 = vadd.f32 %v1616_v41, %v1607_v60  ;;  %v1651_v13 = vmul.f32 %v3540_v15, %v3690_v39  ;;  %v1370_v4 = vadd.f32 %v1362_v42, %v1345_v1  ;;  %v4200_v41 = vld [vmem:[#allocation23_spill] sm:$0xff] }
 0x280   : > { %v1625_v20 = vadd.f32 %v1617_v27, %v1608_v52  ;;  %v1394_v57 = vadd.f32 %v1386_v31, %v1369_v3  ;;  %v1413_v8 = vmul.f32 %v3436_v30, %v3585_v61  ;;  %v1677_v52 = vmul.f32 %v4200_v41, %v3610_v10  ;;  %v3712_v27 = vld [vmem:[#allocation2 + $0xc9] sm:$0xff] }
 0x281   : > { %2279 = vmatmul.msk.bf16.vlgmr.msrb.gmra.mxu3 %vm332_vm1, %v1838_v35  ;;  %v1641_v45 = vadd.f32 %v1633_v16, %v1624_v26  ;;  %v1395_v35 = vadd.f32 %v1387_v11, %v1370_v4  ;;  %v1414_v63 = vmul.f32 %v3436_v30, %v3598_v29  ;;  %v1430_v6 = vmul.f32 %v3444_v56, %v3598_v29  ;;  %v3720_v26 = vld [vmem:[#allocation2 + $0x10f] sm:$0xff]  ;;  %v3724_v16 = vld [vmem:[#allocation2 + $0xe1] sm:$0xff] }
 0x282   : > { %v1642_v48 = vadd.f32 %v1634_v18, %v1625_v20  ;;  %v1421_v34 = vadd.f32 %v1413_v8, %v1394_v57  ;;  %v1678_v61 = vmul.f32 %v4200_v41, %v3620_v5  ;;  %v1431_v10 = vmul.f32 %v3444_v56, %v3706_v54 }
 0x283   : > { %v1658_v46 = vadd.f32 %v1650_v17, %v1641_v45  ;;  %v1422_v60 = vadd.f32 %v1414_v63, %v1395_v35  ;;  %v1447_v25 = vmul.f32 %v3451_v38, %v3706_v54  ;;  %v1482_v29 = vmul.f32 %v3461_v53, %v3489_v47  ;;  %v1728_v17 = vld [vmem:[#allocation2 + $0xca] sm:$0xff] }
 0x284   : > { %v1659_v43 = vadd.f32 %v1651_v13, %v1642_v48  ;;  %v1438_v18 = vadd.f32 %v1430_v6, %v1421_v34  ;;  %v1694_v3 = vmul.f32 %v3579_v7, %v3620_v5  ;;  %v1695_v31 = vmul.f32 %v3579_v7, %v3712_v27  ;;  %v1752_v13 = vld [vmem:[#allocation2 + $0xb3] sm:$0xff]  ;;  %v1753_v48 = vld [vmem:[#allocation2 + $0xcb] sm:$0xff] }
 0x285   : > { %v1685_v1 = vadd.f32 %v1677_v52, %v1658_v46  ;;  %v1711_v20 = vmul.f32 %v3592_v36, %v3712_v27  ;;  %v1439_v4 = vadd.f32 %v1431_v10, %v1422_v60  ;;  %v1448_v11 = vmul.f32 %v3451_v38, %v3720_v26  ;;  %v1777_v52 = vld [vmem:[#allocation2 + $0xb4] sm:$0xff]  ;;  %v1778_v60 = vld [vmem:[#allocation2 + $0xcc] sm:$0xff] }
 0x286   : > { %v1686_v42 = vadd.f32 %v1678_v61, %v1659_v43  ;;  %v1455_v57 = vadd.f32 %v1447_v25, %v1438_v18  ;;  %v1712_v45 = vmul.f32 %v3592_v36, %v3724_v16  ;;  %v1736_v5 = vmul.f32 %v3601_v28, %v1727_v22  ;;  %v1802_v18 = vld [vmem:[#allocation2 + $0xb5] sm:$0xff] }
 0x287   : > { %v1702_v8 = vadd.f32 %v1694_v3, %v1685_v1  ;;  %v1456_v35 = vadd.f32 %v1448_v11, %v1439_v4  ;;  %v1483_v63 = vmul.f32 %v3461_v53, %v3491_v32  ;;  %v1499_v6 = vmul.f32 %v3470_v44, %v3491_v32 }
 0x288   : > { %v1703_v47 = vadd.f32 %v1695_v31, %v1686_v42  ;;  %v1490_v34 = vadd.f32 %v1482_v29, %v1455_v57  ;;  %v1737_v61 = vmul.f32 %v3601_v28, %v1728_v17  ;;  %v1761_v10 = vmul.f32 %v3604_v21, %v1752_v13 }
 0x289   : > { %v1719_v46 = vadd.f32 %v1711_v20, %v1702_v8  ;;  %v1491_v25 = vadd.f32 %v1483_v63, %v1456_v35  ;;  %v1500_v22 = vmul.f32 %v3470_v44, %v3501_v50  ;;  %v1516_v42 = vmul.f32 %v3476_v51, %v3501_v50  ;;  %v1803_v20 = vld [vmem:[#allocation2 + $0xcd] sm:$0xff] }
 0x28a   : > { %v1720_v43 = vadd.f32 %v1712_v45, %v1703_v47  ;;  %v1507_v1 = vadd.f32 %v1499_v6, %v1490_v34  ;;  %v1762_v32 = vmul.f32 %v3604_v21, %v1753_v48  ;;  %v1786_v31 = vmul.f32 %v3645_v49, %v1777_v52 }
 0x28b   : > { %v1744_v29 = vadd.f32 %v1736_v5, %v1719_v46  ;;  %v1508_v17 = vadd.f32 %v1500_v22, %v1491_v25  ;;  %v1517_v13 = vmul.f32 %v3476_v51, %v3513_v37  ;;  %v1533_v11 = vmul.f32 %v3493_v40, %v3513_v37 }
 0x28c   : > { %v1745_v3 = vadd.f32 %v1737_v61, %v1720_v43  ;;  %v1524_v4 = vadd.f32 %v1516_v42, %v1507_v1  ;;  %v1787_v47 = vmul.f32 %v3645_v49, %v1778_v60  ;;  %v1811_v45 = vmul.f32 %v3638_v33, %v1802_v18  ;;  %v1304_v42 = vld [vmem:[#allocation2 + $0x10b] sm:$0xff] }
 0x28d   : > { %v1769_v57 = vadd.f32 %v1761_v10, %v1744_v29  ;;  %v1525_v5 = vadd.f32 %v1517_v13, %v1508_v17  ;;  %v1534_v48 = vmul.f32 %v3493_v40, %v3521_v59  ;;  %v1550_v35 = vmul.f32 %v3487_v23, %v3521_v59  ;;  %v1329_v29 = vld [vmem:[#allocation2 + $0x10c] sm:$0xff]  ;;  %v1305_v13 = vld [vmem:[#allocation2 + $0x123] sm:$0xff] }
 0x28e   : > { %v1770_v8 = vadd.f32 %v1762_v32, %v1745_v3  ;;  %v1541_v52 = vadd.f32 %v1533_v11, %v1524_v4  ;;  %v1812_v6 = vmul.f32 %v3638_v33, %v1803_v20  ;;  %v1551_v46 = vmul.f32 %v3487_v23, %v3523_v62  ;;  %v1330_v4 = vld [vmem:[#allocation2 + $0x124] sm:$0xff]  ;;  %v4202_v11 = vld [vmem:[#allocation43_spill] sm:$0xff] }
 0x28f   : > { %v1794_v63 = vadd.f32 %v1786_v31, %v1769_v57  ;;  %v1542_v43 = vadd.f32 %v1534_v48, %v1525_v5  ;;  %v1567_v10 = vmul.f32 %v3495_v58, %v3523_v62  ;;  %v1568_v60 = vmul.f32 %v3495_v58, %v3533_v12  ;;  %v4201_v31 = vld [vmem:[#allocation22_spill] sm:$0xff]  ;;  %v4204_v5 = vld [vmem:[#allocation32_spill] sm:$0xff] }
 0x290   : > { %v1795_v34 = vadd.f32 %v1787_v47, %v1770_v8  ;;  %v1558_v61 = vadd.f32 %v1550_v35, %v1541_v52  ;;  %v1584_v22 = vmul.f32 %v3497_v9, %v3533_v12  ;;  %v1585_v1 = vmul.f32 %v3497_v9, %v3583_v0  ;;  %v4203_v47 = vld [vmem:[#allocation31_spill] sm:$0xff]  ;;  %v1354_v52 = vld [vmem:[#allocation2 + $0x10d] sm:$0xff] }
 0x291   : > { %v1819_v18 = vadd.f32 %v1811_v45, %v1794_v63  ;;  %v1559_v3 = vadd.f32 %v1551_v46, %v1542_v43  ;;  %v1601_v20 = vmul.f32 %v4201_v31, %v3583_v0  ;;  %v1602_v17 = vmul.f32 %v4201_v31, %v3681_v55  ;;  %v3783_v35 = vld [vmem:[#allocation2 + $0x158] sm:$0xff]  ;;  %v1355_v43 = vld [vmem:[#allocation2 + $0x125] sm:$0xff] }
 0x292   : > { %v1820_v25 = vadd.f32 %v1812_v6, %v1795_v34  ;;  %v1575_v32 = vadd.f32 %v1567_v10, %v1558_v61  ;;  %v1618_v45 = vmul.f32 %v4203_v47, %v3681_v55  ;;  %v1313_v48 = vmul.f32 %v4204_v5, %v1304_v42  ;;  %v1379_v42 = vld [vmem:[#allocation2 + $0x10e] sm:$0xff] }
 0x293   : > { %v1832_v57 = vadd.f32 %v4202_v11, %v1819_v18  ;;  %v1576_v63 = vadd.f32 %v1568_v60, %v1559_v3  ;;  %v1314_v6 = vmul.f32 %v4204_v5, %v1305_v13  ;;  %v1338_v46 = vmul.f32 %v3424_v24, %v1329_v29 }
 0x294   : > { %v1833_v8 = vadd.f32 %v4202_v11, %v1820_v25  ;;  %v1592_v34 = vadd.f32 %v1584_v22, %v1575_v32  ;;  %v1619_v10 = vmul.f32 %v4203_v47, %v3690_v39  ;;  %v1635_v18 = vmul.f32 %v4199_v19, %v3690_v39  ;;  %v3792_v11 = vld [vmem:[#allocation2 + $0x170] sm:$0xff]  ;;  %v1380_v32 = vld [vmem:[#allocation2 + $0x126] sm:$0xff] }
 0x295   : > { %v1339_v25 = vmul.f32 %v3424_v24, %v1330_v4  ;;  %v1593_v31 = vadd.f32 %v1585_v1, %v1576_v63  ;;  %v1346_v22 = vadd.f32 %v1338_v46, %v1313_v48  ;;  %v1363_v3 = vmul.f32 %v3426_v14, %v1354_v52 }
 0x296   : > { %v1839_v61 = vpack.c.bf16 %v1833_v8, %v1832_v57  ;;  %v1609_v60 = vadd.f32 %v1601_v20, %v1592_v34  ;;  %v1636_v29 = vmul.f32 %v4199_v19, %v3783_v35  ;;  %v1652_v13 = vmul.f32 %v3540_v15, %v3783_v35  ;;  %v1407_v19 = vld [vmem:[#allocation2 + $0x13f] sm:$0xff] }
 0x297   : > { %v1347_v57 = vadd.f32 %v1339_v25, %v1314_v6  ;;  %v1364_v24 = vmul.f32 %v3426_v14, %v1355_v43  ;;  %v1610_v4 = vadd.f32 %v1602_v17, %v1593_v31  ;;  %v1371_v5 = vadd.f32 %v1363_v3, %v1346_v22  ;;  %v3821_v3 = vld [vmem:[#allocation2 + $0x111] sm:$0xff] }
 0x298   : > { %2280 = vmatmul.msk.bf16.gmra.mxu3 %vm332_vm1, %v1839_v61  ;;  %v1626_v8 = vadd.f32 %v1618_v45, %v1609_v60  ;;  %v1388_v1 = vmul.f32 %v3430_v2, %v1379_v42  ;;  %v1653_v20 = vmul.f32 %v3540_v15, %v3792_v11  ;;  %v1389_v52 = vmul.f32 %v3430_v2, %v1380_v32  ;;  %v1406_v61 = vld [vmem:[#allocation2 + $0x127] sm:$0xff] }
 0x299   : > { %v1372_v48 = vadd.f32 %v1364_v24, %v1347_v57  ;;  %v1627_v63 = vadd.f32 %v1619_v10, %v1610_v4  ;;  %v1415_v6 = vmul.f32 %v3436_v30, %v3706_v54  ;;  %v1679_v14 = vmul.f32 %v4200_v41, %v3712_v27  ;;  %v3813_v10 = vld [vmem:[#allocation2 + $0xf9] sm:$0xff]  ;;  %v1729_v32 = vld [vmem:[#allocation2 + $0xe2] sm:$0xff] }
 0x29a   : > { %v1643_v34 = vadd.f32 %v1635_v18, %v1626_v8  ;;  %v1396_v46 = vadd.f32 %v1388_v1, %v1371_v5  ;;  %v1680_v31 = vmul.f32 %v4200_v41, %v3724_v16  ;;  %v1416_v45 = vmul.f32 %v3436_v30, %v3720_v26  ;;  %v1754_v8 = vld [vmem:[#allocation2 + $0xe3] sm:$0xff] }
 0x29b   : > { %v1397_v17 = vadd.f32 %v1389_v52, %v1372_v48  ;;  %v1644_v43 = vadd.f32 %v1636_v29, %v1627_v63  ;;  %v1432_v25 = vmul.f32 %v3444_v56, %v3720_v26  ;;  %v1696_v54 = vmul.f32 %v3579_v7, %v3724_v16 }
 0x29c   : > { %v1660_v2 = vadd.f32 %v1652_v13, %v1643_v34  ;;  %v1423_v18 = vadd.f32 %v1415_v6, %v1396_v46  ;;  %v1433_v27 = vmul.f32 %v3444_v56, %v1406_v61  ;;  %v1450_v60 = vmul.f32 %v3451_v38, %v1407_v19  ;;  %v1730_v56 = vld [vmem:[#allocation2 + $0xfa] sm:$0xff]  ;;  %v1779_v46 = vld [vmem:[#allocation2 + $0xe4] sm:$0xff] }
 0x29d   : > { %v1424_v42 = vadd.f32 %v1416_v45, %v1397_v17  ;;  %v1661_v22 = vadd.f32 %v1653_v20, %v1644_v43  ;;  %v1449_v13 = vmul.f32 %v3451_v38, %v1406_v61  ;;  %v1697_v57 = vmul.f32 %v3579_v7, %v3813_v10  ;;  %v1755_v34 = vld [vmem:[#allocation2 + $0xfb] sm:$0xff] }
 0x29e   : > { %v1687_v30 = vadd.f32 %v1679_v14, %v1660_v2  ;;  %v1440_v29 = vadd.f32 %v1432_v25, %v1423_v18  ;;  %v1713_v26 = vmul.f32 %v3592_v36, %v3813_v10  ;;  %v1484_v5 = vmul.f32 %v3461_v53, %v3501_v50  ;;  %v1780_v2 = vld [vmem:[#allocation2 + $0xfc] sm:$0xff] }
 0x29f   : > { %v1441_v16 = vadd.f32 %v1433_v27, %v1424_v42  ;;  %v1688_v24 = vadd.f32 %v1680_v31, %v1661_v22  ;;  %v1714_v1 = vmul.f32 %v3592_v36, %v3821_v3  ;;  %v1738_v38 = vmul.f32 %v3601_v28, %v1729_v32 }
 0x2a0   : > { %v1704_v4 = vadd.f32 %v1696_v54, %v1687_v30  ;;  %v1457_v19 = vadd.f32 %v1449_v13, %v1440_v29  ;;  %v1485_v48 = vmul.f32 %v3461_v53, %v3513_v37  ;;  %v1501_v6 = vmul.f32 %v3470_v44, %v3513_v37  ;;  %v1804_v53 = vld [vmem:[#allocation2 + $0xe5] sm:$0xff]  ;;  %v1805_v30 = vld [vmem:[#allocation2 + $0xfd] sm:$0xff] }
 0x2a1   : > { %v1458_v20 = vadd.f32 %v1450_v60, %v1441_v16  ;;  %v1705_v52 = vadd.f32 %v1697_v57, %v1688_v24  ;;  %v1739_v14 = vmul.f32 %v3601_v28, %v1730_v56  ;;  %v1763_v50 = vmul.f32 %v3604_v21, %v1754_v8 }
 0x2a2   : > { %v1721_v63 = vadd.f32 %v1713_v26, %v1704_v4  ;;  %v1492_v61 = vadd.f32 %v1484_v5, %v1457_v19  ;;  %v1502_v17 = vmul.f32 %v3470_v44, %v3521_v59  ;;  %v1518_v25 = vmul.f32 %v3476_v51, %v3521_v59 }
 0x2a3   : > { %v1493_v31 = vadd.f32 %v1485_v48, %v1458_v20  ;;  %v1722_v45 = vadd.f32 %v1714_v1, %v1705_v52  ;;  %v1764_v54 = vmul.f32 %v3604_v21, %v1755_v34  ;;  %v1788_v37 = vmul.f32 %v3645_v49, %v1779_v46 }
 0x2a4   : > { %v1746_v43 = vadd.f32 %v1738_v38, %v1721_v63  ;;  %v1509_v18 = vadd.f32 %v1501_v6, %v1492_v61  ;;  %v1519_v27 = vmul.f32 %v3476_v51, %v3523_v62  ;;  %v1535_v32 = vmul.f32 %v3493_v40, %v3523_v62 }
 0x2a5   : > { %v1510_v42 = vadd.f32 %v1502_v17, %v1493_v31  ;;  %v1747_v60 = vadd.f32 %v1739_v14, %v1722_v45  ;;  %v1789_v29 = vmul.f32 %v3645_v49, %v1780_v2  ;;  %v1813_v13 = vmul.f32 %v3638_v33, %v1804_v53  ;;  %v1476_v17 = vld [vmem:[#allocation2 + $0x1a0] sm:$0xff]  ;;  %v4207_v45 = vld [vmem:[#allocation34_spill] sm:$0xff] }
 0x2a6   : > { %v1771_v22 = vadd.f32 %v1763_v50, %v1746_v43  ;;  %v1526_v44 = vadd.f32 %v1518_v25, %v1509_v18  ;;  %v1536_v57 = vmul.f32 %v3493_v40, %v3533_v12  ;;  %v1552_v51 = vmul.f32 %v3487_v23, %v3533_v12  ;;  %v1475_v50 = vld [vmem:[#allocation2 + $0x188] sm:$0xff] }
 0x2a7   : > { %v1527_v59 = vadd.f32 %v1519_v27, %v1510_v42  ;;  %v1772_v26 = vadd.f32 %v1764_v54, %v1747_v60  ;;  %v1814_v4 = vmul.f32 %v3638_v33, %v1805_v30  ;;  %v1553_v62 = vmul.f32 %v3487_v23, %v3583_v0  ;;  %v4205_v23 = vld [vmem:[#allocation22_spill] sm:$0xff]  ;;  %v1673_v60 = vld [vmem:[#allocation2 + $0x141] sm:$0xff] }
 0x2a8   : > { %v1796_v16 = vadd.f32 %v1788_v37, %v1771_v22  ;;  %v1543_v24 = vadd.f32 %v1535_v32, %v1526_v44  ;;  %v1569_v1 = vmul.f32 %v3495_v58, %v3583_v0  ;;  %v1570_v40 = vmul.f32 %v3495_v58, %v3681_v55  ;;  %v4206_v0 = vld [vmem:[#allocation43_spill] sm:$0xff]  ;;  %v1672_v27 = vld [vmem:[#allocation2 + $0x129] sm:$0xff] }
 0x2a9   : > { %v1544_v56 = vadd.f32 %v1536_v57, %v1527_v59  ;;  %v1797_v8 = vadd.f32 %v1789_v29, %v1772_v26  ;;  %v1587_v20 = vmul.f32 %v3497_v9, %v3690_v39  ;;  %v1586_v52 = vmul.f32 %v3497_v9, %v3681_v55  ;;  %v1731_v59 = vld [vmem:[#allocation2 + $0x112] sm:$0xff] }
 0x2aa   : > { %v1821_v19 = vadd.f32 %v1813_v13, %v1796_v16  ;;  %v1560_v5 = vadd.f32 %v1552_v51, %v1543_v24  ;;  %v1603_v63 = vmul.f32 %v4205_v23, %v3690_v39  ;;  %v1604_v46 = vmul.f32 %v4205_v23, %v3783_v35  ;;  %v1732_v16 = vld [vmem:[#allocation2 + $0x12a] sm:$0xff] }
 0x2ab   : > { %v1561_v38 = vadd.f32 %v1553_v62, %v1544_v56  ;;  %v1822_v12 = vadd.f32 %v1814_v4, %v1797_v8  ;;  %v1620_v14 = vmul.f32 %v4203_v47, %v3783_v35  ;;  %v1621_v9 = vmul.f32 %v4203_v47, %v3792_v11 }
 0x2ac   : > { %v1577_v48 = vadd.f32 %v1569_v1, %v1560_v5  ;;  %v1834_v61 = vadd.f32 %v4206_v0, %v1821_v19  ;;  %v1637_v43 = vmul.f32 %v4207_v45, %v3792_v11  ;;  %v1638_v53 = vmul.f32 %v4207_v45, %v1475_v50  ;;  %v1782_v19 = vld [vmem:[#allocation2 + $0x12c] sm:$0xff] }
 0x2ad   : > { %v1578_v34 = vadd.f32 %v1570_v40, %v1561_v38  ;;  %v1835_v6 = vadd.f32 %v4206_v0, %v1822_v12  ;;  %v1654_v25 = vmul.f32 %v3540_v15, %v1475_v50  ;;  %v1655_v54 = vmul.f32 %v3540_v15, %v1476_v17  ;;  %v1806_v38 = vld [vmem:[#allocation2 + $0x115] sm:$0xff]  ;;  %v3929_v17 = vld [vmem:[%s4011_s6 + $0x1] ss:$0 sm:$0xff] }
 0x2ae   : > { %v1594_v58 = vadd.f32 %v1586_v52, %v1577_v48  ;;  %v1681_v22 = vmul.f32 %v4200_v41, %v3813_v10  ;;  %v1682_v30 = vmul.f32 %v4200_v41, %v3821_v3  ;;  %v1698_v32 = vmul.f32 %v3579_v7, %v3821_v3  ;;  %v1756_v10 = vld [vmem:[#allocation2 + $0x113] sm:$0xff]  ;;  %v1757_v41 = vld [vmem:[#allocation2 + $0x12b] sm:$0xff] }
 0x2af   : > { %v1595_v31 = vadd.f32 %v1587_v20, %v1578_v34  ;;  %v1840_v55 = vpack.c.bf16 %v1835_v6, %v1834_v61  ;;  %v1699_v13 = vmul.f32 %v3579_v7, %v1672_v27  ;;  %v1716_v15 = vmul.f32 %v3592_v36, %v1673_v60  ;;  %v1781_v3 = vld [vmem:[#allocation2 + $0x114] sm:$0xff] }
 0x2b0   : > { %v1611_v39 = vadd.f32 %v1603_v63, %v1594_v58  ;;  %v1715_v26 = vmul.f32 %v3592_v36, %v1672_v27  ;;  %v1740_v4 = vmul.f32 %v3601_v28, %v1731_v59  ;;  %v1741_v62 = vmul.f32 %v3601_v28, %v1732_v16  ;;  %v1807_v20 = vld [vmem:[#allocation2 + $0x12d] sm:$0xff]  ;;  %v2365_v58 = vld [vmem:[%s4012_s7 + $0x78] sm:$0xff] }
 0x2b1   : > { %v1612_v2 = vadd.f32 %v1604_v46, %v1595_v31  ;;  %2281 = vmatmul.msk.bf16.gmra.mxu3 %vm332_vm1, %v1840_v55  ;;  %v1765_v7 = vmul.f32 %v3604_v21, %v1756_v10  ;;  %v1766_v1 = vmul.f32 %v3604_v21, %v1757_v41  ;;  %v1790_v40 = vmul.f32 %v3645_v49, %v1781_v3  ;;  %v2360_v50 = vld [vmem:[%s4012_s7 + $0x50] sm:$0xff]  ;;  %v2358_v55 = vld [vmem:[%s4012_s7 + $0x40] sm:$0xff] }
 0x2b2   : > { %v1628_v18 = vadd.f32 %v1620_v14, %v1611_v39  ;;  %v1791_v48 = vmul.f32 %v3645_v49, %v1782_v19  ;;  %v1815_v23 = vmul.f32 %v3638_v33, %v1806_v38  ;;  %v1816_v63 = vmul.f32 %v3638_v33, %v1807_v20  ;;  %2051 = vmatpush.bf16.msrb.mxu1 %v2365_v58  ;;  %v2364_v49 = vld [vmem:[%s4012_s7 + $0x70] sm:$0xff]  ;;  %v2363_v33 = vld [vmem:[%s4012_s7 + $0x68] sm:$0xff]  ;;  %v2361_v14 = vld [vmem:[%s4012_s7 + $0x58] sm:$0xff] }
 0x2b3   : > { %v1629_v35 = vadd.f32 %v1621_v9, %v1612_v2  ;;  %v2359_v9 = vld [vmem:[%s4012_s7 + $0x48] sm:$0xff] }
 0x2b4   : > { %v1645_v37 = vadd.f32 %v1637_v43, %v1628_v18 }
 0x2b5   : > { %v1646_v42 = vadd.f32 %v1638_v53, %v1629_v35 }
 0x2b6   : > { %v1662_v47 = vadd.f32 %v1654_v25, %v1645_v37  ;;  %2052 = vmatpush.bf16.msrb.mxu1 %v2364_v49 }
 0x2b7   : > { %v1663_v11 = vadd.f32 %v1655_v54, %v1646_v42 }
 0x2b8   : > { %v1689_v44 = vadd.f32 %v1681_v22, %v1662_v47 }
 0x2b9   : > { %v1690_v29 = vadd.f32 %v1682_v30, %v1663_v11 }
 0x2ba   : > { %v1706_v57 = vadd.f32 %v1698_v32, %v1689_v44  ;;  %2053 = vmatpush.bf16.msrb.mxu1 %v2363_v33 }
 0x2bb   : > { %v1707_v24 = vadd.f32 %v1699_v13, %v1690_v29 }
 0x2bc   : > { %v1723_v51 = vadd.f32 %v1715_v26, %v1706_v57 }
 0x2bd   : > { %v1724_v56 = vadd.f32 %v1716_v15, %v1707_v24 }
 0x2be   : > { %v1748_v8 = vadd.f32 %v1740_v4, %v1723_v51 }
 0x2bf   : > { %v1749_v5 = vadd.f32 %v1741_v62, %v1724_v56 }
 0x2c0   : > { %v1773_v36 = vadd.f32 %v1765_v7, %v1748_v8 }
 0x2c1   : > { %v1774_v12 = vadd.f32 %v1766_v1, %v1749_v5 }
 0x2c2   : > { %v1798_v52 = vadd.f32 %v1790_v40, %v1773_v36 }
 0x2c3   : > { %v1799_v28 = vadd.f32 %v1791_v48, %v1774_v12 }
 0x2c4   : > { %v1823_v34 = vadd.f32 %v1815_v23, %v1798_v52 }
 0x2c5   : > { %v1824_v46 = vadd.f32 %v1816_v63, %v1799_v28 }
 0x2c6   : > { %v1836_v61 = vadd.f32 %v4206_v0, %v1823_v34 }
 0x2c7   : > { %v1837_v21 = vadd.f32 %v4206_v0, %v1824_v46  ;;  %v2362_v0 = vld [vmem:[%s4012_s7 + $0x60] sm:$0xff] }
 0x2c8   : > { %2054 = vmatpush.bf16.msrb.mxu1 %v2362_v0 }
 0x2c9   : > { %v1841_v6 = vpack.c.bf16 %v1837_v21, %v1836_v61 }
 0x2cb   : > { %2282 = vmatmul.msk.bf16.gmra.mxu3 %vm332_vm1, %v1841_v6 }
 0x2cc   : > { %2055 = vmatpush.bf16.msrb.mxu1 %v2361_v14 }
 0x2d0   : > { %2056 = vmatpush.bf16.msrb.mxu1 %v2360_v50 }
 0x2d4   : > { %2057 = vmatpush.bf16.msrb.mxu1 %v2359_v9 }
 0x2d8   : > { %2058 = vmatpush.bf16.msrb.mxu1 %v2358_v55 }
 0x304   : > { %v1885_v31 = vpop.f32.mrf.mxu3 }
 0x305   : > { %v1886_v45 = vadd.f32 %v3929_v17, %v1885_v31 }
 0x307   : > { %v1913_v2 = vmul.f32 0.044715, %v1886_v45  ;;  %v1905_v32 = vmul.f32 0.5, %v1886_v45 }
 0x309   : > { %v1921_v18 = vmul.f32 %v1913_v2, %v1886_v45 }
 0x30b   : > { %v1929_v35 = vmul.f32 %v1921_v18, %v1886_v45 }
 0x30c   : > { %v1887_v39 = vpop.f32.mrf.mxu3 }
 0x30d   : > { %v1888_v43 = vadd.f32 %v3929_v17, %v1887_v39  ;;  %v1937_v37 = vadd.f32 %v1929_v35, %v1886_v45 }
 0x30f   : > { %v1914_v53 = vmul.f32 0.044715, %v1888_v43  ;;  %v1945_v27 = vmul.f32 0.7978846, %v1937_v37  ;;  %v1906_v29 = vmul.f32 0.5, %v1888_v43 }
 0x311   : > { %v1922_v25 = vmul.f32 %v1914_v53, %v1888_v43  ;;  %2436 = vtanh.f32 %v1945_v27 }
 0x313   : > { %v1930_v54 = vmul.f32 %v1922_v25, %v1888_v43 }
 0x315   : > { %v1938_v42 = vadd.f32 %v1930_v54, %v1888_v43 }
 0x317   : > { %v1946_v60 = vmul.f32 0.7978846, %v1938_v42  ;;  %v2437_v22 = vpop.eup %2436 }
 0x318   : > { %v1961_v30 = vadd.f32 1.0, %v2437_v22 }
 0x319   : > { %2438 = vtanh.f32 %v1946_v60 }
 0x31a   : > { %v1969_v15 = vmul.f32 %v1961_v30, %v1905_v32 }
 0x31b   : > { %v1890_v47 = vpop.f32.mrf.mxu3 }
 0x31c   : > { %v1891_v57 = vadd.f32 %v3929_v17, %v1890_v47 }
 0x31e   : > { %v1915_v24 = vmul.f32 0.044715, %v1891_v57  ;;  %v1907_v63 = vmul.f32 0.5, %v1891_v57 }
 0x31f   : > { %v2439_v11 = vpop.eup %2438 }
 0x320   : > { %v1962_v13 = vadd.f32 1.0, %v2439_v11  ;;  %v1923_v51 = vmul.f32 %v1915_v24, %v1891_v57 }
 0x322   : > { %v1970_v59 = vmul.f32 %v1962_v13, %v1906_v29  ;;  %v1931_v41 = vmul.f32 %v1923_v51, %v1891_v57 }
 0x323   : > { %v1892_v44 = vpop.f32.mrf.mxu3 }
 0x324   : > { %v1893_v26 = vadd.f32 %v3929_v17, %v1892_v44  ;;  %v1977_v16 = vpack.c.bf16 %v1970_v59, %v1969_v15  ;;  %v1939_v3 = vadd.f32 %v1931_v41, %v1891_v57  ;;  %v4208_v41 = vld [vmem:[#allocation28_spill] sm:$0xff] }
 0x326   : > { %2059 = vmatmul.bf16.vlgmr.msrb.gmra.mxu1 %v1977_v16  ;;  %v1916_v10 = vmul.f32 0.044715, %v1893_v26  ;;  %v1947_v19 = vmul.f32 0.7978846, %v1939_v3  ;;  %v1908_v34 = vmul.f32 0.5, %v1893_v26 }
 0x328   : > { %v1924_v4 = vmul.f32 %v1916_v10, %v1893_v26  ;;  %2440 = vtanh.f32 %v1947_v19  ;;  %v2419_v10 = vld [vmem:[%s4013_s8 + $0x1] ss:$0 sm:$0xff] }
 0x32a   : > { %v1932_v56 = vmul.f32 %v1924_v4, %v1893_v26 }
 0x32c   : > { %v1940_v8 = vadd.f32 %v1932_v56, %v1893_v26 }
 0x32e   : > { %v1948_v5 = vmul.f32 0.7978846, %v1940_v8  ;;  %v2441_v48 = vpop.eup %2440  ;;  %v4209_v8 = vld [vmem:[#allocation27_spill] sm:$0xff] }
 0x32f   : > { %v1963_v28 = vadd.f32 1.0, %v2441_v48 }
 0x330   : > { %2442 = vtanh.f32 %v1948_v5 }
 0x331   : > { %v1971_v6 = vmul.f32 %v1963_v28, %v1907_v63 }
 0x334   : > { %v1895_v62 = vpop.f32.mrf.mxu3 }
 0x335   : > { %v1896_v7 = vadd.f32 %v3929_v17, %v1895_v62 }
 0x336   : > { %v2443_v52 = vpop.eup %2442 }
 0x337   : > { %v1917_v1 = vmul.f32 0.044715, %v1896_v7  ;;  %v1964_v46 = vadd.f32 1.0, %v2443_v52  ;;  %v1909_v43 = vmul.f32 0.5, %v1896_v7 }
 0x339   : > { %v1925_v38 = vmul.f32 %v1917_v1, %v1896_v7  ;;  %v1972_v58 = vmul.f32 %v1964_v46, %v1908_v34  ;;  %v4210_v1 = vld [vmem:[#allocation21_spill] sm:$0xff]  ;;  %v4213_v46 = vld [vmem:[#allocation20_spill] sm:$0xff] }
 0x33b   : > { %v1933_v36 = vmul.f32 %v1925_v38, %v1896_v7  ;;  %v1978_v33 = vpack.c.bf16 %v1972_v58, %v1971_v6  ;;  %v4214_v58 = vld [vmem:[#allocation44_spill] sm:$0xff] }
 0x33c   : > { %v1897_v40 = vpop.f32.mrf.mxu3 }
 0x33d   : > { %v1898_v20 = vadd.f32 %v3929_v17, %v1897_v40  ;;  %v1941_v12 = vadd.f32 %v1933_v36, %v1896_v7  ;;  %2064 = vmatmul.bf16.gmra.mxu1 %v1978_v33 }
 0x33f   : > { %v1918_v23 = vmul.f32 0.044715, %v1898_v20  ;;  %v1949_v21 = vmul.f32 0.7978846, %v1941_v12  ;;  %v1910_v2 = vmul.f32 0.5, %v1898_v20 }
 0x341   : > { %v1926_v61 = vmul.f32 %v1918_v23, %v1898_v20  ;;  %2444 = vtanh.f32 %v1949_v21  ;;  %v4212_v23 = vld [vmem:[#allocation35_spill] sm:$0xff] }
 0x343   : > { %v1934_v49 = vmul.f32 %v1926_v61, %v1898_v20 }
 0x345   : > { %v1942_v0 = vadd.f32 %v1934_v49, %v1898_v20  ;;  %v4211_v20 = vld [vmem:[#allocation47_spill] sm:$0xff] }
 0x347   : > { %v1950_v14 = vmul.f32 0.7978846, %v1942_v0  ;;  %v2445_v50 = vpop.eup %2444 }
 0x348   : > { %v1965_v55 = vadd.f32 1.0, %v2445_v50 }
 0x349   : > { %2446 = vtanh.f32 %v1950_v14  ;;  %v4215_v14 = vld [vmem:[#allocation46_spill] sm:$0xff] }
 0x34a   : > { %v1973_v18 = vmul.f32 %v1965_v55, %v1909_v43 }
 0x34e   : > { %v1900_v31 = vpop.f32.mrf.mxu3 }
 0x34f   : > { %v1901_v9 = vadd.f32 %v3929_v17, %v1900_v31  ;;  %v2447_v39 = vpop.eup %2446 }
 0x350   : > { %v1966_v53 = vadd.f32 1.0, %v2447_v39 }
 0x351   : > { %v1919_v45 = vmul.f32 0.044715, %v1901_v9  ;;  %v1911_v59 = vmul.f32 0.5, %v1901_v9 }
 0x352   : > { %v1974_v25 = vmul.f32 %v1966_v53, %v1910_v2 }
 0x353   : > { %v1927_v35 = vmul.f32 %v1919_v45, %v1901_v9 }
 0x354   : > { %v1979_v54 = vpack.c.bf16 %v1974_v25, %v1973_v18 }
 0x355   : > { %v1935_v37 = vmul.f32 %v1927_v35, %v1901_v9 }
 0x356   : > { %v1902_v42 = vpop.f32.mrf.mxu3  ;;  %2069 = vmatmul.bf16.gmra.mxu1 %v1979_v54 }
 0x357   : > { %v1903_v47 = vadd.f32 %v3929_v17, %v1902_v42  ;;  %v1943_v27 = vadd.f32 %v1935_v37, %v1901_v9 }
 0x359   : > { %v1920_v60 = vmul.f32 0.044715, %v1903_v47  ;;  %v1951_v11 = vmul.f32 0.7978846, %v1943_v27  ;;  %v1912_v57 = vmul.f32 0.5, %v1903_v47 }
 0x35b   : > { %v1928_v22 = vmul.f32 %v1920_v60, %v1903_v47  ;;  %2448 = vtanh.f32 %v1951_v11 }
 0x35d   : > { %v1936_v30 = vmul.f32 %v1928_v22, %v1903_v47 }
 0x35f   : > { %v1944_v44 = vadd.f32 %v1936_v30, %v1903_v47 }
 0x361   : > { %v1952_v32 = vmul.f32 0.7978846, %v1944_v44  ;;  %v2449_v29 = vpop.eup %2448 }
 0x362   : > { %v1967_v13 = vadd.f32 1.0, %v2449_v29 }
 0x363   : > { %2450 = vtanh.f32 %v1952_v32 }
 0x364   : > { %v1975_v16 = vmul.f32 %v1967_v13, %v1911_v59 }
 0x369   : > { %v2451_v15 = vpop.eup %2450 }
 0x36a   : > { %v1968_v26 = vadd.f32 1.0, %v2451_v15 }
 0x36c   : > { %v1976_v17 = vmul.f32 %v1968_v26, %v1912_v57 }
 0x36e   : > { %v1980_v24 = vpack.c.bf16 %v1976_v17, %v1975_v16 }
 0x370   : > { %2074 = vmatmul.bf16.gmra.mxu1 %v1980_v24 }
 0x3a3   : > { %v2060_v51 = vpop.f32.mrf.mxu1 }
 0x3a4   : > { %v2061_v4 = vadd.f32 %v2419_v10, %v2060_v51 }
 0x3a6   : > { %v2080_v56 = vadd.f32 %v2061_v4, %v4208_v41 }
 0x3a8   : > { %2088 = vst.msk [vmem:[%s3946_s22] sm:$0xff] %vm332_vm1, %v2080_v56 }
 0x3ab   : > { %v2062_v62 = vpop.f32.mrf.mxu1 }
 0x3ac   : > { %v2063_v3 = vadd.f32 %v2419_v10, %v2062_v62 }
 0x3ae   : > { %v2081_v7 = vadd.f32 %v2063_v3, %v4209_v8 }
 0x3b0   : > { %2089 = vst.msk [vmem:[%s3946_s22 + $0x8] sm:$0xff] %vm332_vm1, %v2081_v7 }
 0x3ba   : > { %v2065_v19 = vpop.f32.mrf.mxu1 }
 0x3bb   : > { %v2066_v5 = vadd.f32 %v2419_v10, %v2065_v19 }
 0x3bd   : > { %v2082_v38 = vadd.f32 %v2066_v5, %v4210_v1 }
 0x3bf   : > { %2090 = vst.msk [vmem:[%s3946_s22 + $0x10] sm:$0xff] %vm332_vm1, %v2082_v38 }
 0x3c2   : > { %v2067_v36 = vpop.f32.mrf.mxu1 }
 0x3c3   : > { %v2068_v40 = vadd.f32 %v2419_v10, %v2067_v36 }
 0x3c5   : > { %v2083_v12 = vadd.f32 %v2068_v40, %v4211_v20 }
 0x3c7   : > { %2091 = vst.msk [vmem:[%s3946_s22 + $0x18] sm:$0xff] %vm332_vm1, %v2083_v12 }
 0x3d3   : > { %v2070_v48 = vpop.f32.mrf.mxu1 }
 0x3d4   : > { %v2071_v52 = vadd.f32 %v2419_v10, %v2070_v48 }
 0x3d6   : > { %v2084_v28 = vadd.f32 %v2071_v52, %v4212_v23 }
 0x3d8   : > { %2092 = vst.msk [vmem:[%s3946_s22 + $0x20] sm:$0xff] %vm332_vm1, %v2084_v28 }
 0x3db   : > { %v2072_v63 = vpop.f32.mrf.mxu1 }
 0x3dc   : > { %v2073_v34 = vadd.f32 %v2419_v10, %v2072_v63 }
 0x3de   : > { %v2085_v61 = vadd.f32 %v2073_v34, %v4213_v46 }
 0x3e0   : > { %2093 = vst.msk [vmem:[%s3946_s22 + $0x28] sm:$0xff] %vm332_vm1, %v2085_v61 }
 0x3ed   : > { %v2075_v21 = vpop.f32.mrf.mxu1 }
 0x3ee   : > { %v2076_v6 = vadd.f32 %v2419_v10, %v2075_v21 }
 0x3f0   : > { %v2086_v49 = vadd.f32 %v2076_v6, %v4214_v58 }
 0x3f2   : > { %2094 = vst.msk [vmem:[%s3946_s22 + $0x30] sm:$0xff] %vm332_vm1, %v2086_v49 }
 0x3f5   : > { %v2077_v33 = vpop.f32.mrf.mxu1 }
 0x3f6   : > { %v2078_v0 = vadd.f32 %v2419_v10, %v2077_v33 }
 0x3f8   : > { %v2087_v50 = vadd.f32 %v2078_v0, %v4215_v14 }
 0x3fa   : > { %2095 = vst.msk [vmem:[%s3946_s22 + $0x38] sm:$0xff] %vm332_vm1, %v2087_v50 }
 0x3fb   : > { %2479 = shalt.err (!%p2476_p3)
}
 0x3fc   : > { %s2517_s14 = smov 128   ;;  %s2518_s22 = smov 8  }
 0x3fd   : > { %2369 = dma.vmem_to_hbm [thread:$0]  (%p2607_p5), %s2110_s27, 1024, %s2112_s28, %s2097_s13, %s2517_s14, %s2517_s14, %s2518_s22  }
 0x3fe PF: > { %p2375_p4 = scmp.ge.s32.totalorder %s2514_s12, 2  ;;  %s2126_s26 = sand.u32 1, %s2502_s30  }
 0x3ff   : > { %s2127_s17 = scalar_lea.sflag [#allocation4], %s2126_s26 }
 0x400   : > { %p2372_p7 = pnand %p2375_p4, %p2611_p6 }
 0x402   : > { %p2373_p8 = pneg %p2372_p7 }
 0x404   : > { %2497 = dma.done.wait (%p2373_p8), %s2127_s17, 1024  }
 0x405   : > { %2499 = vsyncadd (%p2373_p8), %s2127_s17, 4294966272  ;;  %p19_p9 = scmp.ge.s32.totalorder %s2594_s15, 4   ;;  %s4216_s30 = smov %s2506_s10 }
 0x406   : > { %s4217_s10 = smov %s2510_s11  ;;  %s4218_s11 = smov %s2605_s18 }
 0x407   : > { %s4219_s12 = smov %s2594_s15  ;;  %21 = sbr.rel (!%p19_p9) target bundleno = 3 (0x3), region = 100 }
 0x40c   :  { %2133 = vsyncpa [#allocation4], 1 }
 0x40d   :  { %2135 = vsyncpa [#allocation4 + $0x1], 1 }

</bundles_post_ra>
